<compile_context>
chip_gen: v7x
topology: tpu7x:2x2x1
jax: 0.10.0
libtpu: 0.0.40
codegen_flags: <defaults>
</compile_context>

<pallas_src>
import functools

import jax
import jax.numpy as jnp
from jax.experimental import pallas as pl
from jax.experimental.pallas import tpu as pltpu

BN_EPS = 1e-10
N_LAYERS = 12
COMPUTE_DTYPE = jnp.bfloat16   # MXU-native operand dtype (f32 accumulation)


# ---------------------------------------------------------------------------
# Fused Pallas kernel: the entire 12-layer MLP forward for one batch tile.
# ---------------------------------------------------------------------------
def _fused_vae_kernel(*refs):
    # refs = (x, w0..w11, b0..b11, recon_out, s_out)
    x_ref = refs[0]
    w = refs[1:1 + N_LAYERS]
    b = refs[1 + N_LAYERS:1 + 2 * N_LAYERS]
    recon_ref = refs[1 + 2 * N_LAYERS]
    s_ref = refs[2 + 2 * N_LAYERS]

    def linear(h, i):
        # bf16 operands on the MXU, f32 accumulation, f32 bias-add on the VPU.
        y = jnp.dot(h.astype(COMPUTE_DTYPE), w[i][...],
                    preferred_element_type=jnp.float32)
        return y + b[i][...]

    h = x_ref[...]
    # Encoder: 5 x (Linear + folded eval-BN -> ReLU). Dropout is identity in
    # eval mode.
    for i in range(5):
        h = jnp.maximum(linear(h, i), 0.0)

    # Latent: Linear + folded BN, no ReLU.  (latent_dim < 128 means masked
    # lane stores for s; tiny output, left as-is.)
    s_ref[...] = linear(h, 5).astype(s_ref.dtype)

    # Decoder first layer (fc6) takes the *pre-latent* activation: its stored
    # weight/bias were algebraically folded with fcs at trace time (exact,
    # since s has no nonlinearity).
    h = jnp.maximum(linear(h, 6), 0.0)
    for i in range(7, N_LAYERS):
        h = jnp.maximum(linear(h, i), 0.0)
    recon_ref[...] = h.astype(recon_ref.dtype)


# ---------------------------------------------------------------------------
# Trace-time parameter preparation (all exact algebra, done once under jit).
# ---------------------------------------------------------------------------
def _prepare_weights(params, bn_stats):
    """1) Fold eval-mode affine=False BatchNorm into the preceding Linear:
          ((x@W + b) - rm) * rsqrt(rv+eps) == x@(W*s) + (b - rm)*s.
       2) Fold the latent bottleneck into the decoder's first layer:
          relu(s@W6 + b6) == relu(x5@(W5@W6) + (b5@W6 + b6)).
       3) Cast weights to bf16 (MXU-native); keep biases f32, shaped (1, Dout).
    """
    w_list, b_list = [], []
    for i, (wi, bi) in enumerate(params):
        wi = wi.astype(jnp.float32)
        bi = bi.astype(jnp.float32)
        if i < len(bn_stats):
            rm, rv = bn_stats[i]
            scale = jax.lax.rsqrt(rv + BN_EPS)
            wi = wi * scale[None, :]
            bi = (bi - rm) * scale
        w_list.append(wi)
        b_list.append(bi)

    # Latent bottleneck fold (decoder layer 6 now consumes x5 directly).
    w5, b5 = w_list[5], b_list[5]
    w6, b6 = w_list[6], b_list[6]
    w_list[6] = w5 @ w6
    b_list[6] = b5 @ w6 + b6

    ws = [wi.astype(COMPUTE_DTYPE) for wi in w_list]
    bs = [bi.reshape(1, -1) for bi in b_list]
    return ws, bs


# ---------------------------------------------------------------------------
# Wrapper: single fused pallas_call (weights VMEM-resident across batch tiles)
# ---------------------------------------------------------------------------
def _forward_impl(x, params, bn_stats, *, single_buffer):
    B, Din = x.shape
    ws, bs = _prepare_weights(params, bn_stats)
    out_dim = ws[-1].shape[1]
    latent_dim = ws[5].shape[1]

    # Batch tile: big enough to fill the MXU M dim (multiple of 256 on
    # v6e/v7x) and amortize the ~0.35us per-grid-step overhead.  The ragged
    # last tile is handled by Pallas boundary masking -> no wrapper pad/slice.
    TB = B if B <= 512 else 512
    grid = (pl.cdiv(B, TB),)

    def row_spec(dout):
        return pl.BlockSpec((TB, dout), lambda i: (i, 0))

    def const_spec(a):
        if single_buffer:
            # Constant-index weights need no double buffering; halves their
            # VMEM footprint (matters most on v7x's 64 MiB).
            return pl.BlockSpec(a.shape, lambda i: (0, 0),
                                pipeline_mode=pl.Buffered(1))
        return pl.BlockSpec(a.shape, lambda i: (0, 0))

    in_specs = ([row_spec(Din)]
                + [const_spec(wi) for wi in ws]
                + [const_spec(bi) for bi in bs])
    out_specs = (row_spec(out_dim), row_spec(latent_dim))
    out_shape = (jax.ShapeDtypeStruct((B, out_dim), x.dtype),
                 jax.ShapeDtypeStruct((B, latent_dim), x.dtype))

    # Explicit VMEM budget: resident constants (x buffer count) + pipelined
    # activation tiles + headroom for layer intermediates.  Cap below v7x's
    # 64 MiB physical VMEM.
    const_bytes = (sum(wi.size * wi.dtype.itemsize for wi in ws)
                   + sum(bi.size * bi.dtype.itemsize for bi in bs))
    nbuf = 1 if single_buffer else 2
    act_tile_bytes = 4 * TB * (Din + out_dim + latent_dim)
    vmem_bytes = nbuf * const_bytes + 2 * act_tile_bytes + (16 << 20)
    vmem_bytes = int(min(max(vmem_bytes, 32 << 20), 56 << 20))

    flops = 2 * B * sum(wi.shape[0] * wi.shape[1] for wi in ws)
    bytes_accessed = (x.size * x.dtype.itemsize + const_bytes
                      + 4 * B * (out_dim + latent_dim))
    cost = pl.CostEstimate(flops=flops, transcendentals=0,
                           bytes_accessed=bytes_accessed)

    recon, s = pl.pallas_call(
        _fused_vae_kernel,
        out_shape=out_shape,
        grid=grid,
        in_specs=in_specs,
        out_specs=out_specs,
        compiler_params=pltpu.CompilerParams(
            # Only a lever on v7x (2 TCs) and only when grid has >= 2 tiles.
            dimension_semantics=("parallel",),
            vmem_limit_bytes=vmem_bytes),
        cost_estimate=cost,
    )(x, *ws, *bs)
    return recon, s


_FWD_CACHE = {}
_SINGLE_BUFFER_OK = None


def _get_fwd(single_buffer):
    fn = _FWD_CACHE.get(single_buffer)
    if fn is None:
        fn = jax.jit(functools.partial(_forward_impl,
                                       single_buffer=single_buffer))
        _FWD_CACHE[single_buffer] = fn
    return fn


def vae_forward(x, params, bn_stats):
    """Fused forward.  Tries single-buffered constant weights first (v7x VMEM
    saving); falls back to default double buffering if this Pallas version
    rejects pipeline_mode=pl.Buffered(1)."""
    global _SINGLE_BUFFER_OK
    if _SINGLE_BUFFER_OK is None:
        try:
            out = _get_fwd(True)(x, params, bn_stats)
            jax.block_until_ready(out)
            _SINGLE_BUFFER_OK = True
            return out
        except Exception:
            _SINGLE_BUFFER_OK = False
    return _get_fwd(_SINGLE_BUFFER_OK)(x, params, bn_stats)


# ---------------------------------------------------------------------------
# Parameter init (deterministic, PyTorch-Linear-style uniform bounds)
# ---------------------------------------------------------------------------
def layer_dims(input_dim, n_dim, latent_dim):
    d5, n5 = input_dim // 5, n_dim // 5
    return [
        (input_dim, d5),   # fc1
        (d5, d5),          # fc2
        (d5, n_dim),       # fc3
        (n_dim, n_dim),    # fc4
        (n_dim, n5),       # fc5
        (n5, latent_dim),  # fcs
        (latent_dim, n5),  # fc6
        (n5, n_dim),       # fc7
        (n_dim, n_dim),    # fc8
        (n_dim, d5),       # fc9
        (d5, d5),          # fc10
        (d5, input_dim),   # fc11
    ]


def init_params(key, input_dim, n_dim, latent_dim):
    dims = layer_dims(input_dim, n_dim, latent_dim)
    params = []
    for din, dout in dims:
        key, kw, kb = jax.random.split(key, 3)
        bound = 1.0 / (din ** 0.5)
        w = jax.random.uniform(kw, (din, dout), jnp.float32, -bound, bound)
        b = jax.random.uniform(kb, (dout,), jnp.float32, -bound, bound)
        params.append((w, b))
    # Non-trivial BN running stats for the 6 encoder BN layers (affine=False)
    # so the trace-time BN fold is actually exercised (not just identity).
    bn_stats = []
    for i in range(6):
        key, km, kv = jax.random.split(key, 3)
        dout = dims[i][1]
        rm = 0.05 * jax.random.normal(km, (dout,), jnp.float32)
        rv = jax.random.uniform(kv, (dout,), jnp.float32, 0.5, 1.5)
        bn_stats.append((rm, rv))
    return params, bn_stats


# ---------------------------------------------------------------------------
# References for correctness checks
# ---------------------------------------------------------------------------
def vae_ref_f32(x, params, bn_stats):
    """Faithful f32 eval-mode reference of the PyTorch module (unfused,
    explicit BatchNorm, dropout = identity)."""
    h = x
    for i in range(6):
        w, bb = params[i]
        rm, rv = bn_stats[i]
        y = (h @ w + bb - rm) / jnp.sqrt(rv + BN_EPS)
        h = jnp.maximum(y, 0.0) if i != 5 else y
    s = h
    for i in range(6, 12):
        w, bb = params[i]
        h = jnp.maximum(h @ w + bb, 0.0)
    return h, s


def vae_ref_matched(x, params, bn_stats):
    """Reference with the SAME trace-time folds and bf16 operand casts as the
    kernel (isolates Pallas tiling/indexing correctness from quantization)."""
    ws, bs = _prepare_weights(params, bn_stats)

    def lin(h, i):
        return jnp.dot(h.astype(COMPUTE_DTYPE), ws[i],
                       preferred_element_type=jnp.float32) + bs[i]

    h = x
    for i in range(5):
        h = jnp.maximum(lin(h, i), 0.0)
    s = lin(h, 5)
    h = jnp.maximum(lin(h, 6), 0.0)
    for i in range(7, 12):
        h = jnp.maximum(lin(h, i), 0.0)
    return h, s


if __name__ == "__main__":
    # Small shapes consistent with the module (input_dim and n_dim div by 5).
    batch, input_dim, n_dim, latent_dim = 8, 640, 320, 32

    key = jax.random.PRNGKey(0)
    key, kx, kp = jax.random.split(key, 3)
    x = jax.random.normal(kx, (batch, input_dim), jnp.float32)
    params, bn_stats = init_params(kp, input_dim, n_dim, latent_dim)

    recon, s = vae_forward(x, params, bn_stats)
    recon = jax.block_until_ready(recon)
    s = jax.block_until_ready(s)
    assert recon.shape == (batch, input_dim) and s.shape == (batch, latent_dim)

    # Tight check vs a fold/bf16-matched reference (kernel structure check).
    recon_m, s_m = vae_ref_matched(x, params, bn_stats)
    assert jnp.allclose(recon, recon_m, atol=1e-4, rtol=1e-3), "recon mismatch (matched ref)"
    assert jnp.allclose(s, s_m, atol=1e-4, rtol=1e-3), "s mismatch (matched ref)"

    # Loose check vs the faithful f32 module reference (bf16 weight quantization).
    recon_f, s_f = vae_ref_f32(x, params, bn_stats)
    assert jnp.allclose(recon, recon_f, atol=5e-3, rtol=5e-2), "recon mismatch (f32 ref)"
    assert jnp.allclose(s, s_f, atol=5e-3, rtol=5e-2), "s mismatch (f32 ref)"

    print("KERNEL_OK")
</pallas_src>

<mosaic_0001>
module attributes {stable_mosaic.version = 11 : i64} {
  func.func @_fused_vae_kernel(%arg0: i32, %arg1: memref<8x640xf32, #tpu.memory_space<vmem>>, %arg2: memref<640x128xbf16, #tpu.memory_space<vmem>>, %arg3: memref<128x128xbf16, #tpu.memory_space<vmem>>, %arg4: memref<128x320xbf16, #tpu.memory_space<vmem>>, %arg5: memref<320x320xbf16, #tpu.memory_space<vmem>>, %arg6: memref<320x64xbf16, #tpu.memory_space<vmem>>, %arg7: memref<64x32xbf16, #tpu.memory_space<vmem>>, %arg8: memref<64x64xbf16, #tpu.memory_space<vmem>>, %arg9: memref<64x320xbf16, #tpu.memory_space<vmem>>, %arg10: memref<320x320xbf16, #tpu.memory_space<vmem>>, %arg11: memref<320x128xbf16, #tpu.memory_space<vmem>>, %arg12: memref<128x128xbf16, #tpu.memory_space<vmem>>, %arg13: memref<128x640xbf16, #tpu.memory_space<vmem>>, %arg14: memref<1x128xf32, #tpu.memory_space<vmem>>, %arg15: memref<1x128xf32, #tpu.memory_space<vmem>>, %arg16: memref<1x320xf32, #tpu.memory_space<vmem>>, %arg17: memref<1x320xf32, #tpu.memory_space<vmem>>, %arg18: memref<1x64xf32, #tpu.memory_space<vmem>>, %arg19: memref<1x32xf32, #tpu.memory_space<vmem>>, %arg20: memref<1x64xf32, #tpu.memory_space<vmem>>, %arg21: memref<1x320xf32, #tpu.memory_space<vmem>>, %arg22: memref<1x320xf32, #tpu.memory_space<vmem>>, %arg23: memref<1x128xf32, #tpu.memory_space<vmem>>, %arg24: memref<1x128xf32, #tpu.memory_space<vmem>>, %arg25: memref<1x640xf32, #tpu.memory_space<vmem>>, %arg26: memref<8x640xf32, #tpu.memory_space<vmem>>, %arg27: memref<8x32xf32, #tpu.memory_space<vmem>>) attributes {dimension_semantics = [#tpu.dimension_semantics<parallel>], iteration_bounds = array<i64: 1>, scalar_prefetch = 0 : i64, scratch_operands = 0 : i64, tpu.core_type = #tpu.core_type<tc>, window_params = [{transform_indices = @transform_0, window_bounds = array<i64: 8, 640>}, {pipeline_mode = #tpu.pipeline_mode<synchronous>, transform_indices = @transform_1, window_bounds = array<i64: 640, 128>}, {pipeline_mode = #tpu.pipeline_mode<synchronous>, transform_indices = @transform_2, window_bounds = array<i64: 128, 128>}, {pipeline_mode = #tpu.pipeline_mode<synchronous>, transform_indices = @transform_3, window_bounds = array<i64: 128, 320>}, {pipeline_mode = #tpu.pipeline_mode<synchronous>, transform_indices = @transform_4, window_bounds = array<i64: 320, 320>}, {pipeline_mode = #tpu.pipeline_mode<synchronous>, transform_indices = @transform_5, window_bounds = array<i64: 320, 64>}, {pipeline_mode = #tpu.pipeline_mode<synchronous>, transform_indices = @transform_6, window_bounds = array<i64: 64, 32>}, {pipeline_mode = #tpu.pipeline_mode<synchronous>, transform_indices = @transform_7, window_bounds = array<i64: 64, 64>}, {pipeline_mode = #tpu.pipeline_mode<synchronous>, transform_indices = @transform_8, window_bounds = array<i64: 64, 320>}, {pipeline_mode = #tpu.pipeline_mode<synchronous>, transform_indices = @transform_9, window_bounds = array<i64: 320, 320>}, {pipeline_mode = #tpu.pipeline_mode<synchronous>, transform_indices = @transform_10, window_bounds = array<i64: 320, 128>}, {pipeline_mode = #tpu.pipeline_mode<synchronous>, transform_indices = @transform_11, window_bounds = array<i64: 128, 128>}, {pipeline_mode = #tpu.pipeline_mode<synchronous>, transform_indices = @transform_12, window_bounds = array<i64: 128, 640>}, {pipeline_mode = #tpu.pipeline_mode<synchronous>, transform_indices = @transform_13, window_bounds = array<i64: 1, 128>}, {pipeline_mode = #tpu.pipeline_mode<synchronous>, transform_indices = @transform_14, window_bounds = array<i64: 1, 128>}, {pipeline_mode = #tpu.pipeline_mode<synchronous>, transform_indices = @transform_15, window_bounds = array<i64: 1, 320>}, {pipeline_mode = #tpu.pipeline_mode<synchronous>, transform_indices = @transform_16, window_bounds = array<i64: 1, 320>}, {pipeline_mode = #tpu.pipeline_mode<synchronous>, transform_indices = @transform_17, window_bounds = array<i64: 1, 64>}, {pipeline_mode = #tpu.pipeline_mode<synchronous>, transform_indices = @transform_18, window_bounds = array<i64: 1, 32>}, {pipeline_mode = #tpu.pipeline_mode<synchronous>, transform_indices = @transform_19, window_bounds = array<i64: 1, 64>}, {pipeline_mode = #tpu.pipeline_mode<synchronous>, transform_indices = @transform_20, window_bounds = array<i64: 1, 320>}, {pipeline_mode = #tpu.pipeline_mode<synchronous>, transform_indices = @transform_21, window_bounds = array<i64: 1, 320>}, {pipeline_mode = #tpu.pipeline_mode<synchronous>, transform_indices = @transform_22, window_bounds = array<i64: 1, 128>}, {pipeline_mode = #tpu.pipeline_mode<synchronous>, transform_indices = @transform_23, window_bounds = array<i64: 1, 128>}, {pipeline_mode = #tpu.pipeline_mode<synchronous>, transform_indices = @transform_24, window_bounds = array<i64: 1, 640>}, {transform_indices = @transform_25, window_bounds = array<i64: 8, 640>}, {transform_indices = @transform_26, window_bounds = array<i64: 8, 32>}]} {
    %c0 = arith.constant 0 : index
    %c0_0 = arith.constant 0 : index
    %0 = vector.load %arg1[%c0, %c0_0] : memref<8x640xf32, #tpu.memory_space<vmem>>, vector<8x640xf32>
    %1 = arith.truncf %0 : vector<8x640xf32> to vector<8x640xbf16>
    %c0_1 = arith.constant 0 : index
    %c0_2 = arith.constant 0 : index
    %2 = vector.load %arg2[%c0_1, %c0_2] : memref<640x128xbf16, #tpu.memory_space<vmem>>, vector<640x128xbf16>
    %cst = arith.constant dense<0.000000e+00> : vector<8x128xf32>
    %3 = tpu.matmul %1, %2, %cst {dimension_numbers = #tpu.dot_dimension_numbers<[1], [0], [0], [1], [0, 0, 1, 1], [], []>} : vector<8x640xbf16>, vector<640x128xbf16>, vector<8x128xf32> -> vector<8x128xf32>
    %c0_3 = arith.constant 0 : index
    %c0_4 = arith.constant 0 : index
    %4 = vector.load %arg14[%c0_3, %c0_4] : memref<1x128xf32, #tpu.memory_space<vmem>>, vector<1x128xf32>
    %5 = vector.broadcast %4 : vector<1x128xf32> to vector<8x128xf32>
    %6 = arith.addf %3, %5 : vector<8x128xf32>
    %cst_5 = arith.constant 0.000000e+00 : f32
    %7 = vector.broadcast %cst_5 : f32 to vector<8x128xf32>
    %8 = arith.maximumf %6, %7 : vector<8x128xf32>
    %9 = arith.truncf %8 : vector<8x128xf32> to vector<8x128xbf16>
    %c0_6 = arith.constant 0 : index
    %c0_7 = arith.constant 0 : index
    %10 = vector.load %arg3[%c0_6, %c0_7] : memref<128x128xbf16, #tpu.memory_space<vmem>>, vector<128x128xbf16>
    %cst_8 = arith.constant dense<0.000000e+00> : vector<8x128xf32>
    %11 = tpu.matmul %9, %10, %cst_8 {dimension_numbers = #tpu.dot_dimension_numbers<[1], [0], [0], [1], [0, 0, 1, 1], [], []>} : vector<8x128xbf16>, vector<128x128xbf16>, vector<8x128xf32> -> vector<8x128xf32>
    %c0_9 = arith.constant 0 : index
    %c0_10 = arith.constant 0 : index
    %12 = vector.load %arg15[%c0_9, %c0_10] : memref<1x128xf32, #tpu.memory_space<vmem>>, vector<1x128xf32>
    %13 = vector.broadcast %12 : vector<1x128xf32> to vector<8x128xf32>
    %14 = arith.addf %11, %13 : vector<8x128xf32>
    %cst_11 = arith.constant 0.000000e+00 : f32
    %15 = vector.broadcast %cst_11 : f32 to vector<8x128xf32>
    %16 = arith.maximumf %14, %15 : vector<8x128xf32>
    %17 = arith.truncf %16 : vector<8x128xf32> to vector<8x128xbf16>
    %c0_12 = arith.constant 0 : index
    %c0_13 = arith.constant 0 : index
    %18 = vector.load %arg4[%c0_12, %c0_13] : memref<128x320xbf16, #tpu.memory_space<vmem>>, vector<128x320xbf16>
    %cst_14 = arith.constant dense<0.000000e+00> : vector<8x320xf32>
    %19 = tpu.matmul %17, %18, %cst_14 {dimension_numbers = #tpu.dot_dimension_numbers<[1], [0], [0], [1], [0, 0, 1, 1], [], []>} : vector<8x128xbf16>, vector<128x320xbf16>, vector<8x320xf32> -> vector<8x320xf32>
    %c0_15 = arith.constant 0 : index
    %c0_16 = arith.constant 0 : index
    %20 = vector.load %arg16[%c0_15, %c0_16] : memref<1x320xf32, #tpu.memory_space<vmem>>, vector<1x320xf32>
    %21 = vector.broadcast %20 : vector<1x320xf32> to vector<8x320xf32>
    %22 = arith.addf %19, %21 : vector<8x320xf32>
    %cst_17 = arith.constant 0.000000e+00 : f32
    %23 = vector.broadcast %cst_17 : f32 to vector<8x320xf32>
    %24 = arith.maximumf %22, %23 : vector<8x320xf32>
    %25 = arith.truncf %24 : vector<8x320xf32> to vector<8x320xbf16>
    %c0_18 = arith.constant 0 : index
    %c0_19 = arith.constant 0 : index
    %26 = vector.load %arg5[%c0_18, %c0_19] : memref<320x320xbf16, #tpu.memory_space<vmem>>, vector<320x320xbf16>
    %cst_20 = arith.constant dense<0.000000e+00> : vector<8x320xf32>
    %27 = tpu.matmul %25, %26, %cst_20 {dimension_numbers = #tpu.dot_dimension_numbers<[1], [0], [0], [1], [0, 0, 1, 1], [], []>} : vector<8x320xbf16>, vector<320x320xbf16>, vector<8x320xf32> -> vector<8x320xf32>
    %c0_21 = arith.constant 0 : index
    %c0_22 = arith.constant 0 : index
    %28 = vector.load %arg17[%c0_21, %c0_22] : memref<1x320xf32, #tpu.memory_space<vmem>>, vector<1x320xf32>
    %29 = vector.broadcast %28 : vector<1x320xf32> to vector<8x320xf32>
    %30 = arith.addf %27, %29 : vector<8x320xf32>
    %cst_23 = arith.constant 0.000000e+00 : f32
    %31 = vector.broadcast %cst_23 : f32 to vector<8x320xf32>
    %32 = arith.maximumf %30, %31 : vector<8x320xf32>
    %33 = arith.truncf %32 : vector<8x320xf32> to vector<8x320xbf16>
    %c0_24 = arith.constant 0 : index
    %c0_25 = arith.constant 0 : index
    %34 = vector.load %arg6[%c0_24, %c0_25] : memref<320x64xbf16, #tpu.memory_space<vmem>>, vector<320x64xbf16>
    %cst_26 = arith.constant dense<0.000000e+00> : vector<8x64xf32>
    %35 = tpu.matmul %33, %34, %cst_26 {dimension_numbers = #tpu.dot_dimension_numbers<[1], [0], [0], [1], [0, 0, 1, 1], [], []>} : vector<8x320xbf16>, vector<320x64xbf16>, vector<8x64xf32> -> vector<8x64xf32>
    %c0_27 = arith.constant 0 : index
    %c0_28 = arith.constant 0 : index
    %36 = vector.load %arg18[%c0_27, %c0_28] : memref<1x64xf32, #tpu.memory_space<vmem>>, vector<1x64xf32>
    %37 = vector.broadcast %36 : vector<1x64xf32> to vector<8x64xf32>
    %38 = arith.addf %35, %37 : vector<8x64xf32>
    %cst_29 = arith.constant 0.000000e+00 : f32
    %39 = vector.broadcast %cst_29 : f32 to vector<8x64xf32>
    %40 = arith.maximumf %38, %39 : vector<8x64xf32>
    %41 = arith.truncf %40 : vector<8x64xf32> to vector<8x64xbf16>
    %c0_30 = arith.constant 0 : index
    %c0_31 = arith.constant 0 : index
    %42 = vector.load %arg7[%c0_30, %c0_31] : memref<64x32xbf16, #tpu.memory_space<vmem>>, vector<64x32xbf16>
    %cst_32 = arith.constant dense<0.000000e+00> : vector<8x32xf32>
    %43 = tpu.matmul %41, %42, %cst_32 {dimension_numbers = #tpu.dot_dimension_numbers<[1], [0], [0], [1], [0, 0, 1, 1], [], []>} : vector<8x64xbf16>, vector<64x32xbf16>, vector<8x32xf32> -> vector<8x32xf32>
    %c0_33 = arith.constant 0 : index
    %c0_34 = arith.constant 0 : index
    %44 = vector.load %arg19[%c0_33, %c0_34] : memref<1x32xf32, #tpu.memory_space<vmem>>, vector<1x32xf32>
    %45 = vector.broadcast %44 : vector<1x32xf32> to vector<8x32xf32>
    %46 = arith.addf %43, %45 : vector<8x32xf32>
    %c0_35 = arith.constant 0 : index
    %c0_36 = arith.constant 0 : index
    %47 = vector.load %arg27[%c0_35, %c0_36] : memref<8x32xf32, #tpu.memory_space<vmem>>, vector<8x32xf32>
    tpu.vector_store %arg27[%c0_35, %c0_36], %46 {strides = array<i32>} : memref<8x32xf32, #tpu.memory_space<vmem>>, vector<8x32xf32>,
    %48 = arith.truncf %40 : vector<8x64xf32> to vector<8x64xbf16>
    %c0_37 = arith.constant 0 : index
    %c0_38 = arith.constant 0 : index
    %49 = vector.load %arg8[%c0_37, %c0_38] : memref<64x64xbf16, #tpu.memory_space<vmem>>, vector<64x64xbf16>
    %cst_39 = arith.constant dense<0.000000e+00> : vector<8x64xf32>
    %50 = tpu.matmul %48, %49, %cst_39 {dimension_numbers = #tpu.dot_dimension_numbers<[1], [0], [0], [1], [0, 0, 1, 1], [], []>} : vector<8x64xbf16>, vector<64x64xbf16>, vector<8x64xf32> -> vector<8x64xf32>
    %c0_40 = arith.constant 0 : index
    %c0_41 = arith.constant 0 : index
    %51 = vector.load %arg20[%c0_40, %c0_41] : memref<1x64xf32, #tpu.memory_space<vmem>>, vector<1x64xf32>
    %52 = vector.broadcast %51 : vector<1x64xf32> to vector<8x64xf32>
    %53 = arith.addf %50, %52 : vector<8x64xf32>
    %cst_42 = arith.constant 0.000000e+00 : f32
    %54 = vector.broadcast %cst_42 : f32 to vector<8x64xf32>
    %55 = arith.maximumf %53, %54 : vector<8x64xf32>
    %56 = arith.truncf %55 : vector<8x64xf32> to vector<8x64xbf16>
    %c0_43 = arith.constant 0 : index
    %c0_44 = arith.constant 0 : index
    %57 = vector.load %arg9[%c0_43, %c0_44] : memref<64x320xbf16, #tpu.memory_space<vmem>>, vector<64x320xbf16>
    %cst_45 = arith.constant dense<0.000000e+00> : vector<8x320xf32>
    %58 = tpu.matmul %56, %57, %cst_45 {dimension_numbers = #tpu.dot_dimension_numbers<[1], [0], [0], [1], [0, 0, 1, 1], [], []>} : vector<8x64xbf16>, vector<64x320xbf16>, vector<8x320xf32> -> vector<8x320xf32>
    %c0_46 = arith.constant 0 : index
    %c0_47 = arith.constant 0 : index
    %59 = vector.load %arg21[%c0_46, %c0_47] : memref<1x320xf32, #tpu.memory_space<vmem>>, vector<1x320xf32>
    %60 = vector.broadcast %59 : vector<1x320xf32> to vector<8x320xf32>
    %61 = arith.addf %58, %60 : vector<8x320xf32>
    %cst_48 = arith.constant 0.000000e+00 : f32
    %62 = vector.broadcast %cst_48 : f32 to vector<8x320xf32>
    %63 = arith.maximumf %61, %62 : vector<8x320xf32>
    %64 = arith.truncf %63 : vector<8x320xf32> to vector<8x320xbf16>
    %c0_49 = arith.constant 0 : index
    %c0_50 = arith.constant 0 : index
    %65 = vector.load %arg10[%c0_49, %c0_50] : memref<320x320xbf16, #tpu.memory_space<vmem>>, vector<320x320xbf16>
    %cst_51 = arith.constant dense<0.000000e+00> : vector<8x320xf32>
    %66 = tpu.matmul %64, %65, %cst_51 {dimension_numbers = #tpu.dot_dimension_numbers<[1], [0], [0], [1], [0, 0, 1, 1], [], []>} : vector<8x320xbf16>, vector<320x320xbf16>, vector<8x320xf32> -> vector<8x320xf32>
    %c0_52 = arith.constant 0 : index
    %c0_53 = arith.constant 0 : index
    %67 = vector.load %arg22[%c0_52, %c0_53] : memref<1x320xf32, #tpu.memory_space<vmem>>, vector<1x320xf32>
    %68 = vector.broadcast %67 : vector<1x320xf32> to vector<8x320xf32>
    %69 = arith.addf %66, %68 : vector<8x320xf32>
    %cst_54 = arith.constant 0.000000e+00 : f32
    %70 = vector.broadcast %cst_54 : f32 to vector<8x320xf32>
    %71 = arith.maximumf %69, %70 : vector<8x320xf32>
    %72 = arith.truncf %71 : vector<8x320xf32> to vector<8x320xbf16>
    %c0_55 = arith.constant 0 : index
    %c0_56 = arith.constant 0 : index
    %73 = vector.load %arg11[%c0_55, %c0_56] : memref<320x128xbf16, #tpu.memory_space<vmem>>, vector<320x128xbf16>
    %cst_57 = arith.constant dense<0.000000e+00> : vector<8x128xf32>
    %74 = tpu.matmul %72, %73, %cst_57 {dimension_numbers = #tpu.dot_dimension_numbers<[1], [0], [0], [1], [0, 0, 1, 1], [], []>} : vector<8x320xbf16>, vector<320x128xbf16>, vector<8x128xf32> -> vector<8x128xf32>
    %c0_58 = arith.constant 0 : index
    %c0_59 = arith.constant 0 : index
    %75 = vector.load %arg23[%c0_58, %c0_59] : memref<1x128xf32, #tpu.memory_space<vmem>>, vector<1x128xf32>
    %76 = vector.broadcast %75 : vector<1x128xf32> to vector<8x128xf32>
    %77 = arith.addf %74, %76 : vector<8x128xf32>
    %cst_60 = arith.constant 0.000000e+00 : f32
    %78 = vector.broadcast %cst_60 : f32 to vector<8x128xf32>
    %79 = arith.maximumf %77, %78 : vector<8x128xf32>
    %80 = arith.truncf %79 : vector<8x128xf32> to vector<8x128xbf16>
    %c0_61 = arith.constant 0 : index
    %c0_62 = arith.constant 0 : index
    %81 = vector.load %arg12[%c0_61, %c0_62] : memref<128x128xbf16, #tpu.memory_space<vmem>>, vector<128x128xbf16>
    %cst_63 = arith.constant dense<0.000000e+00> : vector<8x128xf32>
    %82 = tpu.matmul %80, %81, %cst_63 {dimension_numbers = #tpu.dot_dimension_numbers<[1], [0], [0], [1], [0, 0, 1, 1], [], []>} : vector<8x128xbf16>, vector<128x128xbf16>, vector<8x128xf32> -> vector<8x128xf32>
    %c0_64 = arith.constant 0 : index
    %c0_65 = arith.constant 0 : index
    %83 = vector.load %arg24[%c0_64, %c0_65] : memref<1x128xf32, #tpu.memory_space<vmem>>, vector<1x128xf32>
    %84 = vector.broadcast %83 : vector<1x128xf32> to vector<8x128xf32>
    %85 = arith.addf %82, %84 : vector<8x128xf32>
    %cst_66 = arith.constant 0.000000e+00 : f32
    %86 = vector.broadcast %cst_66 : f32 to vector<8x128xf32>
    %87 = arith.maximumf %85, %86 : vector<8x128xf32>
    %88 = arith.truncf %87 : vector<8x128xf32> to vector<8x128xbf16>
    %c0_67 = arith.constant 0 : index
    %c0_68 = arith.constant 0 : index
    %89 = vector.load %arg13[%c0_67, %c0_68] : memref<128x640xbf16, #tpu.memory_space<vmem>>, vector<128x640xbf16>
    %cst_69 = arith.constant dense<0.000000e+00> : vector<8x640xf32>
    %90 = tpu.matmul %88, %89, %cst_69 {dimension_numbers = #tpu.dot_dimension_numbers<[1], [0], [0], [1], [0, 0, 1, 1], [], []>} : vector<8x128xbf16>, vector<128x640xbf16>, vector<8x640xf32> -> vector<8x640xf32>
    %c0_70 = arith.constant 0 : index
    %c0_71 = arith.constant 0 : index
    %91 = vector.load %arg25[%c0_70, %c0_71] : memref<1x640xf32, #tpu.memory_space<vmem>>, vector<1x640xf32>
    %92 = vector.broadcast %91 : vector<1x640xf32> to vector<8x640xf32>
    %93 = arith.addf %90, %92 : vector<8x640xf32>
    %cst_72 = arith.constant 0.000000e+00 : f32
    %94 = vector.broadcast %cst_72 : f32 to vector<8x640xf32>
    %95 = arith.maximumf %93, %94 : vector<8x640xf32>
    %c0_73 = arith.constant 0 : index
    %c0_74 = arith.constant 0 : index
    %96 = vector.load %arg26[%c0_73, %c0_74] : memref<8x640xf32, #tpu.memory_space<vmem>>, vector<8x640xf32>
    tpu.vector_store %arg26[%c0_73, %c0_74], %95 {strides = array<i32>} : memref<8x640xf32, #tpu.memory_space<vmem>>, vector<8x640xf32>,
    return
  }
  func.func @transform_0(%arg0: i32) -> (i32, i32) {
    %c0_i32 = arith.constant 0 : i32
    %c0_i32_0 = arith.constant 0 : i32
    return %arg0, %c0_i32 : i32, i32
  }
  func.func @transform_1(%arg0: i32) -> (i32, i32) {
    %c0_i32 = arith.constant 0 : i32
    %c0_i32_0 = arith.constant 0 : i32
    %c0_i32_1 = arith.constant 0 : i32
    return %c0_i32, %c0_i32_0 : i32, i32
  }
  func.func @transform_2(%arg0: i32) -> (i32, i32) {
    %c0_i32 = arith.constant 0 : i32
    %c0_i32_0 = arith.constant 0 : i32
    %c0_i32_1 = arith.constant 0 : i32
    return %c0_i32, %c0_i32_0 : i32, i32
  }
  func.func @transform_3(%arg0: i32) -> (i32, i32) {
    %c0_i32 = arith.constant 0 : i32
    %c0_i32_0 = arith.constant 0 : i32
    %c0_i32_1 = arith.constant 0 : i32
    return %c0_i32, %c0_i32_0 : i32, i32
  }
  func.func @transform_4(%arg0: i32) -> (i32, i32) {
    %c0_i32 = arith.constant 0 : i32
    %c0_i32_0 = arith.constant 0 : i32
    %c0_i32_1 = arith.constant 0 : i32
    return %c0_i32, %c0_i32_0 : i32, i32
  }
  func.func @transform_5(%arg0: i32) -> (i32, i32) {
    %c0_i32 = arith.constant 0 : i32
    %c0_i32_0 = arith.constant 0 : i32
    %c0_i32_1 = arith.constant 0 : i32
    return %c0_i32, %c0_i32_0 : i32, i32
  }
  func.func @transform_6(%arg0: i32) -> (i32, i32) {
    %c0_i32 = arith.constant 0 : i32
    %c0_i32_0 = arith.constant 0 : i32
    %c0_i32_1 = arith.constant 0 : i32
    return %c0_i32, %c0_i32_0 : i32, i32
  }
  func.func @transform_7(%arg0: i32) -> (i32, i32) {
    %c0_i32 = arith.constant 0 : i32
    %c0_i32_0 = arith.constant 0 : i32
    %c0_i32_1 = arith.constant 0 : i32
    return %c0_i32, %c0_i32_0 : i32, i32
  }
  func.func @transform_8(%arg0: i32) -> (i32, i32) {
    %c0_i32 = arith.constant 0 : i32
    %c0_i32_0 = arith.constant 0 : i32
    %c0_i32_1 = arith.constant 0 : i32
    return %c0_i32, %c0_i32_0 : i32, i32
  }
  func.func @transform_9(%arg0: i32) -> (i32, i32) {
    %c0_i32 = arith.constant 0 : i32
    %c0_i32_0 = arith.constant 0 : i32
    %c0_i32_1 = arith.constant 0 : i32
    return %c0_i32, %c0_i32_0 : i32, i32
  }
  func.func @transform_10(%arg0: i32) -> (i32, i32) {
    %c0_i32 = arith.constant 0 : i32
    %c0_i32_0 = arith.constant 0 : i32
    %c0_i32_1 = arith.constant 0 : i32
    return %c0_i32, %c0_i32_0 : i32, i32
  }
  func.func @transform_11(%arg0: i32) -> (i32, i32) {
    %c0_i32 = arith.constant 0 : i32
    %c0_i32_0 = arith.constant 0 : i32
    %c0_i32_1 = arith.constant 0 : i32
    return %c0_i32, %c0_i32_0 : i32, i32
  }
  func.func @transform_12(%arg0: i32) -> (i32, i32) {
    %c0_i32 = arith.constant 0 : i32
    %c0_i32_0 = arith.constant 0 : i32
    %c0_i32_1 = arith.constant 0 : i32
    return %c0_i32, %c0_i32_0 : i32, i32
  }
  func.func @transform_13(%arg0: i32) -> (i32, i32) {
    %c0_i32 = arith.constant 0 : i32
    %c0_i32_0 = arith.constant 0 : i32
    %c0_i32_1 = arith.constant 0 : i32
    return %c0_i32, %c0_i32_0 : i32, i32
  }
  func.func @transform_14(%arg0: i32) -> (i32, i32) {
    %c0_i32 = arith.constant 0 : i32
    %c0_i32_0 = arith.constant 0 : i32
    %c0_i32_1 = arith.constant 0 : i32
    return %c0_i32, %c0_i32_0 : i32, i32
  }
  func.func @transform_15(%arg0: i32) -> (i32, i32) {
    %c0_i32 = arith.constant 0 : i32
    %c0_i32_0 = arith.constant 0 : i32
    %c0_i32_1 = arith.constant 0 : i32
    return %c0_i32, %c0_i32_0 : i32, i32
  }
  func.func @transform_16(%arg0: i32) -> (i32, i32) {
    %c0_i32 = arith.constant 0 : i32
    %c0_i32_0 = arith.constant 0 : i32
    %c0_i32_1 = arith.constant 0 : i32
    return %c0_i32, %c0_i32_0 : i32, i32
  }
  func.func @transform_17(%arg0: i32) -> (i32, i32) {
    %c0_i32 = arith.constant 0 : i32
    %c0_i32_0 = arith.constant 0 : i32
    %c0_i32_1 = arith.constant 0 : i32
    return %c0_i32, %c0_i32_0 : i32, i32
  }
  func.func @transform_18(%arg0: i32) -> (i32, i32) {
    %c0_i32 = arith.constant 0 : i32
    %c0_i32_0 = arith.constant 0 : i32
    %c0_i32_1 = arith.constant 0 : i32
    return %c0_i32, %c0_i32_0 : i32, i32
  }
  func.func @transform_19(%arg0: i32) -> (i32, i32) {
    %c0_i32 = arith.constant 0 : i32
    %c0_i32_0 = arith.constant 0 : i32
    %c0_i32_1 = arith.constant 0 : i32
    return %c0_i32, %c0_i32_0 : i32, i32
  }
  func.func @transform_20(%arg0: i32) -> (i32, i32) {
    %c0_i32 = arith.constant 0 : i32
    %c0_i32_0 = arith.constant 0 : i32
    %c0_i32_1 = arith.constant 0 : i32
    return %c0_i32, %c0_i32_0 : i32, i32
  }
  func.func @transform_21(%arg0: i32) -> (i32, i32) {
    %c0_i32 = arith.constant 0 : i32
    %c0_i32_0 = arith.constant 0 : i32
    %c0_i32_1 = arith.constant 0 : i32
    return %c0_i32, %c0_i32_0 : i32, i32
  }
  func.func @transform_22(%arg0: i32) -> (i32, i32) {
    %c0_i32 = arith.constant 0 : i32
    %c0_i32_0 = arith.constant 0 : i32
    %c0_i32_1 = arith.constant 0 : i32
    return %c0_i32, %c0_i32_0 : i32, i32
  }
  func.func @transform_23(%arg0: i32) -> (i32, i32) {
    %c0_i32 = arith.constant 0 : i32
    %c0_i32_0 = arith.constant 0 : i32
    %c0_i32_1 = arith.constant 0 : i32
    return %c0_i32, %c0_i32_0 : i32, i32
  }
  func.func @transform_24(%arg0: i32) -> (i32, i32) {
    %c0_i32 = arith.constant 0 : i32
    %c0_i32_0 = arith.constant 0 : i32
    %c0_i32_1 = arith.constant 0 : i32
    return %c0_i32, %c0_i32_0 : i32, i32
  }
  func.func @transform_25(%arg0: i32) -> (i32, i32) {
    %c0_i32 = arith.constant 0 : i32
    %c0_i32_0 = arith.constant 0 : i32
    return %arg0, %c0_i32 : i32, i32
  }
  func.func @transform_26(%arg0: i32) -> (i32, i32) {
    %c0_i32 = arith.constant 0 : i32
    %c0_i32_0 = arith.constant 0 : i32
    return %arg0, %c0_i32 : i32, i32
  }
}

module attributes {stable_mosaic.version = 11 : i64} {
  func.func @_fused_vae_kernel(%arg0: i32, %arg1: memref<8x640xf32, #tpu.memory_space<vmem>>, %arg2: memref<640x128xbf16, #tpu.memory_space<vmem>>, %arg3: memref<128x128xbf16, #tpu.memory_space<vmem>>, %arg4: memref<128x320xbf16, #tpu.memory_space<vmem>>, %arg5: memref<320x320xbf16, #tpu.memory_space<vmem>>, %arg6: memref<320x64xbf16, #tpu.memory_space<vmem>>, %arg7: memref<64x32xbf16, #tpu.memory_space<vmem>>, %arg8: memref<64x64xbf16, #tpu.memory_space<vmem>>, %arg9: memref<64x320xbf16, #tpu.memory_space<vmem>>, %arg10: memref<320x320xbf16, #tpu.memory_space<vmem>>, %arg11: memref<320x128xbf16, #tpu.memory_space<vmem>>, %arg12: memref<128x128xbf16, #tpu.memory_space<vmem>>, %arg13: memref<128x640xbf16, #tpu.memory_space<vmem>>, %arg14: memref<1x128xf32, #tpu.memory_space<vmem>>, %arg15: memref<1x128xf32, #tpu.memory_space<vmem>>, %arg16: memref<1x320xf32, #tpu.memory_space<vmem>>, %arg17: memref<1x320xf32, #tpu.memory_space<vmem>>, %arg18: memref<1x64xf32, #tpu.memory_space<vmem>>, %arg19: memref<1x32xf32, #tpu.memory_space<vmem>>, %arg20: memref<1x64xf32, #tpu.memory_space<vmem>>, %arg21: memref<1x320xf32, #tpu.memory_space<vmem>>, %arg22: memref<1x320xf32, #tpu.memory_space<vmem>>, %arg23: memref<1x128xf32, #tpu.memory_space<vmem>>, %arg24: memref<1x128xf32, #tpu.memory_space<vmem>>, %arg25: memref<1x640xf32, #tpu.memory_space<vmem>>, %arg26: memref<8x640xf32, #tpu.memory_space<vmem>>, %arg27: memref<8x32xf32, #tpu.memory_space<vmem>>) attributes {dimension_semantics = [#tpu.dimension_semantics<parallel>], iteration_bounds = array<i64: 1>, scalar_prefetch = 0 : i64, scratch_operands = 0 : i64, tpu.core_type = #tpu.core_type<tc>, window_params = [{transform_indices = @transform_0, window_bounds = array<i64: 8, 640>}, {pipeline_mode = #tpu.pipeline_mode<synchronous>, transform_indices = @transform_1, window_bounds = array<i64: 640, 128>}, {pipeline_mode = #tpu.pipeline_mode<synchronous>, transform_indices = @transform_2, window_bounds = array<i64: 128, 128>}, {pipeline_mode = #tpu.pipeline_mode<synchronous>, transform_indices = @transform_3, window_bounds = array<i64: 128, 320>}, {pipeline_mode = #tpu.pipeline_mode<synchronous>, transform_indices = @transform_4, window_bounds = array<i64: 320, 320>}, {pipeline_mode = #tpu.pipeline_mode<synchronous>, transform_indices = @transform_5, window_bounds = array<i64: 320, 64>}, {pipeline_mode = #tpu.pipeline_mode<synchronous>, transform_indices = @transform_6, window_bounds = array<i64: 64, 32>}, {pipeline_mode = #tpu.pipeline_mode<synchronous>, transform_indices = @transform_7, window_bounds = array<i64: 64, 64>}, {pipeline_mode = #tpu.pipeline_mode<synchronous>, transform_indices = @transform_8, window_bounds = array<i64: 64, 320>}, {pipeline_mode = #tpu.pipeline_mode<synchronous>, transform_indices = @transform_9, window_bounds = array<i64: 320, 320>}, {pipeline_mode = #tpu.pipeline_mode<synchronous>, transform_indices = @transform_10, window_bounds = array<i64: 320, 128>}, {pipeline_mode = #tpu.pipeline_mode<synchronous>, transform_indices = @transform_11, window_bounds = array<i64: 128, 128>}, {pipeline_mode = #tpu.pipeline_mode<synchronous>, transform_indices = @transform_12, window_bounds = array<i64: 128, 640>}, {pipeline_mode = #tpu.pipeline_mode<synchronous>, transform_indices = @transform_13, window_bounds = array<i64: 1, 128>}, {pipeline_mode = #tpu.pipeline_mode<synchronous>, transform_indices = @transform_14, window_bounds = array<i64: 1, 128>}, {pipeline_mode = #tpu.pipeline_mode<synchronous>, transform_indices = @transform_15, window_bounds = array<i64: 1, 320>}, {pipeline_mode = #tpu.pipeline_mode<synchronous>, transform_indices = @transform_16, window_bounds = array<i64: 1, 320>}, {pipeline_mode = #tpu.pipeline_mode<synchronous>, transform_indices = @transform_17, window_bounds = array<i64: 1, 64>}, {pipeline_mode = #tpu.pipeline_mode<synchronous>, transform_indices = @transform_18, window_bounds = array<i64: 1, 32>}, {pipeline_mode = #tpu.pipeline_mode<synchronous>, transform_indices = @transform_19, window_bounds = array<i64: 1, 64>}, {pipeline_mode = #tpu.pipeline_mode<synchronous>, transform_indices = @transform_20, window_bounds = array<i64: 1, 320>}, {pipeline_mode = #tpu.pipeline_mode<synchronous>, transform_indices = @transform_21, window_bounds = array<i64: 1, 320>}, {pipeline_mode = #tpu.pipeline_mode<synchronous>, transform_indices = @transform_22, window_bounds = array<i64: 1, 128>}, {pipeline_mode = #tpu.pipeline_mode<synchronous>, transform_indices = @transform_23, window_bounds = array<i64: 1, 128>}, {pipeline_mode = #tpu.pipeline_mode<synchronous>, transform_indices = @transform_24, window_bounds = array<i64: 1, 640>}, {transform_indices = @transform_25, window_bounds = array<i64: 8, 640>}, {transform_indices = @transform_26, window_bounds = array<i64: 8, 32>}]} {
    %c0 = arith.constant 0 : index
    %c0_0 = arith.constant 0 : index
    %0 = vector.load %arg1[%c0, %c0_0] : memref<8x640xf32, #tpu.memory_space<vmem>>, vector<8x640xf32>
    %1 = arith.truncf %0 : vector<8x640xf32> to vector<8x640xbf16>
    %c0_1 = arith.constant 0 : index
    %c0_2 = arith.constant 0 : index
    %2 = vector.load %arg2[%c0_1, %c0_2] : memref<640x128xbf16, #tpu.memory_space<vmem>>, vector<640x128xbf16>
    %cst = arith.constant dense<0.000000e+00> : vector<8x128xf32>
    %3 = tpu.matmul %1, %2, %cst {dimension_numbers = #tpu.dot_dimension_numbers<[1], [0], [0], [1], [0, 0, 1, 1], [], []>} : vector<8x640xbf16>, vector<640x128xbf16>, vector<8x128xf32> -> vector<8x128xf32>
    %c0_3 = arith.constant 0 : index
    %c0_4 = arith.constant 0 : index
    %4 = vector.load %arg14[%c0_3, %c0_4] : memref<1x128xf32, #tpu.memory_space<vmem>>, vector<1x128xf32>
    %5 = vector.broadcast %4 : vector<1x128xf32> to vector<8x128xf32>
    %6 = arith.addf %3, %5 : vector<8x128xf32>
    %cst_5 = arith.constant 0.000000e+00 : f32
    %7 = vector.broadcast %cst_5 : f32 to vector<8x128xf32>
    %8 = arith.maximumf %6, %7 : vector<8x128xf32>
    %9 = arith.truncf %8 : vector<8x128xf32> to vector<8x128xbf16>
    %c0_6 = arith.constant 0 : index
    %c0_7 = arith.constant 0 : index
    %10 = vector.load %arg3[%c0_6, %c0_7] : memref<128x128xbf16, #tpu.memory_space<vmem>>, vector<128x128xbf16>
    %cst_8 = arith.constant dense<0.000000e+00> : vector<8x128xf32>
    %11 = tpu.matmul %9, %10, %cst_8 {dimension_numbers = #tpu.dot_dimension_numbers<[1], [0], [0], [1], [0, 0, 1, 1], [], []>} : vector<8x128xbf16>, vector<128x128xbf16>, vector<8x128xf32> -> vector<8x128xf32>
    %c0_9 = arith.constant 0 : index
    %c0_10 = arith.constant 0 : index
    %12 = vector.load %arg15[%c0_9, %c0_10] : memref<1x128xf32, #tpu.memory_space<vmem>>, vector<1x128xf32>
    %13 = vector.broadcast %12 : vector<1x128xf32> to vector<8x128xf32>
    %14 = arith.addf %11, %13 : vector<8x128xf32>
    %cst_11 = arith.constant 0.000000e+00 : f32
    %15 = vector.broadcast %cst_11 : f32 to vector<8x128xf32>
    %16 = arith.maximumf %14, %15 : vector<8x128xf32>
    %17 = arith.truncf %16 : vector<8x128xf32> to vector<8x128xbf16>
    %c0_12 = arith.constant 0 : index
    %c0_13 = arith.constant 0 : index
    %18 = vector.load %arg4[%c0_12, %c0_13] : memref<128x320xbf16, #tpu.memory_space<vmem>>, vector<128x320xbf16>
    %cst_14 = arith.constant dense<0.000000e+00> : vector<8x320xf32>
    %19 = tpu.matmul %17, %18, %cst_14 {dimension_numbers = #tpu.dot_dimension_numbers<[1], [0], [0], [1], [0, 0, 1, 1], [], []>} : vector<8x128xbf16>, vector<128x320xbf16>, vector<8x320xf32> -> vector<8x320xf32>
    %c0_15 = arith.constant 0 : index
    %c0_16 = arith.constant 0 : index
    %20 = vector.load %arg16[%c0_15, %c0_16] : memref<1x320xf32, #tpu.memory_space<vmem>>, vector<1x320xf32>
    %21 = vector.broadcast %20 : vector<1x320xf32> to vector<8x320xf32>
    %22 = arith.addf %19, %21 : vector<8x320xf32>
    %cst_17 = arith.constant 0.000000e+00 : f32
    %23 = vector.broadcast %cst_17 : f32 to vector<8x320xf32>
    %24 = arith.maximumf %22, %23 : vector<8x320xf32>
    %25 = arith.truncf %24 : vector<8x320xf32> to vector<8x320xbf16>
    %c0_18 = arith.constant 0 : index
    %c0_19 = arith.constant 0 : index
    %26 = vector.load %arg5[%c0_18, %c0_19] : memref<320x320xbf16, #tpu.memory_space<vmem>>, vector<320x320xbf16>
    %cst_20 = arith.constant dense<0.000000e+00> : vector<8x320xf32>
    %27 = tpu.matmul %25, %26, %cst_20 {dimension_numbers = #tpu.dot_dimension_numbers<[1], [0], [0], [1], [0, 0, 1, 1], [], []>} : vector<8x320xbf16>, vector<320x320xbf16>, vector<8x320xf32> -> vector<8x320xf32>
    %c0_21 = arith.constant 0 : index
    %c0_22 = arith.constant 0 : index
    %28 = vector.load %arg17[%c0_21, %c0_22] : memref<1x320xf32, #tpu.memory_space<vmem>>, vector<1x320xf32>
    %29 = vector.broadcast %28 : vector<1x320xf32> to vector<8x320xf32>
    %30 = arith.addf %27, %29 : vector<8x320xf32>
    %cst_23 = arith.constant 0.000000e+00 : f32
    %31 = vector.broadcast %cst_23 : f32 to vector<8x320xf32>
    %32 = arith.maximumf %30, %31 : vector<8x320xf32>
    %33 = arith.truncf %32 : vector<8x320xf32> to vector<8x320xbf16>
    %c0_24 = arith.constant 0 : index
    %c0_25 = arith.constant 0 : index
    %34 = vector.load %arg6[%c0_24, %c0_25] : memref<320x64xbf16, #tpu.memory_space<vmem>>, vector<320x64xbf16>
    %cst_26 = arith.constant dense<0.000000e+00> : vector<8x64xf32>
    %35 = tpu.matmul %33, %34, %cst_26 {dimension_numbers = #tpu.dot_dimension_numbers<[1], [0], [0], [1], [0, 0, 1, 1], [], []>} : vector<8x320xbf16>, vector<320x64xbf16>, vector<8x64xf32> -> vector<8x64xf32>
    %c0_27 = arith.constant 0 : index
    %c0_28 = arith.constant 0 : index
    %36 = vector.load %arg18[%c0_27, %c0_28] : memref<1x64xf32, #tpu.memory_space<vmem>>, vector<1x64xf32>
    %37 = vector.broadcast %36 : vector<1x64xf32> to vector<8x64xf32>
    %38 = arith.addf %35, %37 : vector<8x64xf32>
    %cst_29 = arith.constant 0.000000e+00 : f32
    %39 = vector.broadcast %cst_29 : f32 to vector<8x64xf32>
    %40 = arith.maximumf %38, %39 : vector<8x64xf32>
    %41 = arith.truncf %40 : vector<8x64xf32> to vector<8x64xbf16>
    %c0_30 = arith.constant 0 : index
    %c0_31 = arith.constant 0 : index
    %42 = vector.load %arg7[%c0_30, %c0_31] : memref<64x32xbf16, #tpu.memory_space<vmem>>, vector<64x32xbf16>
    %cst_32 = arith.constant dense<0.000000e+00> : vector<8x32xf32>
    %43 = tpu.matmul %41, %42, %cst_32 {dimension_numbers = #tpu.dot_dimension_numbers<[1], [0], [0], [1], [0, 0, 1, 1], [], []>} : vector<8x64xbf16>, vector<64x32xbf16>, vector<8x32xf32> -> vector<8x32xf32>
    %c0_33 = arith.constant 0 : index
    %c0_34 = arith.constant 0 : index
    %44 = vector.load %arg19[%c0_33, %c0_34] : memref<1x32xf32, #tpu.memory_space<vmem>>, vector<1x32xf32>
    %45 = vector.broadcast %44 : vector<1x32xf32> to vector<8x32xf32>
    %46 = arith.addf %43, %45 : vector<8x32xf32>
    %c0_35 = arith.constant 0 : index
    %c0_36 = arith.constant 0 : index
    %47 = vector.load %arg27[%c0_35, %c0_36] : memref<8x32xf32, #tpu.memory_space<vmem>>, vector<8x32xf32>
    tpu.vector_store %arg27[%c0_35, %c0_36], %46 {strides = array<i32>} : memref<8x32xf32, #tpu.memory_space<vmem>>, vector<8x32xf32>,
    %48 = arith.truncf %40 : vector<8x64xf32> to vector<8x64xbf16>
    %c0_37 = arith.constant 0 : index
    %c0_38 = arith.constant 0 : index
    %49 = vector.load %arg8[%c0_37, %c0_38] : memref<64x64xbf16, #tpu.memory_space<vmem>>, vector<64x64xbf16>
    %cst_39 = arith.constant dense<0.000000e+00> : vector<8x64xf32>
    %50 = tpu.matmul %48, %49, %cst_39 {dimension_numbers = #tpu.dot_dimension_numbers<[1], [0], [0], [1], [0, 0, 1, 1], [], []>} : vector<8x64xbf16>, vector<64x64xbf16>, vector<8x64xf32> -> vector<8x64xf32>
    %c0_40 = arith.constant 0 : index
    %c0_41 = arith.constant 0 : index
    %51 = vector.load %arg20[%c0_40, %c0_41] : memref<1x64xf32, #tpu.memory_space<vmem>>, vector<1x64xf32>
    %52 = vector.broadcast %51 : vector<1x64xf32> to vector<8x64xf32>
    %53 = arith.addf %50, %52 : vector<8x64xf32>
    %cst_42 = arith.constant 0.000000e+00 : f32
    %54 = vector.broadcast %cst_42 : f32 to vector<8x64xf32>
    %55 = arith.maximumf %53, %54 : vector<8x64xf32>
    %56 = arith.truncf %55 : vector<8x64xf32> to vector<8x64xbf16>
    %c0_43 = arith.constant 0 : index
    %c0_44 = arith.constant 0 : index
    %57 = vector.load %arg9[%c0_43, %c0_44] : memref<64x320xbf16, #tpu.memory_space<vmem>>, vector<64x320xbf16>
    %cst_45 = arith.constant dense<0.000000e+00> : vector<8x320xf32>
    %58 = tpu.matmul %56, %57, %cst_45 {dimension_numbers = #tpu.dot_dimension_numbers<[1], [0], [0], [1], [0, 0, 1, 1], [], []>} : vector<8x64xbf16>, vector<64x320xbf16>, vector<8x320xf32> -> vector<8x320xf32>
    %c0_46 = arith.constant 0 : index
    %c0_47 = arith.constant 0 : index
    %59 = vector.load %arg21[%c0_46, %c0_47] : memref<1x320xf32, #tpu.memory_space<vmem>>, vector<1x320xf32>
    %60 = vector.broadcast %59 : vector<1x320xf32> to vector<8x320xf32>
    %61 = arith.addf %58, %60 : vector<8x320xf32>
    %cst_48 = arith.constant 0.000000e+00 : f32
    %62 = vector.broadcast %cst_48 : f32 to vector<8x320xf32>
    %63 = arith.maximumf %61, %62 : vector<8x320xf32>
    %64 = arith.truncf %63 : vector<8x320xf32> to vector<8x320xbf16>
    %c0_49 = arith.constant 0 : index
    %c0_50 = arith.constant 0 : index
    %65 = vector.load %arg10[%c0_49, %c0_50] : memref<320x320xbf16, #tpu.memory_space<vmem>>, vector<320x320xbf16>
    %cst_51 = arith.constant dense<0.000000e+00> : vector<8x320xf32>
    %66 = tpu.matmul %64, %65, %cst_51 {dimension_numbers = #tpu.dot_dimension_numbers<[1], [0], [0], [1], [0, 0, 1, 1], [], []>} : vector<8x320xbf16>, vector<320x320xbf16>, vector<8x320xf32> -> vector<8x320xf32>
    %c0_52 = arith.constant 0 : index
    %c0_53 = arith.constant 0 : index
    %67 = vector.load %arg22[%c0_52, %c0_53] : memref<1x320xf32, #tpu.memory_space<vmem>>, vector<1x320xf32>
    %68 = vector.broadcast %67 : vector<1x320xf32> to vector<8x320xf32>
    %69 = arith.addf %66, %68 : vector<8x320xf32>
    %cst_54 = arith.constant 0.000000e+00 : f32
    %70 = vector.broadcast %cst_54 : f32 to vector<8x320xf32>
    %71 = arith.maximumf %69, %70 : vector<8x320xf32>
    %72 = arith.truncf %71 : vector<8x320xf32> to vector<8x320xbf16>
    %c0_55 = arith.constant 0 : index
    %c0_56 = arith.constant 0 : index
    %73 = vector.load %arg11[%c0_55, %c0_56] : memref<320x128xbf16, #tpu.memory_space<vmem>>, vector<320x128xbf16>
    %cst_57 = arith.constant dense<0.000000e+00> : vector<8x128xf32>
    %74 = tpu.matmul %72, %73, %cst_57 {dimension_numbers = #tpu.dot_dimension_numbers<[1], [0], [0], [1], [0, 0, 1, 1], [], []>} : vector<8x320xbf16>, vector<320x128xbf16>, vector<8x128xf32> -> vector<8x128xf32>
    %c0_58 = arith.constant 0 : index
    %c0_59 = arith.constant 0 : index
    %75 = vector.load %arg23[%c0_58, %c0_59] : memref<1x128xf32, #tpu.memory_space<vmem>>, vector<1x128xf32>
    %76 = vector.broadcast %75 : vector<1x128xf32> to vector<8x128xf32>
    %77 = arith.addf %74, %76 : vector<8x128xf32>
    %cst_60 = arith.constant 0.000000e+00 : f32
    %78 = vector.broadcast %cst_60 : f32 to vector<8x128xf32>
    %79 = arith.maximumf %77, %78 : vector<8x128xf32>
    %80 = arith.truncf %79 : vector<8x128xf32> to vector<8x128xbf16>
    %c0_61 = arith.constant 0 : index
    %c0_62 = arith.constant 0 : index
    %81 = vector.load %arg12[%c0_61, %c0_62] : memref<128x128xbf16, #tpu.memory_space<vmem>>, vector<128x128xbf16>
    %cst_63 = arith.constant dense<0.000000e+00> : vector<8x128xf32>
    %82 = tpu.matmul %80, %81, %cst_63 {dimension_numbers = #tpu.dot_dimension_numbers<[1], [0], [0], [1], [0, 0, 1, 1], [], []>} : vector<8x128xbf16>, vector<128x128xbf16>, vector<8x128xf32> -> vector<8x128xf32>
    %c0_64 = arith.constant 0 : index
    %c0_65 = arith.constant 0 : index
    %83 = vector.load %arg24[%c0_64, %c0_65] : memref<1x128xf32, #tpu.memory_space<vmem>>, vector<1x128xf32>
    %84 = vector.broadcast %83 : vector<1x128xf32> to vector<8x128xf32>
    %85 = arith.addf %82, %84 : vector<8x128xf32>
    %cst_66 = arith.constant 0.000000e+00 : f32
    %86 = vector.broadcast %cst_66 : f32 to vector<8x128xf32>
    %87 = arith.maximumf %85, %86 : vector<8x128xf32>
    %88 = arith.truncf %87 : vector<8x128xf32> to vector<8x128xbf16>
    %c0_67 = arith.constant 0 : index
    %c0_68 = arith.constant 0 : index
    %89 = vector.load %arg13[%c0_67, %c0_68] : memref<128x640xbf16, #tpu.memory_space<vmem>>, vector<128x640xbf16>
    %cst_69 = arith.constant dense<0.000000e+00> : vector<8x640xf32>
    %90 = tpu.matmul %88, %89, %cst_69 {dimension_numbers = #tpu.dot_dimension_numbers<[1], [0], [0], [1], [0, 0, 1, 1], [], []>} : vector<8x128xbf16>, vector<128x640xbf16>, vector<8x640xf32> -> vector<8x640xf32>
    %c0_70 = arith.constant 0 : index
    %c0_71 = arith.constant 0 : index
    %91 = vector.load %arg25[%c0_70, %c0_71] : memref<1x640xf32, #tpu.memory_space<vmem>>, vector<1x640xf32>
    %92 = vector.broadcast %91 : vector<1x640xf32> to vector<8x640xf32>
    %93 = arith.addf %90, %92 : vector<8x640xf32>
    %cst_72 = arith.constant 0.000000e+00 : f32
    %94 = vector.broadcast %cst_72 : f32 to vector<8x640xf32>
    %95 = arith.maximumf %93, %94 : vector<8x640xf32>
    %c0_73 = arith.constant 0 : index
    %c0_74 = arith.constant 0 : index
    %96 = vector.load %arg26[%c0_73, %c0_74] : memref<8x640xf32, #tpu.memory_space<vmem>>, vector<8x640xf32>
    tpu.vector_store %arg26[%c0_73, %c0_74], %95 {strides = array<i32>} : memref<8x640xf32, #tpu.memory_space<vmem>>, vector<8x640xf32>,
    return
  }
  func.func @transform_0(%arg0: i32) -> (i32, i32) {
    %c0_i32 = arith.constant 0 : i32
    %c0_i32_0 = arith.constant 0 : i32
    return %arg0, %c0_i32 : i32, i32
  }
  func.func @transform_1(%arg0: i32) -> (i32, i32) {
    %c0_i32 = arith.constant 0 : i32
    %c0_i32_0 = arith.constant 0 : i32
    %c0_i32_1 = arith.constant 0 : i32
    return %c0_i32, %c0_i32_0 : i32, i32
  }
  func.func @transform_2(%arg0: i32) -> (i32, i32) {
    %c0_i32 = arith.constant 0 : i32
    %c0_i32_0 = arith.constant 0 : i32
    %c0_i32_1 = arith.constant 0 : i32
    return %c0_i32, %c0_i32_0 : i32, i32
  }
  func.func @transform_3(%arg0: i32) -> (i32, i32) {
    %c0_i32 = arith.constant 0 : i32
    %c0_i32_0 = arith.constant 0 : i32
    %c0_i32_1 = arith.constant 0 : i32
    return %c0_i32, %c0_i32_0 : i32, i32
  }
  func.func @transform_4(%arg0: i32) -> (i32, i32) {
    %c0_i32 = arith.constant 0 : i32
    %c0_i32_0 = arith.constant 0 : i32
    %c0_i32_1 = arith.constant 0 : i32
    return %c0_i32, %c0_i32_0 : i32, i32
  }
  func.func @transform_5(%arg0: i32) -> (i32, i32) {
    %c0_i32 = arith.constant 0 : i32
    %c0_i32_0 = arith.constant 0 : i32
    %c0_i32_1 = arith.constant 0 : i32
    return %c0_i32, %c0_i32_0 : i32, i32
  }
  func.func @transform_6(%arg0: i32) -> (i32, i32) {
    %c0_i32 = arith.constant 0 : i32
    %c0_i32_0 = arith.constant 0 : i32
    %c0_i32_1 = arith.constant 0 : i32
    return %c0_i32, %c0_i32_0 : i32, i32
  }
  func.func @transform_7(%arg0: i32) -> (i32, i32) {
    %c0_i32 = arith.constant 0 : i32
    %c0_i32_0 = arith.constant 0 : i32
    %c0_i32_1 = arith.constant 0 : i32
    return %c0_i32, %c0_i32_0 : i32, i32
  }
  func.func @transform_8(%arg0: i32) -> (i32, i32) {
    %c0_i32 = arith.constant 0 : i32
    %c0_i32_0 = arith.constant 0 : i32
    %c0_i32_1 = arith.constant 0 : i32
    return %c0_i32, %c0_i32_0 : i32, i32
  }
  func.func @transform_9(%arg0: i32) -> (i32, i32) {
    %c0_i32 = arith.constant 0 : i32
    %c0_i32_0 = arith.constant 0 : i32
    %c0_i32_1 = arith.constant 0 : i32
    return %c0_i32, %c0_i32_0 : i32, i32
  }
  func.func @transform_10(%arg0: i32) -> (i32, i32) {
    %c0_i32 = arith.constant 0 : i32
    %c0_i32_0 = arith.constant 0 : i32
    %c0_i32_1 = arith.constant 0 : i32
    return %c0_i32, %c0_i32_0 : i32, i32
  }
  func.func @transform_11(%arg0: i32) -> (i32, i32) {
    %c0_i32 = arith.constant 0 : i32
    %c0_i32_0 = arith.constant 0 : i32
    %c0_i32_1 = arith.constant 0 : i32
    return %c0_i32, %c0_i32_0 : i32, i32
  }
  func.func @transform_12(%arg0: i32) -> (i32, i32) {
    %c0_i32 = arith.constant 0 : i32
    %c0_i32_0 = arith.constant 0 : i32
    %c0_i32_1 = arith.constant 0 : i32
    return %c0_i32, %c0_i32_0 : i32, i32
  }
  func.func @transform_13(%arg0: i32) -> (i32, i32) {
    %c0_i32 = arith.constant 0 : i32
    %c0_i32_0 = arith.constant 0 : i32
    %c0_i32_1 = arith.constant 0 : i32
    return %c0_i32, %c0_i32_0 : i32, i32
  }
  func.func @transform_14(%arg0: i32) -> (i32, i32) {
    %c0_i32 = arith.constant 0 : i32
    %c0_i32_0 = arith.constant 0 : i32
    %c0_i32_1 = arith.constant 0 : i32
    return %c0_i32, %c0_i32_0 : i32, i32
  }
  func.func @transform_15(%arg0: i32) -> (i32, i32) {
    %c0_i32 = arith.constant 0 : i32
    %c0_i32_0 = arith.constant 0 : i32
    %c0_i32_1 = arith.constant 0 : i32
    return %c0_i32, %c0_i32_0 : i32, i32
  }
  func.func @transform_16(%arg0: i32) -> (i32, i32) {
    %c0_i32 = arith.constant 0 : i32
    %c0_i32_0 = arith.constant 0 : i32
    %c0_i32_1 = arith.constant 0 : i32
    return %c0_i32, %c0_i32_0 : i32, i32
  }
  func.func @transform_17(%arg0: i32) -> (i32, i32) {
    %c0_i32 = arith.constant 0 : i32
    %c0_i32_0 = arith.constant 0 : i32
    %c0_i32_1 = arith.constant 0 : i32
    return %c0_i32, %c0_i32_0 : i32, i32
  }
  func.func @transform_18(%arg0: i32) -> (i32, i32) {
    %c0_i32 = arith.constant 0 : i32
    %c0_i32_0 = arith.constant 0 : i32
    %c0_i32_1 = arith.constant 0 : i32
    return %c0_i32, %c0_i32_0 : i32, i32
  }
  func.func @transform_19(%arg0: i32) -> (i32, i32) {
    %c0_i32 = arith.constant 0 : i32
    %c0_i32_0 = arith.constant 0 : i32
    %c0_i32_1 = arith.constant 0 : i32
    return %c0_i32, %c0_i32_0 : i32, i32
  }
  func.func @transform_20(%arg0: i32) -> (i32, i32) {
    %c0_i32 = arith.constant 0 : i32
    %c0_i32_0 = arith.constant 0 : i32
    %c0_i32_1 = arith.constant 0 : i32
    return %c0_i32, %c0_i32_0 : i32, i32
  }
  func.func @transform_21(%arg0: i32) -> (i32, i32) {
    %c0_i32 = arith.constant 0 : i32
    %c0_i32_0 = arith.constant 0 : i32
    %c0_i32_1 = arith.constant 0 : i32
    return %c0_i32, %c0_i32_0 : i32, i32
  }
  func.func @transform_22(%arg0: i32) -> (i32, i32) {
    %c0_i32 = arith.constant 0 : i32
    %c0_i32_0 = arith.constant 0 : i32
    %c0_i32_1 = arith.constant 0 : i32
    return %c0_i32, %c0_i32_0 : i32, i32
  }
  func.func @transform_23(%arg0: i32) -> (i32, i32) {
    %c0_i32 = arith.constant 0 : i32
    %c0_i32_0 = arith.constant 0 : i32
    %c0_i32_1 = arith.constant 0 : i32
    return %c0_i32, %c0_i32_0 : i32, i32
  }
  func.func @transform_24(%arg0: i32) -> (i32, i32) {
    %c0_i32 = arith.constant 0 : i32
    %c0_i32_0 = arith.constant 0 : i32
    %c0_i32_1 = arith.constant 0 : i32
    return %c0_i32, %c0_i32_0 : i32, i32
  }
  func.func @transform_25(%arg0: i32) -> (i32, i32) {
    %c0_i32 = arith.constant 0 : i32
    %c0_i32_0 = arith.constant 0 : i32
    return %arg0, %c0_i32 : i32, i32
  }
  func.func @transform_26(%arg0: i32) -> (i32, i32) {
    %c0_i32 = arith.constant 0 : i32
    %c0_i32_0 = arith.constant 0 : i32
    return %arg0, %c0_i32 : i32, i32
  }
}

</mosaic_0001>

<bundles_post_ra>
// kernel: _forward_impl.1
= control target key start
LH: loop header
LB: loop body
LE: loop exit
PB: predicated region body
PF: predicated region fallthrough
CT: control target
= control target key end

     0   :  { %s5907_s0 = inlined_call_operand.vmem [shape: f32[8,640], index: 0, kind: input, shape index: {}]   ;;  %s5908_s1 = inlined_call_operand.vmem [shape: bf16[640,128], index: 1, kind: input, shape index: {}]   ;;  %s5909_s2 = inlined_call_operand.vmem [shape: bf16[128,128], index: 2, kind: input, shape index: {}]   ;;  %s5910_s3 = inlined_call_operand.vmem [shape: bf16[128,320], index: 3, kind: input, shape index: {}]   ;;  %s5911_s4 = inlined_call_operand.vmem [shape: bf16[320,320], index: 4, kind: input, shape index: {}]   ;;  %s5912_s5 = inlined_call_operand.vmem [shape: bf16[320,64], index: 5, kind: input, shape index: {}]   ;;  %s5913_s6 = inlined_call_operand.vmem [shape: bf16[64,32], index: 6, kind: input, shape index: {}]   ;;  %s5914_s7 = inlined_call_operand.vmem [shape: bf16[64,64], index: 7, kind: input, shape index: {}]   ;;  %s5915_s8 = inlined_call_operand.vmem [shape: bf16[64,320], index: 8, kind: input, shape index: {}]   ;;  %s5916_s9 = inlined_call_operand.vmem [shape: bf16[320,320], index: 9, kind: input, shape index: {}]   ;;  %s5917_s10 = inlined_call_operand.vmem [shape: bf16[320,128], index: 10, kind: input, shape index: {}]   ;;  %s5918_s11 = inlined_call_operand.vmem [shape: bf16[128,128], index: 11, kind: input, shape index: {}]   ;;  %s5919_s12 = inlined_call_operand.vmem [shape: bf16[128,640], index: 12, kind: input, shape index: {}]   ;;  %s5920_s13 = inlined_call_operand.vmem [shape: f32[1,128], index: 13, kind: input, shape index: {}]   ;;  %s5921_s14 = inlined_call_operand.vmem [shape: f32[1,128], index: 14, kind: input, shape index: {}]   ;;  %s5922_s15 = inlined_call_operand.vmem [shape: f32[1,320], index: 15, kind: input, shape index: {}]   ;;  %s5923_s16 = inlined_call_operand.vmem [shape: f32[1,320], index: 16, kind: input, shape index: {}]   ;;  %s5924_s17 = inlined_call_operand.vmem [shape: f32[1,64], index: 17, kind: input, shape index: {}]   ;;  %s5925_s18 = inlined_call_operand.vmem [shape: f32[1,32], index: 18, kind: input, shape index: {}]   ;;  %s5926_s19 = inlined_call_operand.vmem [shape: f32[1,64], index: 19, kind: input, shape index: {}]   ;;  %s5927_s20 = inlined_call_operand.vmem [shape: f32[1,320], index: 20, kind: input, shape index: {}]   ;;  %s5928_s21 = inlined_call_operand.vmem [shape: f32[1,320], index: 21, kind: input, shape index: {}]   ;;  %s5929_s22 = inlined_call_operand.vmem [shape: f32[1,128], index: 22, kind: input, shape index: {}]   ;;  %s5930_s23 = inlined_call_operand.vmem [shape: f32[1,128], index: 23, kind: input, shape index: {}]   ;;  %s5931_s24 = inlined_call_operand.vmem [shape: f32[1,640], index: 24, kind: input, shape index: {}]   ;;  %s5932_s25 = inlined_call_operand.hbm [shape: f32[8,640], index: 25, kind: output, shape index: {0}]   ;;  %s5933_s26 = inlined_call_operand.hbm [shape: f32[8,32], index: 26, kind: output, shape index: {1}]  }
   0x1   :  { %5945 = sst [smem:[#allocation8_spill]] %s5907_s0 }
   0x2   :  { %5946 = sst [smem:[#allocation9_spill]] %s5908_s1 }
   0x3   :  { %5947 = sst [smem:[#allocation10_spill]] %s5909_s2 }
   0x4   :  { %5948 = sst [smem:[#allocation11_spill]] %s5910_s3 }
   0x5   :  { %5949 = sst [smem:[#allocation12_spill]] %s5911_s4 }
   0x6   :  { %5950 = sst [smem:[#allocation13_spill]] %s5912_s5 }
   0x7   :  { %5951 = sst [smem:[#allocation14_spill]] %s5913_s6 }
   0x8   :  { %5952 = sst [smem:[#allocation15_spill]] %s5914_s7 }
   0x9   :  { %5953 = sst [smem:[#allocation16_spill]] %s5915_s8 }
   0xa   :  { %5954 = sst [smem:[#allocation17_spill]] %s5916_s9 }
   0xb   :  { %5955 = sst [smem:[#allocation18_spill]] %s5917_s10 }
   0xc   :  { %32 = vsyncpa [#allocation3], 0  ;;  %s5956_s7 = sld [smem:[#allocation9_spill]]  ;;  %s5957_s30 = sld [smem:[#allocation8_spill]]  ;;  %v4656_v35 = vmov 0.0   ;;  %vm4657_vm0 = vmmov 0  }
   0xd   :  { %s5958_s10 = sld [smem:[#allocation10_spill]] }
  0x12   :  { %v4240_v0 = vld [vmem:[%s5956_s7 + $0x40] sm:$0xff]   ;;  %v4244_v4 = vld [vmem:[%s5956_s7 + $0x48] sm:$0xff]   ;;  %v4248_v8 = vld [vmem:[%s5956_s7 + $0x50] sm:$0xff]  }
  0x13   :  { %v4241_v1 = vld [vmem:[%s5956_s7] sm:$0xff]   ;;  %3827 = vmatprep.subr.bf16.mxu0 %v4240_v0  ;;  %v4245_v5 = vld [vmem:[%s5956_s7 + $0x8] sm:$0xff]   ;;  %v4249_v9 = vld [vmem:[%s5956_s7 + $0x10] sm:$0xff]  }
  0x14   :  { %v4242_v2 = vld [vmem:[%s5956_s7 + $0xc0] sm:$0xff]   ;;  %3828 = vmatpush3.bf16.msra.mxu0 %v4241_v1  ;;  %v4246_v6 = vld [vmem:[%s5956_s7 + $0xc8] sm:$0xff]   ;;  %v4250_v10 = vld [vmem:[%s5956_s7 + $0xd0] sm:$0xff]  }
  0x15   :  { %v4243_v3 = vld [vmem:[%s5956_s7 + $0x80] sm:$0xff]   ;;  %3849 = vmatprep.subr.bf16.mxu1 %v4242_v2  ;;  %3829 = vmatprep.subr.bf16.mxu0 %v4244_v4  ;;  %v4247_v7 = vld [vmem:[%s5956_s7 + $0x88] sm:$0xff]   ;;  %v4251_v11 = vld [vmem:[%s5956_s7 + $0x90] sm:$0xff]  }
  0x16   :  { %3850 = vmatpush3.bf16.msra.mxu1 %v4243_v3  ;;  %v4252_v12 = vld [vmem:[%s5956_s7 + $0x58] sm:$0xff]   ;;  %v4256_v16 = vld [vmem:[%s5956_s7 + $0x60] sm:$0xff]   ;;  %v4260_v20 = vld [vmem:[%s5956_s7 + $0x68] sm:$0xff]  }
  0x17   :  { %3851 = vmatprep.subr.bf16.mxu1 %v4246_v6  ;;  %v4253_v13 = vld [vmem:[%s5956_s7 + $0x18] sm:$0xff]   ;;  %v4257_v17 = vld [vmem:[%s5956_s7 + $0x20] sm:$0xff]   ;;  %v4261_v21 = vld [vmem:[%s5956_s7 + $0x28] sm:$0xff]  }
  0x18   :  { %3830 = vmatpush3.bf16.msra.mxu0 %v4245_v5  ;;  %v4254_v14 = vld [vmem:[%s5956_s7 + $0xd8] sm:$0xff]   ;;  %v4258_v18 = vld [vmem:[%s5956_s7 + $0xe0] sm:$0xff]   ;;  %v4262_v22 = vld [vmem:[%s5956_s7 + $0xe8] sm:$0xff]  }
  0x19   :  { %3831 = vmatprep.subr.bf16.mxu0 %v4248_v8  ;;  %v4255_v15 = vld [vmem:[%s5956_s7 + $0x98] sm:$0xff]   ;;  %v4259_v19 = vld [vmem:[%s5956_s7 + $0xa0] sm:$0xff]   ;;  %v4263_v23 = vld [vmem:[%s5956_s7 + $0xa8] sm:$0xff]  }
  0x1a   :  { %3852 = vmatpush3.bf16.msra.mxu1 %v4247_v7  ;;  %v4264_v24 = vld [vmem:[%s5956_s7 + $0x70] sm:$0xff]   ;;  %v4268_v28 = vld [vmem:[%s5956_s7 + $0x78] sm:$0xff]   ;;  %v86_v31 = vld [vmem:[%s5957_s30 + $0x8] sm:$0xff] }
  0x1b   :  { %3853 = vmatprep.subr.bf16.mxu1 %v4250_v10  ;;  %v4265_v25 = vld [vmem:[%s5956_s7 + $0x30] sm:$0xff]   ;;  %v4269_v29 = vld [vmem:[%s5956_s7 + $0x38] sm:$0xff]   ;;  %v91_v32 = vpack.c.bf16 %v86_v31, %v86_v31  ;;  %v85_v34 = vld [vmem:[%s5957_s30] sm:$0xff] }
  0x1c   :  { %3832 = vmatpush3.bf16.msra.mxu0 %v4249_v9  ;;  %v4266_v26 = vld [vmem:[%s5956_s7 + $0xf0] sm:$0xff]   ;;  %v4270_v30 = vld [vmem:[%s5956_s7 + $0xf8] sm:$0xff]   ;;  %v90_v37 = vpack.c.bf16 %v85_v34, %v85_v34  ;;  %v4272_v39 = vld [vmem:[%s5956_s7 + $0x100] sm:$0xff]  }
  0x1d   :  { %3833 = vmatprep.subr.bf16.mxu0 %v4252_v12  ;;  %v4267_v27 = vld [vmem:[%s5956_s7 + $0xb0] sm:$0xff]   ;;  %v4271_v33 = vld [vmem:[%s5956_s7 + $0xb8] sm:$0xff]   ;;  %454 = vmatprep.mubr.bf16.mxu0 %v91_v32  ;;  %v4273_v42 = vld [vmem:[%s5956_s7 + $0x108] sm:$0xff]  }
  0x1e   :  { %3854 = vmatpush3.bf16.msra.mxu1 %v4251_v11  ;;  %v88_v36 = vld [vmem:[%s5957_s30 + $0x18] sm:$0xff]  ;;  %v87_v40 = vld [vmem:[%s5957_s30 + $0x10] sm:$0xff]  ;;  %v4276_v45 = vld [vmem:[%s5956_s7 + $0x120] sm:$0xff]  }
  0x1f   :  { %3855 = vmatprep.subr.bf16.mxu1 %v4254_v14  ;;  %v93_v38 = vpack.c.bf16 %v88_v36, %v88_v36  ;;  %v92_v41 = vpack.c.bf16 %v87_v40, %v87_v40  ;;  %v4274_v43 = vld [vmem:[%s5956_s7 + $0x110] sm:$0xff]   ;;  %v4275_v44 = vld [vmem:[%s5956_s7 + $0x118] sm:$0xff]   ;;  %v4277_v46 = vld [vmem:[%s5956_s7 + $0x128] sm:$0xff]  }
  0x20   :  { %3834 = vmatpush3.bf16.msra.mxu0 %v4253_v13  ;;  %v4278_v47 = vld [vmem:[%s5956_s7 + $0x130] sm:$0xff]   ;;  %v4279_v48 = vld [vmem:[%s5956_s7 + $0x138] sm:$0xff]   ;;  %v89_v49 = vld [vmem:[%s5957_s30 + $0x20] sm:$0xff]  ;;  %s5959_s7 = sld [smem:[#allocation11_spill]] }
  0x21   :  { %3835 = vmatprep.subr.bf16.mxu0 %v4256_v16  ;;  %494 = vmatprep.mubr.bf16.mxu1 %v93_v38  ;;  %v94_v50 = vpack.c.bf16 %v89_v49, %v89_v49  ;;  %v4280_v51 = vld [vmem:[%s5958_s10] sm:$0xff]   ;;  %v4281_v52 = vld [vmem:[%s5958_s10 + $0x8] sm:$0xff]   ;;  %v4282_v53 = vld [vmem:[%s5958_s10 + $0x10] sm:$0xff]  }
  0x22   :  { %3856 = vmatpush3.bf16.msra.mxu1 %v4255_v15  ;;  %v4283_v54 = vld [vmem:[%s5958_s10 + $0x18] sm:$0xff]   ;;  %v4284_v55 = vld [vmem:[%s5958_s10 + $0x20] sm:$0xff]   ;;  %v4285_v56 = vld [vmem:[%s5958_s10 + $0x28] sm:$0xff]  }
  0x23   :  { %3857 = vmatprep.subr.bf16.mxu1 %v4258_v18  ;;  %v4286_v57 = vld [vmem:[%s5958_s10 + $0x30] sm:$0xff]   ;;  %v4287_v58 = vld [vmem:[%s5958_s10 + $0x38] sm:$0xff]  }
  0x24   :  { %3836 = vmatpush3.bf16.msra.mxu0 %v4257_v17 }
  0x25   :  { %3837 = vmatprep.subr.bf16.mxu0 %v4260_v20 }
  0x26   :  { %3858 = vmatpush3.bf16.msra.mxu1 %v4259_v19  ;;  %v4288_v59 = vld [vmem:[%s5959_s7] ss:$12 sps:$4 sm:$0xff]   ;;  %v4290_v60 = vld [vmem:[%s5959_s7 + $0x4] ss:$12 sps:$4 sm:$0xff]   ;;  %v4294_v61 = vld [vmem:[%s5959_s7 + $0x1c] ss:$12 sps:$4 sm:$0xff]  }
  0x27   :  { %3859 = vmatprep.subr.bf16.mxu1 %v4262_v22  ;;  %v4292_v62 = vld [vmem:[%s5959_s7 + $0x18] ss:$12 sps:$4 sm:$0xff]   ;;  %v4298_v63 = vld [vmem:[%s5959_s7 + $0x34] ss:$12 sps:$4 sm:$0xff]   ;;  %v4296_v0 = vld [vmem:[%s5959_s7 + $0x30] ss:$12 sps:$4 sm:$0xff]  }
  0x28   :  { %3838 = vmatpush3.bf16.msra.mxu0 %v4261_v21  ;;  %v4302_v1 = vld [vmem:[%s5959_s7 + $0x4c] ss:$12 sps:$4 sm:$0xff]   ;;  %v4300_v2 = vld [vmem:[%s5959_s7 + $0x48] ss:$12 sps:$4 sm:$0xff]   ;;  %v4306_v3 = vld [vmem:[%s5959_s7 + $0x64] ss:$12 sps:$4 sm:$0xff]  }
  0x29   :  { %3839 = vmatprep.subr.bf16.mxu0 %v4264_v24  ;;  %v4304_v4 = vld [vmem:[%s5959_s7 + $0x60] ss:$12 sps:$4 sm:$0xff]   ;;  %v4310_v5 = vld [vmem:[%s5959_s7 + $0x7c] ss:$12 sps:$4 sm:$0xff]   ;;  %v4308_v6 = vld [vmem:[%s5959_s7 + $0x78] ss:$12 sps:$4 sm:$0xff]  }
  0x2a   :  { %3860 = vmatpush3.bf16.msra.mxu1 %v4263_v23  ;;  %v4314_v7 = vld [vmem:[%s5959_s7 + $0x94] ss:$12 sps:$4 sm:$0xff]  }
  0x2b   :  { %3861 = vmatprep.subr.bf16.mxu1 %v4266_v26 }
  0x2c   :  { %3840 = vmatpush3.bf16.msra.mxu0 %v4265_v25 }
  0x2d   :  { %3841 = vmatprep.subr.bf16.mxu0 %v4268_v28 }
  0x2e   :  { %3862 = vmatpush3.bf16.msra.mxu1 %v4267_v27 }
  0x2f   :  { %3863 = vmatprep.subr.bf16.mxu1 %v4270_v30 }
  0x30   :  { %3842 = vmatpush3.bf16.msra.mxu0 %v4269_v29 }
  0x31   :  { %4039 = vmatprep.subr.bf16.mxu0 %v4656_v35 }
  0x32   :  { %3864 = vmatpush3.bf16.msra.mxu1 %v4271_v33 }
  0x33   :  { %455 = vmatmul.mubr.bf16.vlgmr.msra.gmra.mrb[0].mxu0 %v90_v37  ;;  %4059 = vmatprep.subr.bf16.mxu1 %v4656_v35 }
  0x34   :  { %4040 = vmatpush3.bf16.msra.mxu0 %v4272_v39  ;;  %4055 = vmatprep.mubr.msk.bf16.mxu0 %vm4657_vm0, %v4656_v35 }
  0x35   :  { %495 = vmatmul.mubr.bf16.vlgmr.msra.gmra.mrb[0].mxu1 %v92_v41  ;;  %4041 = vmatprep.subr.bf16.mxu0 %v4656_v35 }
  0x36   :  { %4075 = vmatprep.mubr.msk.bf16.mxu1 %vm4657_vm0, %v4656_v35  ;;  %4060 = vmatpush3.bf16.msra.mxu1 %v4280_v51 }
  0x37   :  { %4061 = vmatprep.subr.bf16.mxu1 %v4656_v35 }
  0x38   :  { %4042 = vmatpush3.bf16.msra.mxu0 %v4273_v42 }
  0x39   :  { %4043 = vmatprep.subr.bf16.mxu0 %v4656_v35 }
  0x3a   :  { %4062 = vmatpush3.bf16.msra.mxu1 %v4281_v52 }
  0x3b   :  { %4063 = vmatprep.subr.bf16.mxu1 %v4656_v35 }
  0x3c   :  { %4044 = vmatpush3.bf16.msra.mxu0 %v4274_v43 }
  0x3d   :  { %4045 = vmatprep.subr.bf16.mxu0 %v4656_v35 }
  0x3e   :  { %4064 = vmatpush3.bf16.msra.mxu1 %v4282_v53 }
  0x3f   :  { %4065 = vmatprep.subr.bf16.mxu1 %v4656_v35 }
  0x40   :  { %4046 = vmatpush3.bf16.msra.mxu0 %v4275_v44 }
  0x41   :  { %4047 = vmatprep.subr.bf16.mxu0 %v4656_v35 }
  0x42   :  { %4066 = vmatpush3.bf16.msra.mxu1 %v4283_v54 }
  0x43   :  { %4067 = vmatprep.subr.bf16.mxu1 %v4656_v35 }
  0x44   :  { %4048 = vmatpush3.bf16.msra.mxu0 %v4276_v45 }
  0x45   :  { %4049 = vmatprep.subr.bf16.mxu0 %v4656_v35 }
  0x46   :  { %4068 = vmatpush3.bf16.msra.mxu1 %v4284_v55 }
  0x47   :  { %4069 = vmatprep.subr.bf16.mxu1 %v4656_v35 }
  0x48   :  { %4050 = vmatpush3.bf16.msra.mxu0 %v4277_v46 }
  0x49   :  { %4051 = vmatprep.subr.bf16.mxu0 %v4656_v35 }
  0x4a   :  { %4070 = vmatpush3.bf16.msra.mxu1 %v4285_v56 }
  0x4b   :  { %4071 = vmatprep.subr.bf16.mxu1 %v4656_v35 }
  0x4c   :  { %4052 = vmatpush3.bf16.msra.mxu0 %v4278_v47 }
  0x4d   :  { %4053 = vmatprep.subr.bf16.mxu0 %v4656_v35 }
  0x4e   :  { %4072 = vmatpush3.bf16.msra.mxu1 %v4286_v57 }
  0x4f   :  { %4073 = vmatprep.subr.bf16.mxu1 %v4656_v35 }
  0x50   :  { %4054 = vmatpush3.bf16.msra.mxu0 %v4279_v48 }
  0x51   :  { %834 = vmatprep.subr.bf16.mxu0 %v4290_v60 }
  0x52   :  { %4074 = vmatpush3.bf16.msra.mxu1 %v4287_v58 }
  0x53   :  { %4056 = vmatmul.mubr.bf16.vlgmr.msra.gmra.mrb[4].mxu0 %v94_v50  ;;  %4079 = vmatprep.subr.bf16.mxu1 %v4656_v35 }
  0x54   :  { %835 = vmatpush1.bf16.msra.mxu0 %v4288_v59 }
  0x55   :  { %836 = vmatprep.subr.bf16.mxu0 %v4294_v61 }
  0x58   :  { %837 = vmatpush1.bf16.msra.mxu0 %v4292_v62 }
  0x59   :  { %838 = vmatprep.subr.bf16.mxu0 %v4298_v63 }
  0x5c   :  { %839 = vmatpush1.bf16.msra.mxu0 %v4296_v0 }
  0x5d   :  { %840 = vmatprep.subr.bf16.mxu0 %v4302_v1 }
  0x60   :  { %841 = vmatpush1.bf16.msra.mxu0 %v4300_v2 }
  0x61   :  { %842 = vmatprep.subr.bf16.mxu0 %v4306_v3 }
  0x64   :  { %843 = vmatpush1.bf16.msra.mxu0 %v4304_v4 }
  0x65   :  { %844 = vmatprep.subr.bf16.mxu0 %v4310_v5 }
  0x66   :  { %33 = vsyncpa [#allocation5], 0  ;;  %v4312_v8 = vld [vmem:[%s5959_s7 + $0x90] ss:$12 sps:$4 sm:$0xff]   ;;  %v3510_v10 = vld [vmem:[%s5920_s13] ss:$0 sm:$0xff] }
  0x67   :  { %v4291_v28 = vld [vmem:[%s5959_s7 + $0x8] ss:$12 sps:$4 sm:$0xff]   ;;  %v4295_v30 = vld [vmem:[%s5959_s7 + $0x20] ss:$12 sps:$4 sm:$0xff]   ;;  %v4299_v31 = vld [vmem:[%s5959_s7 + $0x38] ss:$12 sps:$4 sm:$0xff]  }
  0x68   :  { %845 = vmatpush1.bf16.msra.mxu0 %v4308_v6  ;;  %v4303_v32 = vld [vmem:[%s5959_s7 + $0x50] ss:$12 sps:$4 sm:$0xff]   ;;  %v4307_v33 = vld [vmem:[%s5959_s7 + $0x68] ss:$12 sps:$4 sm:$0xff]   ;;  %v4311_v34 = vld [vmem:[%s5959_s7 + $0x80] ss:$12 sps:$4 sm:$0xff]  }
  0x69   :  { %846 = vmatprep.subr.bf16.mxu0 %v4314_v7  ;;  %v4315_v36 = vld [vmem:[%s5959_s7 + $0x98] ss:$12 sps:$4 sm:$0xff]   ;;  %v4316_v38 = vld [vmem:[%s5959_s7 + $0xa8] ss:$12 sps:$4 sm:$0xff]   ;;  %v4319_v39 = vld [vmem:[%s5959_s7 + $0xb0] ss:$12 sps:$4 sm:$0xff]  }
  0x6a   :  { %v4318_v37 = vld [vmem:[%s5959_s7 + $0xac] ss:$12 sps:$4 sm:$0xff]   ;;  %v4658_v40 = vmov 0   ;;  %s5960_s10 = sld [smem:[#allocation12_spill]]  ;;  %v3551_v43 = vld [vmem:[%s5921_s14] ss:$0 sm:$0xff] }
  0x6b   :  { %866 = vmatprep.mubr.bf16.mxu0 %v4658_v40  ;;  %s5961_s14 = sld [smem:[#allocation13_spill]]  ;;  %vm1338_vm1 = vcmask 523264   ;;  %s5962_s29 = sld [smem:[#allocation15_spill]]  ;;  %vm1844_vm2 = vcmask 261120  }
  0x6c   :  { %847 = vmatpush1.bf16.msra.mxu0 %v4312_v8  ;;  %s5963_s2 = sld [smem:[#allocation14_spill]]  ;;  %s5965_s6 = sld [smem:[#allocation17_spill]] }
  0x6d   :  { %848 = vmatprep.subr.bf16.mxu0 %v4318_v37  ;;  %s4659_s0 = smov [#allocation4]  }
  0x6e   :  { %s3498_s9 = sshll.u32 %s4659_s0, 4  ;;  %s3499_s9 = int_to_ptr.vmem [resolvable:$true] %s3498_s9 }
  0x6f   :  { %p4613_p1 = scmp.lt.s32.totalorder %s3499_s9, %s3499_s9 }
  0x70   :  { %849 = vmatpush1.bf16.msra.mxu0 %v4316_v38  ;;  %v4322_v41 = vld [vmem:[%s5960_s10 + $0x4] ss:$12 sps:$4 sm:$0xff]   ;;  %v4347_v42 = vld [vmem:[%s5960_s10 + $0xc8] ss:$12 sps:$4 sm:$0xff]   ;;  %v4320_v50 = vld [vmem:[%s5960_s10] ss:$12 sps:$4 sm:$0xff]  }
  0x71   :  { %1342 = vmatprep.subr.bf16.mxu0 %v4322_v41  ;;  %v4348_v51 = vld [vmem:[%s5960_s10 + $0x8] ss:$12 sps:$4 sm:$0xff]   ;;  %v4352_v54 = vld [vmem:[%s5960_s10 + $0xe0] ss:$12 sps:$4 sm:$0xff]   ;;  %v4323_v55 = vld [vmem:[%s5960_s10 + $0x18] ss:$12 sps:$4 sm:$0xff]  }
  0x72   :  { %v4325_v53 = vld [vmem:[%s5960_s10 + $0x1c] ss:$12 sps:$4 sm:$0xff]   ;;  %v4353_v56 = vld [vmem:[%s5960_s10 + $0x20] ss:$12 sps:$4 sm:$0xff]   ;;  %v4357_v58 = vld [vmem:[%s5960_s10 + $0xf8] ss:$12 sps:$4 sm:$0xff]  }
  0x73   :  { %v4328_v57 = vld [vmem:[%s5960_s10 + $0x34] ss:$12 sps:$4 sm:$0xff]   ;;  %v4326_v59 = vld [vmem:[%s5960_s10 + $0x30] ss:$12 sps:$4 sm:$0xff]   ;;  %v4358_v60 = vld [vmem:[%s5960_s10 + $0x38] ss:$12 sps:$4 sm:$0xff]  }
  0x74   :  { %v4331_v61 = vld [vmem:[%s5960_s10 + $0x4c] ss:$12 sps:$4 sm:$0xff]   ;;  %v4362_v62 = vld [vmem:[%s5960_s10 + $0x110] ss:$12 sps:$4 sm:$0xff]   ;;  %v4329_v63 = vld [vmem:[%s5960_s10 + $0x48] ss:$12 sps:$4 sm:$0xff]  }
  0x75   :  { %v4363_v0 = vld [vmem:[%s5960_s10 + $0x50] ss:$12 sps:$4 sm:$0xff]   ;;  %v4367_v2 = vld [vmem:[%s5960_s10 + $0x128] ss:$12 sps:$4 sm:$0xff]   ;;  %v4332_v3 = vld [vmem:[%s5960_s10 + $0x60] ss:$12 sps:$4 sm:$0xff]  }
  0x76   :  { %v4334_v1 = vld [vmem:[%s5960_s10 + $0x64] ss:$12 sps:$4 sm:$0xff]   ;;  %v4368_v4 = vld [vmem:[%s5960_s10 + $0x68] ss:$12 sps:$4 sm:$0xff]   ;;  %v4372_v6 = vld [vmem:[%s5960_s10 + $0x140] ss:$12 sps:$4 sm:$0xff]  }
  0x77   :  { %v4337_v5 = vld [vmem:[%s5960_s10 + $0x7c] ss:$12 sps:$4 sm:$0xff]   ;;  %v4335_v7 = vld [vmem:[%s5960_s10 + $0x78] ss:$12 sps:$4 sm:$0xff]   ;;  %v4373_v8 = vld [vmem:[%s5960_s10 + $0x80] ss:$12 sps:$4 sm:$0xff]  }
  0x78   :  { %v689_v38 = vld [vmem:[%s5922_s15] sm:$0x7] }
 0x106   :  { %v3843_v9 = vpop.f32.mrb[0].mxu0 }
 0x107   :  { %v3844_v11 = vpop.f32.mrb[1].mxu0 }
 0x108   :  { %v3845_v12 = vadd.f32 %v3844_v11, %v3843_v9  ;;  %v3846_v13 = vpop.f32.mrb[2].mxu0  ;;  %v3865_v14 = vpop.f32.mrb[0].mxu1  ;;  %v4340_v9 = vld [vmem:[%s5960_s10 + $0x94] ss:$12 sps:$4 sm:$0xff]   ;;  %v4343_v11 = vld [vmem:[%s5960_s10 + $0xac] ss:$12 sps:$4 sm:$0xff]  }
 0x109   :  { %v3847_v15 = vpop.f32.mrb[3].mxu0  ;;  %v3866_v16 = vpop.f32.mrb[1].mxu1  ;;  %v4346_v13 = vld [vmem:[%s5960_s10 + $0xc4] ss:$12 sps:$4 sm:$0xff]  }
 0x10a   :  { %v457_v17 = vadd.f32 %v3845_v12, %v3510_v10  ;;  %v3867_v18 = vadd.f32 %v3866_v16, %v3865_v14  ;;  %v3868_v19 = vpop.f32.mrb[2].mxu1  ;;  %v4338_v10 = vld [vmem:[%s5960_s10 + $0x90] ss:$12 sps:$4 sm:$0xff]   ;;  %v4341_v12 = vld [vmem:[%s5960_s10 + $0xa8] ss:$12 sps:$4 sm:$0xff]  }
 0x10b   :  { %v3869_v20 = vpop.f32.mrb[3].mxu1  ;;  %v4344_v14 = vld [vmem:[%s5960_s10 + $0xc0] ss:$12 sps:$4 sm:$0xff]   ;;  %v4351_v15 = vld [vmem:[%s5960_s10 + $0xdc] ss:$12 sps:$4 sm:$0xff]  }
 0x10c   :  { %v497_v21 = vadd.f32 %v3867_v18, %v457_v17  ;;  %v4349_v16 = vld [vmem:[%s5960_s10 + $0xd8] ss:$12 sps:$4 sm:$0xff]   ;;  %v4356_v17 = vld [vmem:[%s5960_s10 + $0xf4] ss:$12 sps:$4 sm:$0xff]   ;;  %v4354_v18 = vld [vmem:[%s5960_s10 + $0xf0] ss:$12 sps:$4 sm:$0xff]  }
 0x10d   :  { %v4361_v19 = vld [vmem:[%s5960_s10 + $0x10c] ss:$12 sps:$4 sm:$0xff]   ;;  %v4359_v20 = vld [vmem:[%s5960_s10 + $0x108] ss:$12 sps:$4 sm:$0xff]  }
 0x126   :  { %v536_v22 = vpop.f32.mrb[4].mxu0 }
 0x127   :  { %v537_v23 = vadd.f32 %v536_v22, %v497_v21  ;;  %v4057_v24 = vpop.f32.mrb[5].mxu0  ;;  %v4366_v21 = vld [vmem:[%s5960_s10 + $0x124] ss:$12 sps:$4 sm:$0xff]   ;;  %v4364_v22 = vld [vmem:[%s5960_s10 + $0x120] ss:$12 sps:$4 sm:$0xff]  }
 0x128   :  { %v539_v25 = vpop.f32.mrb[6].mxu0  ;;  %v4369_v24 = vld [vmem:[%s5960_s10 + $0x138] ss:$12 sps:$4 sm:$0xff]  }
 0x129   :  { %v542_v26 = vmax.f32 %v537_v23, 0.0  ;;  %v4058_v27 = vpop.f32.mrb[7].mxu0  ;;  %v4371_v23 = vld [vmem:[%s5960_s10 + $0x13c] ss:$12 sps:$4 sm:$0xff]   ;;  %v4376_v25 = vld [vmem:[%s5960_s10 + $0x154] ss:$12 sps:$4 sm:$0xff]  }
 0x12a   :  { %v4374_v27 = vld [vmem:[%s5960_s10 + $0x150] ss:$12 sps:$4 sm:$0xff]  }
 0x12b   :  { %v543_v29 = vpack.c.bf16 %v542_v26, %v542_v26  ;;  %v4377_v26 = vld [vmem:[%s5960_s10 + $0x158] ss:$12 sps:$4 sm:$0xff]  }
 0x12d   :  { %4076 = vmatmul.mubr.bf16.vlgmr.msra.gmra.mrb[4].mxu1 %v543_v29  ;;  %v4381_v29 = vld [vmem:[%s5960_s10 + $0x16c] ss:$12 sps:$4 sm:$0xff]  }
 0x12e   :  { %4080 = vmatpush3.bf16.msra.mxu1 %v4291_v28  ;;  %4095 = vmatprep.mubr.msk.bf16.mxu1 %vm4657_vm0, %v4656_v35  ;;  %v4378_v28 = vld [vmem:[%s5960_s10 + $0x98] ss:$12 sps:$4 sm:$0xff]  }
 0x12f   :  { %4081 = vmatprep.subr.bf16.mxu1 %v4656_v35 }
 0x132   :  { %4082 = vmatpush3.bf16.msra.mxu1 %v4295_v30  ;;  %v4382_v30 = vld [vmem:[%s5960_s10 + $0x170] ss:$12 sps:$4 sm:$0xff]  }
 0x133   :  { %4083 = vmatprep.subr.bf16.mxu1 %v4656_v35 }
 0x136   :  { %4084 = vmatpush3.bf16.msra.mxu1 %v4299_v31  ;;  %v4379_v31 = vld [vmem:[%s5960_s10 + $0x168] ss:$12 sps:$4 sm:$0xff]  }
 0x137   :  { %4085 = vmatprep.subr.bf16.mxu1 %v4656_v35 }
 0x13a   :  { %4086 = vmatpush3.bf16.msra.mxu1 %v4303_v32  ;;  %v4383_v32 = vld [vmem:[%s5960_s10 + $0xb0] ss:$12 sps:$4 sm:$0xff]  }
 0x13b   :  { %4087 = vmatprep.subr.bf16.mxu1 %v4656_v35 }
 0x13e   :  { %4088 = vmatpush3.bf16.msra.mxu1 %v4307_v33  ;;  %v4386_v33 = vld [vmem:[%s5960_s10 + $0x184] ss:$12 sps:$4 sm:$0xff]  }
 0x13f   :  { %4089 = vmatprep.subr.bf16.mxu1 %v4656_v35 }
 0x142   :  { %4090 = vmatpush3.bf16.msra.mxu1 %v4311_v34  ;;  %v691_v34 = vlaneseq }
 0x143   :  { %4091 = vmatprep.subr.bf16.mxu1 %v4656_v35 }
 0x146   :  { %4092 = vmatpush3.bf16.msra.mxu1 %v4315_v36  ;;  %v5212_v36 = vshrl.u32 %v691_v34, 7  ;;  %v1001_v34 = vld [vmem:[%s5923_s16] sm:$0x7] }
 0x147   :  { %4093 = vmatprep.subr.bf16.mxu1 %v4656_v35 }
 0x148   :  { %v5215_v37 = vsub.s32 0, %v5212_v36 }
 0x14a   :  { %4094 = vmatpush3.bf16.msra.mxu1 %v4319_v39  ;;  %v5221_v39 = vsub.s32 1, %v5212_v36  ;;  %v694_v41 = vrot.slane %v689_v38, %v5215_v37 }
 0x14b   :  { %3898 = vmatprep.subr.bf16.mxu1 %v4347_v42 }
 0x14c   :  { %v698_v42 = vrot.slane %v689_v38, %v5221_v39 }
 0x200   :  { %v649_v44 = vpop.f32.mrb[4].mxu1 }
 0x201   :  { %v650_v45 = vadd.f32 %v3551_v43, %v649_v44  ;;  %v4077_v46 = vpop.f32.mrb[5].mxu1 }
 0x202   :  { %v652_v47 = vpop.f32.mrb[6].mxu1 }
 0x203   :  { %v655_v48 = vmax.f32 %v650_v45, 0.0  ;;  %v4078_v49 = vpop.f32.mrb[7].mxu1 }
 0x205   :  { %v656_v52 = vpack.c.bf16 %v655_v48, %v655_v48 }
 0x207   :  { %867 = vmatmul.mubr.bf16.vlgmr.msra.gmra.mrb[8].mxu0 %v656_v52  ;;  %4096 = vmatmul.mubr.bf16.vlgmr.msra.gmra.mrb[8].mxu1 %v656_v52 }
 0x208   :  { %1343 = vmatpush1.bf16.msra.mxu0 %v4320_v50  ;;  %3899 = vmatpush3.bf16.msra.mxu1 %v4348_v51 }
 0x209   :  { %1344 = vmatprep.subr.bf16.mxu0 %v4325_v53  ;;  %3900 = vmatprep.subr.bf16.mxu1 %v4352_v54 }
 0x20c   :  { %1345 = vmatpush1.bf16.msra.mxu0 %v4323_v55  ;;  %3901 = vmatpush3.bf16.msra.mxu1 %v4353_v56  ;;  %v4384_v56 = vld [vmem:[%s5960_s10 + $0x180] ss:$12 sps:$4 sm:$0xff]  }
 0x20d   :  { %1346 = vmatprep.subr.bf16.mxu0 %v4328_v57  ;;  %3902 = vmatprep.subr.bf16.mxu1 %v4357_v58  ;;  %v4387_v57 = vld [vmem:[%s5960_s10 + $0x188] ss:$12 sps:$4 sm:$0xff]  }
 0x210   :  { %1347 = vmatpush1.bf16.msra.mxu0 %v4326_v59  ;;  %3903 = vmatpush3.bf16.msra.mxu1 %v4358_v60  ;;  %v5232_v59 = vsub.s32 2, %v5212_v36  ;;  %v4390_v60 = vld [vmem:[%s5960_s10 + $0x19c] ss:$12 sps:$4 sm:$0xff]  }
 0x211   :  { %1348 = vmatprep.subr.bf16.mxu0 %v4331_v61  ;;  %3904 = vmatprep.subr.bf16.mxu1 %v4362_v62  ;;  %v4388_v61 = vld [vmem:[%s5960_s10 + $0x198] ss:$12 sps:$4 sm:$0xff]   ;;  %v4391_v62 = vld [vmem:[%s5960_s10 + $0x1a0] ss:$12 sps:$4 sm:$0xff]  }
 0x214   :  { %1349 = vmatpush1.bf16.msra.mxu0 %v4329_v63  ;;  %3905 = vmatpush3.bf16.msra.mxu1 %v4363_v0  ;;  %v702_v63 = vrot.slane %v689_v38, %v5232_v59  ;;  %v4394_v0 = vld [vmem:[%s5960_s10 + $0x1b4] ss:$12 sps:$4 sm:$0xff]   ;;  %v1014_v38 = vrot.slane %v1001_v34, %v5232_v59 }
 0x215   :  { %1350 = vmatprep.subr.bf16.mxu0 %v4334_v1  ;;  %3906 = vmatprep.subr.bf16.mxu1 %v4367_v2  ;;  %v4392_v1 = vld [vmem:[%s5960_s10 + $0x1b0] ss:$12 sps:$4 sm:$0xff]   ;;  %v4395_v2 = vld [vmem:[%s5960_s10 + $0x1b8] ss:$12 sps:$4 sm:$0xff]  }
 0x218   :  { %1351 = vmatpush1.bf16.msra.mxu0 %v4332_v3  ;;  %3907 = vmatpush3.bf16.msra.mxu1 %v4368_v4  ;;  %v4398_v4 = vld [vmem:[%s5960_s10 + $0x1cc] ss:$12 sps:$4 sm:$0xff]  }
 0x219   :  { %1352 = vmatprep.subr.bf16.mxu0 %v4337_v5  ;;  %3908 = vmatprep.subr.bf16.mxu1 %v4372_v6  ;;  %v4396_v5 = vld [vmem:[%s5960_s10 + $0x1c8] ss:$12 sps:$4 sm:$0xff]   ;;  %v4399_v6 = vld [vmem:[%s5960_s10 + $0x1d0] ss:$12 sps:$4 sm:$0xff]  }
 0x21c   :  { %1353 = vmatpush1.bf16.msra.mxu0 %v4335_v7  ;;  %3909 = vmatpush3.bf16.msra.mxu1 %v4373_v8  ;;  %v4400_v8 = vld [vmem:[%s5961_s14 + $0x40] sm:$0xff]  }
 0x21d   :  { %1354 = vmatprep.subr.bf16.mxu0 %v4340_v9  ;;  %3910 = vmatprep.subr.bf16.mxu1 %v4377_v26  ;;  %v4401_v9 = vld [vmem:[%s5961_s14] sm:$0xff]   ;;  %v4417_v26 = vld [vmem:[%s5961_s14 + $0x98] sm:$0xff]  }
 0x220   :  { %1355 = vmatpush1.bf16.msra.mxu0 %v4338_v10  ;;  %3911 = vmatpush3.bf16.msra.mxu1 %v4378_v28  ;;  %v4419_v28 = vld [vmem:[%s5961_s14 + $0x38] sm:$0xff]  }
 0x221   :  { %1356 = vmatprep.subr.bf16.mxu0 %v4343_v11  ;;  %3912 = vmatprep.subr.bf16.mxu1 %v4382_v30  ;;  %v4402_v11 = vld [vmem:[%s5961_s14 + $0x48] sm:$0xff]  }
 0x224   :  { %1357 = vmatpush1.bf16.msra.mxu0 %v4341_v12  ;;  %3913 = vmatpush3.bf16.msra.mxu1 %v4383_v32  ;;  %v4403_v12 = vld [vmem:[%s5961_s14 + $0x8] sm:$0xff]  }
 0x225   :  { %1358 = vmatprep.subr.bf16.mxu0 %v4346_v13  ;;  %4099 = vmatprep.subr.bf16.mxu1 %v4656_v35  ;;  %v4404_v13 = vld [vmem:[%s5961_s14 + $0x50] sm:$0xff]  }
 0x228   :  { %1359 = vmatpush1.bf16.msra.mxu0 %v4344_v14  ;;  %v4405_v14 = vld [vmem:[%s5961_s14 + $0x10] sm:$0xff]  }
 0x229   :  { %1360 = vmatprep.subr.bf16.mxu0 %v4351_v15  ;;  %v4406_v15 = vld [vmem:[%s5961_s14 + $0x58] sm:$0xff]  }
 0x22c   :  { %1361 = vmatpush1.bf16.msra.mxu0 %v4349_v16  ;;  %v4407_v16 = vld [vmem:[%s5961_s14 + $0x18] sm:$0xff]  }
 0x22d   :  { %1362 = vmatprep.subr.bf16.mxu0 %v4356_v17  ;;  %v4408_v17 = vld [vmem:[%s5961_s14 + $0x80] sm:$0xff]  }
 0x230   :  { %1363 = vmatpush1.bf16.msra.mxu0 %v4354_v18  ;;  %v4409_v18 = vld [vmem:[%s5961_s14 + $0x60] sm:$0xff]  }
 0x231   :  { %1364 = vmatprep.subr.bf16.mxu0 %v4361_v19  ;;  %v4411_v19 = vld [vmem:[%s5961_s14 + $0x88] sm:$0xff]  }
 0x234   :  { %1365 = vmatpush1.bf16.msra.mxu0 %v4359_v20  ;;  %v4410_v20 = vld [vmem:[%s5961_s14 + $0x20] sm:$0xff]  }
 0x235   :  { %1366 = vmatprep.subr.bf16.mxu0 %v4366_v21  ;;  %v4412_v21 = vld [vmem:[%s5961_s14 + $0x68] sm:$0xff]  }
 0x238   :  { %1367 = vmatpush1.bf16.msra.mxu0 %v4364_v22  ;;  %v4413_v22 = vld [vmem:[%s5961_s14 + $0x28] sm:$0xff]  }
 0x239   :  { %1368 = vmatprep.subr.bf16.mxu0 %v4371_v23  ;;  %v4414_v23 = vld [vmem:[%s5961_s14 + $0x90] sm:$0xff]  }
 0x23c   :  { %1369 = vmatpush1.bf16.msra.mxu0 %v4369_v24  ;;  %v4415_v24 = vld [vmem:[%s5961_s14 + $0x70] sm:$0xff]  }
 0x23d   :  { %1370 = vmatprep.subr.bf16.mxu0 %v4376_v25  ;;  %v4416_v25 = vld [vmem:[%s5961_s14 + $0x30] sm:$0xff]  }
 0x240   :  { %1371 = vmatpush1.bf16.msra.mxu0 %v4374_v27  ;;  %v4418_v27 = vld [vmem:[%s5961_s14 + $0x78] sm:$0xff]   ;;  %s5964_s14 = sld [smem:[#allocation16_spill]] }
 0x241   :  { %1372 = vmatprep.subr.bf16.mxu0 %v4381_v29 }
 0x244   :  { %1373 = vmatpush1.bf16.msra.mxu0 %v4379_v31 }
 0x245   :  { %1383 = vmatprep.subr.bf16.mxu0 %v4386_v33 }
 0x2da   :  { %v868_v43 = vpop.f32.mrb[8].mxu0  ;;  %v909_v44 = vpop.f32.mrb[8].mxu1 }
 0x2db   :  { %v869_v45 = vadd.f32 %v868_v43, %v694_v41  ;;  %v870_v46 = vpop.f32.mrb[9].mxu0  ;;  %v4097_v47 = vpop.f32.mrb[9].mxu1  ;;  %v910_v3 = vadd.f32 %v909_v44, %v702_v63  ;;  %v1006_v41 = vrot.slane %v1001_v34, %v5215_v37 }
 0x2dc   :  { %v871_v48 = vadd.f32 %v870_v46, %v698_v42  ;;  %v872_v49 = vpop.f32.mrb[10].mxu0  ;;  %v912_v50 = vpop.f32.mrb[10].mxu1  ;;  %v1010_v42 = vrot.slane %v1001_v34, %v5221_v39  ;;  %v3668_v34 = vld [vmem:[%s5925_s18] ss:$0 sm:$0xff] }
 0x2dd   :  { %v915_v51 = vmax.f32 %v869_v45, 0.0  ;;  %v873_v52 = vpop.f32.mrb[11].mxu0  ;;  %v4098_v53 = vpop.f32.mrb[11].mxu1  ;;  %v917_v7 = vmax.f32 %v910_v3, 0.0  ;;  %v4425_v3 = vld [vmem:[%s5962_s29 + $0x10] sm:$0xff]  }
 0x2de   :  { %v916_v54 = vmax.f32 %v871_v48, 0.0 }
 0x2df   :  { %v918_v58 = vpack.c.bf16 %v915_v51, %v915_v51  ;;  %v920_v10 = vpack.c.bf16 %v917_v7, %v917_v7 }
 0x2e0   :  { %v919_v55 = vpack.c.bf16 %v916_v54, %v916_v54 }
 0x2e2   :  { %1374 = vmatprep.mubr.bf16.mxu0 %v919_v55  ;;  %1456 = vmatprep.mubr.bf16.mxu1 %v919_v55 }
 0x2e3   :  { %1375 = vmatmul.mubr.bf16.vlgmr.msra.gmra.mrb[12].mxu0 %v918_v58  ;;  %1457 = vmatmul.mubr.bf16.vlgmr.msra.gmra.mrb[12].mxu1 %v918_v58  ;;  %v4421_v58 = vld [vmem:[%s5962_s29] sm:$0xff]  }
 0x2e4   :  { %1384 = vmatpush1.bf16.msra.mxu0 %v4384_v56  ;;  %4100 = vmatpush3.bf16.msra.mxu1 %v4387_v57 }
 0x2e5   :  { %1385 = vmatprep.subr.bf16.mxu0 %v4390_v60  ;;  %4101 = vmatprep.subr.bf16.mxu1 %v4656_v35 }
 0x2e6   :  { %1415 = vmatprep.mubr.bf16.mxu0 %v4658_v40  ;;  %4107 = vmatprep.mubr.msk.bf16.mxu1 %vm4657_vm0, %v4656_v35 }
 0x2e8   :  { %1386 = vmatpush1.bf16.msra.mxu0 %v4388_v61  ;;  %4102 = vmatpush3.bf16.msra.mxu1 %v4391_v62  ;;  %v4420_v62 = vld [vmem:[%s5963_s2] sm:$0xff]  }
 0x2e9   :  { %1387 = vmatprep.subr.bf16.mxu0 %v4394_v0  ;;  %4103 = vmatprep.subr.bf16.mxu1 %v4656_v35  ;;  %v4422_v0 = vld [vmem:[%s5963_s2 + $0x8] sm:$0xff]  }
 0x2ec   :  { %1388 = vmatpush1.bf16.msra.mxu0 %v4392_v1  ;;  %4104 = vmatpush3.bf16.msra.mxu1 %v4395_v2  ;;  %v4423_v1 = vld [vmem:[%s5962_s29 + $0x8] sm:$0xff]   ;;  %v4424_v2 = vld [vmem:[%s5963_s2 + $0x10] sm:$0xff]  }
 0x2ed   :  { %1389 = vmatprep.subr.bf16.mxu0 %v4398_v4  ;;  %4105 = vmatprep.subr.bf16.mxu1 %v4656_v35  ;;  %v4426_v4 = vld [vmem:[%s5963_s2 + $0x18] sm:$0xff]  }
 0x2f0   :  { %1390 = vmatpush1.bf16.msra.mxu0 %v4396_v5  ;;  %4106 = vmatpush3.bf16.msra.mxu1 %v4399_v6  ;;  %v4427_v5 = vld [vmem:[%s5962_s29 + $0x18] sm:$0xff]   ;;  %v4430_v6 = vld [vmem:[%s5964_s14 + $0x4] ss:$12 sps:$4 sm:$0xff]  }
 0x2f1   :  { %3925 = vmatprep.subr.bf16.mxu1 %v4400_v8  ;;  %4111 = vmatprep.subr.bf16.mxu0 %v4656_v35 }
 0x2f3   :  { %3644 = vmatmul.mubr.msk.bf16.vlgmr.msra.gmra.mrb[12].mxu0 %vm1338_vm1, %v920_v10  ;;  %4108 = vmatmul.mubr.msk.bf16.vlgmr.msra.gmra.mrb[16].mxu1 %vm1338_vm1, %v920_v10 }
 0x2f4   :  { %3926 = vmatpush3.bf16.msra.mxu1 %v4401_v9  ;;  %4119 = vmatprep.mubr.msk.bf16.mxu0 %vm4657_vm0, %v4656_v35 }
 0x2f5   :  { %3927 = vmatprep.subr.bf16.mxu1 %v4402_v11  ;;  %4112 = vmatpush3.bf16.msra.mxu0 %v4408_v17  ;;  %v3646_v11 = vld [vmem:[%s5924_s17] ss:$0 sm:$0xff] }
 0x2f6   :  { %4113 = vmatprep.subr.bf16.mxu0 %v4656_v35 }
 0x2f8   :  { %3928 = vmatpush3.bf16.msra.mxu1 %v4403_v12 }
 0x2f9   :  { %3929 = vmatprep.subr.bf16.mxu1 %v4404_v13  ;;  %4114 = vmatpush3.bf16.msra.mxu0 %v4411_v19 }
 0x2fa   :  { %4115 = vmatprep.subr.bf16.mxu0 %v4656_v35 }
 0x2fc   :  { %3930 = vmatpush3.bf16.msra.mxu1 %v4405_v14 }
 0x2fd   :  { %3931 = vmatprep.subr.bf16.mxu1 %v4406_v15  ;;  %4116 = vmatpush3.bf16.msra.mxu0 %v4414_v23  ;;  %v4434_v23 = vld [vmem:[%s5964_s14 + $0x1c] ss:$12 sps:$4 sm:$0xff]  }
 0x2fe   :  { %4117 = vmatprep.subr.bf16.mxu0 %v4656_v35 }
 0x300   :  { %3932 = vmatpush3.bf16.msra.mxu1 %v4407_v16 }
 0x301   :  { %3933 = vmatprep.subr.bf16.mxu1 %v4409_v18  ;;  %4118 = vmatpush3.bf16.msra.mxu0 %v4417_v26  ;;  %v4438_v26 = vld [vmem:[%s5964_s14 + $0x34] ss:$12 sps:$4 sm:$0xff]  }
 0x302   :  { %4135 = vmatprep.subr.bf16.mxu0 %v4656_v35 }
 0x304   :  { %3934 = vmatpush3.bf16.msra.mxu1 %v4410_v20  ;;  %v4428_v20 = vld [vmem:[%s5964_s14] ss:$12 sps:$4 sm:$0xff]  }
 0x305   :  { %3935 = vmatprep.subr.bf16.mxu1 %v4412_v21  ;;  %v4431_v21 = vld [vmem:[%s5964_s14 + $0x8] ss:$12 sps:$4 sm:$0xff]  }
 0x308   :  { %3936 = vmatpush3.bf16.msra.mxu1 %v4413_v22 }
 0x309   :  { %3937 = vmatprep.subr.bf16.mxu1 %v4415_v24  ;;  %v4432_v24 = vld [vmem:[%s5964_s14 + $0x18] ss:$12 sps:$4 sm:$0xff]  }
 0x30c   :  { %3938 = vmatpush3.bf16.msra.mxu1 %v4416_v25  ;;  %v4435_v25 = vld [vmem:[%s5964_s14 + $0x20] ss:$12 sps:$4 sm:$0xff]  }
 0x30d   :  { %3939 = vmatprep.subr.bf16.mxu1 %v4418_v27  ;;  %v4436_v27 = vld [vmem:[%s5964_s14 + $0x30] ss:$12 sps:$4 sm:$0xff]  }
 0x310   :  { %3940 = vmatpush3.bf16.msra.mxu1 %v4419_v28  ;;  %v4439_v28 = vld [vmem:[%s5964_s14 + $0x38] ss:$12 sps:$4 sm:$0xff]  }
 0x311   :  { %4123 = vmatprep.subr.bf16.mxu1 %v4656_v35 }
 0x3b6   :  { %v3914_v29 = vpop.f32.mrb[12].mxu1 }
 0x3b7   :  { %v3915_v30 = vpop.f32.mrb[13].mxu1 }
 0x3b8   :  { %v3916_v31 = vadd.f32 %v3915_v30, %v3914_v29  ;;  %v3917_v32 = vpop.f32.mrb[14].mxu1  ;;  %v4442_v29 = vld [vmem:[%s5964_s14 + $0x4c] ss:$12 sps:$4 sm:$0xff]   ;;  %v4440_v30 = vld [vmem:[%s5964_s14 + $0x48] ss:$12 sps:$4 sm:$0xff]  }
 0x3b9   :  { %v3918_v33 = vpop.f32.mrb[15].mxu1  ;;  %v4446_v32 = vld [vmem:[%s5965_s6 + $0x4] ss:$12 sps:$4 sm:$0xff]  }
 0x3ba   :  { %v1459_v43 = vadd.f32 %v3916_v31, %v1014_v38  ;;  %v4443_v31 = vld [vmem:[%s5964_s14 + $0x50] ss:$12 sps:$4 sm:$0xff]   ;;  %v4471_v33 = vld [vmem:[%s5965_s6 + $0xc8] ss:$12 sps:$4 sm:$0xff]   ;;  %v3674_v38 = vld [vmem:[%s5926_s19] ss:$0 sm:$0xff] }
 0x3c6   :  { %v1417_v44 = vpop.f32.mrb[12].mxu0  ;;  %v1498_v45 = vpop.f32.mrb[16].mxu1 }
 0x3c7   :  { %v4223_v46 = vadd.f32 %v1417_v44, %v1006_v41  ;;  %v1499_v47 = vadd.f32 %v1498_v45, %v1459_v43  ;;  %v1419_v48 = vpop.f32.mrb[13].mxu0  ;;  %v4109_v49 = vpop.f32.mrb[17].mxu1 }
 0x3c8   :  { %v4224_v50 = vadd.f32 %v1419_v48, %v1010_v42  ;;  %v1421_v51 = vpop.f32.mrb[14].mxu0  ;;  %v1501_v52 = vpop.f32.mrb[18].mxu1 }
 0x3c9   :  { %v1504_v53 = vmax.f32 %v4223_v46, 0.0  ;;  %v1506_v54 = vmax.f32 %v1499_v47, 0.0  ;;  %v1422_v55 = vpop.f32.mrb[15].mxu0  ;;  %v4110_v56 = vpop.f32.mrb[19].mxu1  ;;  %v4444_v52 = vld [vmem:[%s5965_s6] ss:$12 sps:$4 sm:$0xff]  }
 0x3ca   :  { %v1505_v57 = vmax.f32 %v4224_v50, 0.0  ;;  %v4449_v55 = vld [vmem:[%s5965_s6 + $0x1c] ss:$12 sps:$4 sm:$0xff]   ;;  %v4476_v56 = vld [vmem:[%s5965_s6 + $0xe0] ss:$12 sps:$4 sm:$0xff]  }
 0x3cb   :  { %v1509_v60 = vpack.c.bf16 %v1506_v54, %v1506_v54  ;;  %v1507_v63 = vpack.c.bf16 %v1504_v53, %v1504_v53  ;;  %v4472_v53 = vld [vmem:[%s5965_s6 + $0x8] ss:$12 sps:$4 sm:$0xff]  }
 0x3cc   :  { %v1508_v61 = vpack.c.bf16 %v1505_v57, %v1505_v57  ;;  %v4447_v57 = vld [vmem:[%s5965_s6 + $0x18] ss:$12 sps:$4 sm:$0xff]  }
 0x3cd   :  { %4120 = vmatmul.mubr.msk.bf16.vlgmr.msra.gmra.mrb[16].mxu0 %vm1338_vm1, %v1509_v60  ;;  %v4452_v60 = vld [vmem:[%s5965_s6 + $0x34] ss:$12 sps:$4 sm:$0xff]  }
 0x3ce   :  { %1712 = vmatprep.mubr.bf16.mxu1 %v1508_v61  ;;  %4136 = vmatpush3.bf16.msra.mxu0 %v4421_v58  ;;  %v4477_v58 = vld [vmem:[%s5965_s6 + $0x20] ss:$12 sps:$4 sm:$0xff]   ;;  %v4481_v61 = vld [vmem:[%s5965_s6 + $0xf8] ss:$12 sps:$4 sm:$0xff]  }
 0x3cf   :  { %1713 = vmatmul.mubr.bf16.vlgmr.msra.gmra.mrb[20].mxu1 %v1507_v63  ;;  %4137 = vmatprep.subr.bf16.mxu0 %v4656_v35  ;;  %v4482_v63 = vld [vmem:[%s5965_s6 + $0x38] ss:$12 sps:$4 sm:$0xff]  }
 0x3d0   :  { %4124 = vmatpush3.bf16.msra.mxu1 %v4420_v62  ;;  %4131 = vmatprep.mubr.msk.bf16.mxu1 %vm4657_vm0, %v4656_v35  ;;  %v4450_v62 = vld [vmem:[%s5965_s6 + $0x30] ss:$12 sps:$4 sm:$0xff]  }
 0x3d1   :  { %4125 = vmatprep.subr.bf16.mxu1 %v4656_v35  ;;  %4143 = vmatprep.mubr.msk.bf16.mxu0 %vm4657_vm0, %v4656_v35 }
 0x3d2   :  { %4138 = vmatpush3.bf16.msra.mxu0 %v4423_v1  ;;  %v4486_v1 = vld [vmem:[%s5965_s6 + $0x110] ss:$12 sps:$4 sm:$0xff]  }
 0x3d3   :  { %4139 = vmatprep.subr.bf16.mxu0 %v4656_v35 }
 0x3d4   :  { %4126 = vmatpush3.bf16.msra.mxu1 %v4422_v0  ;;  %v4455_v0 = vld [vmem:[%s5965_s6 + $0x4c] ss:$12 sps:$4 sm:$0xff]  }
 0x3d5   :  { %4127 = vmatprep.subr.bf16.mxu1 %v4656_v35 }
 0x3d6   :  { %4140 = vmatpush3.bf16.msra.mxu0 %v4425_v3  ;;  %v4487_v3 = vld [vmem:[%s5965_s6 + $0x50] ss:$12 sps:$4 sm:$0xff]  }
 0x3d7   :  { %4141 = vmatprep.subr.bf16.mxu0 %v4656_v35 }
 0x3d8   :  { %4128 = vmatpush3.bf16.msra.mxu1 %v4424_v2  ;;  %v4453_v2 = vld [vmem:[%s5965_s6 + $0x48] ss:$12 sps:$4 sm:$0xff]  }
 0x3d9   :  { %4129 = vmatprep.subr.bf16.mxu1 %v4656_v35 }
 0x3da   :  { %4142 = vmatpush3.bf16.msra.mxu0 %v4427_v5  ;;  %v4491_v5 = vld [vmem:[%s5965_s6 + $0x128] ss:$12 sps:$4 sm:$0xff]  }
 0x3db   :  { %4147 = vmatprep.subr.bf16.mxu0 %v4656_v35 }
 0x3dc   :  { %4130 = vmatpush3.bf16.msra.mxu1 %v4426_v4  ;;  %v4458_v4 = vld [vmem:[%s5965_s6 + $0x64] ss:$12 sps:$4 sm:$0xff]  }
 0x3dd   :  { %2027 = vmatprep.subr.bf16.mxu1 %v4430_v6  ;;  %v4456_v6 = vld [vmem:[%s5965_s6 + $0x60] ss:$12 sps:$4 sm:$0xff]  }
 0x4a0   :  { %v1754_v7 = vpop.f32.mrb[16].mxu0 }
 0x4a1   :  { %v4121_v8 = vpop.f32.mrb[17].mxu0 }
 0x4a2   :  { %v3941_v9 = vpop.f32.mrb[20].mxu1  ;;  %v1757_v10 = vpop.f32.mrb[18].mxu0  ;;  %v4461_v8 = vld [vmem:[%s5965_s6 + $0x7c] ss:$12 sps:$4 sm:$0xff]  }
 0x4a3   :  { %v3942_v12 = vpop.f32.mrb[21].mxu1  ;;  %v4122_v13 = vpop.f32.mrb[19].mxu0  ;;  %v4459_v10 = vld [vmem:[%s5965_s6 + $0x78] ss:$12 sps:$4 sm:$0xff]  }
 0x4a4   :  { %v3943_v14 = vadd.f32 %v3942_v12, %v3941_v9  ;;  %v3944_v15 = vpop.f32.mrb[22].mxu1  ;;  %v4496_v9 = vld [vmem:[%s5965_s6 + $0x140] ss:$12 sps:$4 sm:$0xff]   ;;  %v4462_v13 = vld [vmem:[%s5965_s6 + $0x90] ss:$12 sps:$4 sm:$0xff]  }
 0x4a5   :  { %v3945_v16 = vpop.f32.mrb[23].mxu1  ;;  %v4464_v12 = vld [vmem:[%s5965_s6 + $0x94] ss:$12 sps:$4 sm:$0xff]  }
 0x4a6   :  { %v1715_v17 = vadd.f32 %v3943_v14, %v3646_v11  ;;  %v4497_v11 = vld [vmem:[%s5965_s6 + $0x80] ss:$12 sps:$4 sm:$0xff]   ;;  %v4465_v15 = vld [vmem:[%s5965_s6 + $0xa8] ss:$12 sps:$4 sm:$0xff]   ;;  %v4470_v16 = vld [vmem:[%s5965_s6 + $0xc4] ss:$12 sps:$4 sm:$0xff]  }
 0x4a7   :  { %v4467_v14 = vld [vmem:[%s5965_s6 + $0xac] ss:$12 sps:$4 sm:$0xff]  }
 0x4a8   :  { %v1755_v18 = vadd.f32 %v1754_v7, %v1715_v17  ;;  %v4492_v7 = vld [vmem:[%s5965_s6 + $0x68] ss:$12 sps:$4 sm:$0xff]   ;;  %v4468_v17 = vld [vmem:[%s5965_s6 + $0xc0] ss:$12 sps:$4 sm:$0xff]  }
 0x4aa   :  { %v1760_v19 = vmax.f32 %v1755_v18, 0.0  ;;  %v4475_v18 = vld [vmem:[%s5965_s6 + $0xdc] ss:$12 sps:$4 sm:$0xff]  }
 0x4ac   :  { %v1761_v22 = vpack.c.bf16 %v1760_v19, %v1760_v19  ;;  %v4473_v19 = vld [vmem:[%s5965_s6 + $0xd8] ss:$12 sps:$4 sm:$0xff]  }
 0x4ae   :  { %4132 = vmatmul.mubr.msk.bf16.vlgmr.msra.gmra.mrb[24].mxu1 %vm1338_vm1, %v1761_v22  ;;  %4144 = vmatmul.mubr.msk.bf16.vlgmr.msra.gmra.mrb[20].mxu0 %vm1338_vm1, %v1761_v22  ;;  %v4485_v22 = vld [vmem:[%s5965_s6 + $0x10c] ss:$12 sps:$4 sm:$0xff]  }
 0x4af   :  { %2028 = vmatpush1.bf16.msra.mxu1 %v4428_v20  ;;  %4148 = vmatpush3.bf16.msra.mxu0 %v4431_v21  ;;  %v4480_v20 = vld [vmem:[%s5965_s6 + $0xf4] ss:$12 sps:$4 sm:$0xff]   ;;  %v4478_v21 = vld [vmem:[%s5965_s6 + $0xf0] ss:$12 sps:$4 sm:$0xff]  }
 0x4b0   :  { %2029 = vmatprep.subr.bf16.mxu1 %v4434_v23  ;;  %4149 = vmatprep.subr.bf16.mxu0 %v4656_v35  ;;  %v4483_v23 = vld [vmem:[%s5965_s6 + $0x108] ss:$12 sps:$4 sm:$0xff]  }
 0x4b1   :  { %2059 = vmatprep.mubr.bf16.mxu1 %v4658_v40  ;;  %4155 = vmatprep.mubr.msk.bf16.mxu0 %vm4657_vm0, %v4656_v35 }
 0x4b3   :  { %2030 = vmatpush1.bf16.msra.mxu1 %v4432_v24  ;;  %4150 = vmatpush3.bf16.msra.mxu0 %v4435_v25  ;;  %v4490_v24 = vld [vmem:[%s5965_s6 + $0x124] ss:$12 sps:$4 sm:$0xff]   ;;  %v4488_v25 = vld [vmem:[%s5965_s6 + $0x120] ss:$12 sps:$4 sm:$0xff]  }
 0x4b4   :  { %2031 = vmatprep.subr.bf16.mxu1 %v4438_v26  ;;  %4151 = vmatprep.subr.bf16.mxu0 %v4656_v35  ;;  %v4495_v26 = vld [vmem:[%s5965_s6 + $0x13c] ss:$12 sps:$4 sm:$0xff]  }
 0x4b7   :  { %2032 = vmatpush1.bf16.msra.mxu1 %v4436_v27  ;;  %4152 = vmatpush3.bf16.msra.mxu0 %v4439_v28  ;;  %v4493_v27 = vld [vmem:[%s5965_s6 + $0x138] ss:$12 sps:$4 sm:$0xff]   ;;  %v4500_v28 = vld [vmem:[%s5965_s6 + $0x154] ss:$12 sps:$4 sm:$0xff]  }
 0x4b8   :  { %4153 = vmatprep.subr.bf16.mxu0 %v4656_v35  ;;  %2033 = vmatprep.subr.bf16.mxu1 %v4442_v29  ;;  %v4501_v29 = vld [vmem:[%s5965_s6 + $0x158] ss:$12 sps:$4 sm:$0xff]  }
 0x4bb   :  { %2034 = vmatpush1.bf16.msra.mxu1 %v4440_v30  ;;  %4154 = vmatpush3.bf16.msra.mxu0 %v4443_v31  ;;  %v4498_v30 = vld [vmem:[%s5965_s6 + $0x150] ss:$12 sps:$4 sm:$0xff]   ;;  %v4502_v31 = vld [vmem:[%s5965_s6 + $0x98] ss:$12 sps:$4 sm:$0xff]  }
 0x4bc   :  { %2534 = vmatprep.subr.bf16.mxu1 %v4446_v32  ;;  %3967 = vmatprep.subr.bf16.mxu0 %v4471_v33  ;;  %v4505_v32 = vld [vmem:[%s5965_s6 + $0x16c] ss:$12 sps:$4 sm:$0xff]   ;;  %v4506_v33 = vld [vmem:[%s5965_s6 + $0x170] ss:$12 sps:$4 sm:$0xff]  }
 0x581   :  { %v1838_v41 = vpop.f32.mrb[24].mxu1  ;;  %v1919_v42 = vpop.f32.mrb[20].mxu0 }
 0x582   :  { %v1839_v43 = vadd.f32 %v3668_v34, %v1838_v41  ;;  %v1920_v44 = vadd.f32 %v3674_v38, %v1919_v42  ;;  %v4133_v45 = vpop.f32.mrb[25].mxu1  ;;  %v4145_v46 = vpop.f32.mrb[21].mxu0  ;;  %v4503_v34 = vld [vmem:[%s5965_s6 + $0x168] ss:$12 sps:$4 sm:$0xff]   ;;  %v4507_v38 = vld [vmem:[%s5965_s6 + $0xb0] ss:$12 sps:$4 sm:$0xff]  }
 0x583   :  { %v1841_v47 = vpop.f32.mrb[26].mxu1  ;;  %v1922_v48 = vpop.f32.mrb[22].mxu0  ;;  %v4510_v41 = vld [vmem:[%s5965_s6 + $0x184] ss:$12 sps:$4 sm:$0xff]   ;;  %v1943_v42 = vld [vmem:[%s5927_s20] sm:$0x7] }
 0x584   :  { %v1925_v49 = vmax.f32 %v1920_v44, 0.0  ;;  %v4134_v50 = vpop.f32.mrb[27].mxu1  ;;  %v4146_v51 = vpop.f32.mrb[23].mxu0  ;;  %1845 = vst.msk [vmem:[#allocation4] sm:$0xff] %vm1844_vm2, %v1839_v43  ;;  %v1948_v43 = vrot.slane %v1943_v42, %v5215_v37  ;;  %v1952_v44 = vrot.slane %v1943_v42, %v5221_v39  ;;  %s5966_s20 = sld [smem:[#allocation18_spill]] }
 0x586   :  { %v1926_v54 = vpack.c.bf16 %v1925_v49, %v1925_v49 }
 0x588   :  { %3692 = vmatmul.mubr.msk.bf16.vlgmr.msra.gmra.mrb[28].mxu1 %vm1338_vm1, %v1926_v54  ;;  %4156 = vmatmul.mubr.msk.bf16.vlgmr.msra.gmra.mrb[24].mxu0 %vm1338_vm1, %v1926_v54 }
 0x589   :  { %2535 = vmatpush1.bf16.msra.mxu1 %v4444_v52  ;;  %3968 = vmatpush3.bf16.msra.mxu0 %v4472_v53 }
 0x58a   :  { %2536 = vmatprep.subr.bf16.mxu1 %v4449_v55  ;;  %3969 = vmatprep.subr.bf16.mxu0 %v4476_v56 }
 0x58d   :  { %2537 = vmatpush1.bf16.msra.mxu1 %v4447_v57  ;;  %3970 = vmatpush3.bf16.msra.mxu0 %v4477_v58  ;;  %v4508_v58 = vld [vmem:[%s5965_s6 + $0x180] ss:$12 sps:$4 sm:$0xff]  }
 0x58e   :  { %2538 = vmatprep.subr.bf16.mxu1 %v4452_v60  ;;  %3971 = vmatprep.subr.bf16.mxu0 %v4481_v61  ;;  %v4511_v60 = vld [vmem:[%s5965_s6 + $0x188] ss:$12 sps:$4 sm:$0xff]  }
 0x591   :  { %2539 = vmatpush1.bf16.msra.mxu1 %v4450_v62  ;;  %3972 = vmatpush3.bf16.msra.mxu0 %v4482_v63  ;;  %v4514_v62 = vld [vmem:[%s5965_s6 + $0x19c] ss:$12 sps:$4 sm:$0xff]   ;;  %v4512_v63 = vld [vmem:[%s5965_s6 + $0x198] ss:$12 sps:$4 sm:$0xff]  }
 0x592   :  { %2540 = vmatprep.subr.bf16.mxu1 %v4455_v0  ;;  %3973 = vmatprep.subr.bf16.mxu0 %v4486_v1  ;;  %v4515_v0 = vld [vmem:[%s5965_s6 + $0x1a0] ss:$12 sps:$4 sm:$0xff]   ;;  %v1956_v1 = vrot.slane %v1943_v42, %v5232_v59 }
 0x595   :  { %2541 = vmatpush1.bf16.msra.mxu1 %v4453_v2  ;;  %3974 = vmatpush3.bf16.msra.mxu0 %v4487_v3  ;;  %v4518_v2 = vld [vmem:[%s5965_s6 + $0x1b4] ss:$12 sps:$4 sm:$0xff]   ;;  %v4516_v3 = vld [vmem:[%s5965_s6 + $0x1b0] ss:$12 sps:$4 sm:$0xff]  }
 0x596   :  { %2542 = vmatprep.subr.bf16.mxu1 %v4458_v4  ;;  %3975 = vmatprep.subr.bf16.mxu0 %v4491_v5  ;;  %v4519_v4 = vld [vmem:[%s5965_s6 + $0x1b8] ss:$12 sps:$4 sm:$0xff]  }
 0x599   :  { %2543 = vmatpush1.bf16.msra.mxu1 %v4456_v6  ;;  %3976 = vmatpush3.bf16.msra.mxu0 %v4492_v7  ;;  %v4522_v6 = vld [vmem:[%s5965_s6 + $0x1cc] ss:$12 sps:$4 sm:$0xff]   ;;  %v4520_v7 = vld [vmem:[%s5965_s6 + $0x1c8] ss:$12 sps:$4 sm:$0xff]  }
 0x59a   :  { %2544 = vmatprep.subr.bf16.mxu1 %v4461_v8  ;;  %3977 = vmatprep.subr.bf16.mxu0 %v4496_v9  ;;  %v4523_v8 = vld [vmem:[%s5965_s6 + $0x1d0] ss:$12 sps:$4 sm:$0xff]  }
 0x59d   :  { %2545 = vmatpush1.bf16.msra.mxu1 %v4459_v10  ;;  %3978 = vmatpush3.bf16.msra.mxu0 %v4497_v11  ;;  %v4524_v10 = vld [vmem:[%s5966_s20 + $0x40] sm:$0xff]  }
 0x59e   :  { %2546 = vmatprep.subr.bf16.mxu1 %v4464_v12  ;;  %3979 = vmatprep.subr.bf16.mxu0 %v4501_v29  ;;  %v4525_v11 = vld [vmem:[%s5966_s20] sm:$0xff]   ;;  %v4542_v29 = vld [vmem:[%s5966_s20 + $0x78] sm:$0xff]  }
 0x5a1   :  { %2547 = vmatpush1.bf16.msra.mxu1 %v4462_v13  ;;  %3980 = vmatpush3.bf16.msra.mxu0 %v4502_v31  ;;  %v4526_v13 = vld [vmem:[%s5966_s20 + $0x48] sm:$0xff]  }
 0x5a2   :  { %2548 = vmatprep.subr.bf16.mxu1 %v4467_v14  ;;  %3981 = vmatprep.subr.bf16.mxu0 %v4506_v33  ;;  %v4527_v14 = vld [vmem:[%s5966_s20 + $0x8] sm:$0xff]  }
 0x5a5   :  { %2549 = vmatpush1.bf16.msra.mxu1 %v4465_v15  ;;  %3982 = vmatpush3.bf16.msra.mxu0 %v4507_v38  ;;  %v4528_v15 = vld [vmem:[%s5966_s20 + $0x50] sm:$0xff]  }
 0x5a6   :  { %2550 = vmatprep.subr.bf16.mxu1 %v4470_v16  ;;  %4159 = vmatprep.subr.bf16.mxu0 %v4656_v35  ;;  %v4529_v16 = vld [vmem:[%s5966_s20 + $0x10] sm:$0xff]  }
 0x5a9   :  { %2551 = vmatpush1.bf16.msra.mxu1 %v4468_v17  ;;  %v4530_v17 = vld [vmem:[%s5966_s20 + $0x58] sm:$0xff]  }
 0x5aa   :  { %2552 = vmatprep.subr.bf16.mxu1 %v4475_v18  ;;  %v4531_v18 = vld [vmem:[%s5966_s20 + $0x18] sm:$0xff]  }
 0x5ad   :  { %2553 = vmatpush1.bf16.msra.mxu1 %v4473_v19  ;;  %v4532_v19 = vld [vmem:[%s5966_s20 + $0x80] sm:$0xff]  }
 0x5ae   :  { %2554 = vmatprep.subr.bf16.mxu1 %v4480_v20  ;;  %v4533_v20 = vld [vmem:[%s5966_s20 + $0x60] sm:$0xff]  }
 0x5b1   :  { %2555 = vmatpush1.bf16.msra.mxu1 %v4478_v21  ;;  %v4535_v21 = vld [vmem:[%s5966_s20 + $0x88] sm:$0xff]  }
 0x5b2   :  { %2556 = vmatprep.subr.bf16.mxu1 %v4485_v22  ;;  %v4534_v22 = vld [vmem:[%s5966_s20 + $0x20] sm:$0xff]  }
 0x5b5   :  { %2557 = vmatpush1.bf16.msra.mxu1 %v4483_v23  ;;  %v4536_v23 = vld [vmem:[%s5966_s20 + $0x68] sm:$0xff]  }
 0x5b6   :  { %2558 = vmatprep.subr.bf16.mxu1 %v4490_v24  ;;  %v4537_v24 = vld [vmem:[%s5966_s20 + $0x28] sm:$0xff]  }
 0x5b9   :  { %2559 = vmatpush1.bf16.msra.mxu1 %v4488_v25  ;;  %v4538_v25 = vld [vmem:[%s5966_s20 + $0x90] sm:$0xff]  }
 0x5ba   :  { %2560 = vmatprep.subr.bf16.mxu1 %v4495_v26  ;;  %v4539_v26 = vld [vmem:[%s5966_s20 + $0x70] sm:$0xff]  }
 0x5bd   :  { %2561 = vmatpush1.bf16.msra.mxu1 %v4493_v27  ;;  %v4540_v27 = vld [vmem:[%s5966_s20 + $0x30] sm:$0xff]  }
 0x5be   :  { %2562 = vmatprep.subr.bf16.mxu1 %v4500_v28  ;;  %v4541_v28 = vld [vmem:[%s5966_s20 + $0x98] sm:$0xff]  }
 0x5c1   :  { %2563 = vmatpush1.bf16.msra.mxu1 %v4498_v30  ;;  %v4543_v30 = vld [vmem:[%s5966_s20 + $0x38] sm:$0xff]  }
 0x5c2   :  { %2564 = vmatprep.subr.bf16.mxu1 %v4505_v32 }
 0x5c5   :  { %2565 = vmatpush1.bf16.msra.mxu1 %v4503_v34 }
 0x5c6   :  { %2575 = vmatprep.subr.bf16.mxu1 %v4510_v41  ;;  %v2194_v41 = vld [vmem:[%s5928_s21] sm:$0x7] }
 0x5c7   :  { %v2207_v42 = vrot.slane %v2194_v41, %v5232_v59 }
 0x65b   :  { %v2061_v45 = vpop.f32.mrb[28].mxu1  ;;  %v2102_v46 = vpop.f32.mrb[24].mxu0 }
 0x65c   :  { %v2062_v47 = vadd.f32 %v2061_v45, %v1948_v43  ;;  %v2063_v48 = vpop.f32.mrb[29].mxu1  ;;  %v4157_v49 = vpop.f32.mrb[25].mxu0  ;;  %v2103_v5 = vadd.f32 %v2102_v46, %v1956_v1  ;;  %v2199_v43 = vrot.slane %v2194_v41, %v5215_v37  ;;  %v4545_v1 = vld [vmem:[%s5918_s11 + $0x8] sm:$0xff]  }
 0x65d   :  { %v2064_v50 = vadd.f32 %v2063_v48, %v1952_v44  ;;  %v2065_v51 = vpop.f32.mrb[30].mxu1  ;;  %v2105_v52 = vpop.f32.mrb[26].mxu0  ;;  %v2203_v44 = vrot.slane %v2194_v41, %v5221_v39  ;;  %v4555_v41 = vld [vmem:[%s5919_s12 + $0x8] ss:$20 sps:$4 sm:$0xff]  }
 0x65e   :  { %v2108_v53 = vmax.f32 %v2062_v47, 0.0  ;;  %v2066_v54 = vpop.f32.mrb[31].mxu1  ;;  %v4158_v55 = vpop.f32.mrb[27].mxu0  ;;  %v2110_v9 = vmax.f32 %v2103_v5, 0.0  ;;  %v4549_v5 = vld [vmem:[%s5918_s11 + $0x28] sm:$0xff]  }
 0x65f   :  { %v2109_v56 = vmax.f32 %v2064_v50, 0.0 }
 0x660   :  { %v2111_v61 = vpack.c.bf16 %v2108_v53, %v2108_v53  ;;  %v2113_v12 = vpack.c.bf16 %v2110_v9, %v2110_v9  ;;  %v4554_v9 = vld [vmem:[%s5919_s12 + $0x4] ss:$20 sps:$4 sm:$0xff]  }
 0x661   :  { %v2112_v57 = vpack.c.bf16 %v2109_v56, %v2109_v56 }
 0x663   :  { %2566 = vmatprep.mubr.bf16.mxu1 %v2112_v57  ;;  %2648 = vmatprep.mubr.bf16.mxu0 %v2112_v57 }
 0x664   :  { %2567 = vmatmul.mubr.bf16.vlgmr.msra.gmra.mrb[32].mxu1 %v2111_v61  ;;  %2649 = vmatmul.mubr.bf16.vlgmr.msra.gmra.mrb[28].mxu0 %v2111_v61 }
 0x665   :  { %2576 = vmatpush1.bf16.msra.mxu1 %v4508_v58  ;;  %4160 = vmatpush3.bf16.msra.mxu0 %v4511_v60 }
 0x666   :  { %2577 = vmatprep.subr.bf16.mxu1 %v4514_v62  ;;  %4161 = vmatprep.subr.bf16.mxu0 %v4656_v35 }
 0x667   :  { %2607 = vmatprep.mubr.bf16.mxu1 %v4658_v40  ;;  %4167 = vmatprep.mubr.msk.bf16.mxu0 %vm4657_vm0, %v4656_v35 }
 0x669   :  { %2578 = vmatpush1.bf16.msra.mxu1 %v4512_v63  ;;  %4162 = vmatpush3.bf16.msra.mxu0 %v4515_v0  ;;  %v4544_v63 = vld [vmem:[%s5918_s11] sm:$0xff]  }
 0x66a   :  { %2579 = vmatprep.subr.bf16.mxu1 %v4518_v2  ;;  %4163 = vmatprep.subr.bf16.mxu0 %v4656_v35  ;;  %v4546_v2 = vld [vmem:[%s5918_s11 + $0x10] sm:$0xff]  }
 0x66d   :  { %2580 = vmatpush1.bf16.msra.mxu1 %v4516_v3  ;;  %4164 = vmatpush3.bf16.msra.mxu0 %v4519_v4  ;;  %v4547_v3 = vld [vmem:[%s5918_s11 + $0x18] sm:$0xff]   ;;  %v4548_v4 = vld [vmem:[%s5918_s11 + $0x20] sm:$0xff]  }
 0x66e   :  { %2581 = vmatprep.subr.bf16.mxu1 %v4522_v6  ;;  %4165 = vmatprep.subr.bf16.mxu0 %v4656_v35  ;;  %v4550_v6 = vld [vmem:[%s5918_s11 + $0x30] sm:$0xff]  }
 0x671   :  { %2582 = vmatpush1.bf16.msra.mxu1 %v4520_v7  ;;  %4166 = vmatpush3.bf16.msra.mxu0 %v4523_v8  ;;  %v4551_v7 = vld [vmem:[%s5918_s11 + $0x38] sm:$0xff]   ;;  %v4552_v8 = vld [vmem:[%s5919_s12] ss:$20 sps:$4 sm:$0xff]   ;;  %s4608_s11 = scalar_lea.vmem %s3499_s9, 128 }
 0x672   :  { %3994 = vmatprep.subr.bf16.mxu0 %v4524_v10  ;;  %4171 = vmatprep.subr.bf16.mxu1 %v4656_v35  ;;  %v4557_v10 = vld [vmem:[%s5919_s12 + $0xc] ss:$20 sps:$4 sm:$0xff]   ;;  %p4609_p0 = scmp.ne.s32.totalorder %s3499_s9, %s4608_s11  ;;  %p4614_p2 = scmp.lt.s32.totalorder %s4608_s11, %s4608_s11 }
 0x674   :  { %3754 = vmatmul.mubr.msk.bf16.vlgmr.msra.gmra.mrb[32].mxu1 %vm1338_vm1, %v2113_v12  ;;  %4168 = vmatmul.mubr.msk.bf16.vlgmr.msra.gmra.mrb[32].mxu0 %vm1338_vm1, %v2113_v12  ;;  %v4558_v12 = vld [vmem:[%s5919_s12 + $0x28] ss:$20 sps:$4 sm:$0xff]   ;;  %p4615_p3 = por %p4614_p2, %p4613_p1 }
 0x675   :  { %3995 = vmatpush3.bf16.msra.mxu0 %v4525_v11  ;;  %4179 = vmatprep.mubr.msk.bf16.mxu1 %vm4657_vm0, %v4656_v35  ;;  %v4560_v11 = vld [vmem:[%s5919_s12 + $0x2c] ss:$20 sps:$4 sm:$0xff]  }
 0x676   :  { %3996 = vmatprep.subr.bf16.mxu0 %v4526_v13  ;;  %4172 = vmatpush3.bf16.msra.mxu1 %v4532_v19  ;;  %v4566_v13 = vld [vmem:[%s5919_s12 + $0x54] ss:$20 sps:$4 sm:$0xff]   ;;  %v4584_v19 = vld [vmem:[%s5919_s12 + $0xcc] ss:$20 sps:$4 sm:$0xff]   ;;  %p4616_p4 = pnand %p4615_p3, %p4609_p0 }
 0x677   :  { %4173 = vmatprep.subr.bf16.mxu1 %v4656_v35 }
 0x679   :  { %3997 = vmatpush3.bf16.msra.mxu0 %v4527_v14  ;;  %v4564_v14 = vld [vmem:[%s5919_s12 + $0x50] ss:$20 sps:$4 sm:$0xff]  }
 0x67a   :  { %3998 = vmatprep.subr.bf16.mxu0 %v4528_v15  ;;  %4174 = vmatpush3.bf16.msra.mxu1 %v4535_v21  ;;  %v4572_v15 = vld [vmem:[%s5919_s12 + $0x7c] ss:$20 sps:$4 sm:$0xff]   ;;  %v4590_v21 = vld [vmem:[%s5919_s12 + $0xf4] ss:$20 sps:$4 sm:$0xff]  }
 0x67b   :  { %4175 = vmatprep.subr.bf16.mxu1 %v4656_v35 }
 0x67d   :  { %3999 = vmatpush3.bf16.msra.mxu0 %v4529_v16  ;;  %v4570_v16 = vld [vmem:[%s5919_s12 + $0x78] ss:$20 sps:$4 sm:$0xff]  }
 0x67e   :  { %4000 = vmatprep.subr.bf16.mxu0 %v4530_v17  ;;  %4176 = vmatpush3.bf16.msra.mxu1 %v4538_v25  ;;  %v4578_v17 = vld [vmem:[%s5919_s12 + $0xa4] ss:$20 sps:$4 sm:$0xff]  }
 0x67f   :  { %4177 = vmatprep.subr.bf16.mxu1 %v4656_v35 }
 0x681   :  { %4001 = vmatpush3.bf16.msra.mxu0 %v4531_v18  ;;  %v4576_v18 = vld [vmem:[%s5919_s12 + $0xa0] ss:$20 sps:$4 sm:$0xff]  }
 0x682   :  { %4002 = vmatprep.subr.bf16.mxu0 %v4533_v20  ;;  %4178 = vmatpush3.bf16.msra.mxu1 %v4541_v28  ;;  %v4582_v20 = vld [vmem:[%s5919_s12 + $0xc8] ss:$20 sps:$4 sm:$0xff]  }
 0x683   :  { %3350 = vmatprep.subr.bf16.mxu1 %v4554_v9  ;;  %v4606_v9 = vld [vmem:[%s5919_s12 + $0x100] ss:$20 sps:$4 sm:$0xff]  }
 0x685   :  { %4003 = vmatpush3.bf16.msra.mxu0 %v4534_v22  ;;  %v4588_v22 = vld [vmem:[%s5919_s12 + $0xf0] ss:$20 sps:$4 sm:$0xff]  }
 0x686   :  { %4004 = vmatprep.subr.bf16.mxu0 %v4536_v23 }
 0x689   :  { %4005 = vmatpush3.bf16.msra.mxu0 %v4537_v24 }
 0x68a   :  { %4006 = vmatprep.subr.bf16.mxu0 %v4539_v26 }
 0x68d   :  { %4007 = vmatpush3.bf16.msra.mxu0 %v4540_v27  ;;  %v3756_v27 = vld [vmem:[%s5929_s22] ss:$0 sm:$0xff] }
 0x68e   :  { %4008 = vmatprep.subr.bf16.mxu0 %v4542_v29 }
 0x691   :  { %4009 = vmatpush3.bf16.msra.mxu0 %v4543_v30 }
 0x692   :  { %4183 = vmatprep.subr.bf16.mxu0 %v4656_v35 }
 0x737   :  { %v3983_v31 = vpop.f32.mrb[28].mxu0 }
 0x738   :  { %v3984_v32 = vpop.f32.mrb[29].mxu0 }
 0x739   :  { %v3985_v33 = vadd.f32 %v3984_v32, %v3983_v31  ;;  %v3986_v34 = vpop.f32.mrb[30].mxu0 }
 0x73a   :  { %v3987_v38 = vpop.f32.mrb[31].mxu0 }
 0x73b   :  { %v2651_v45 = vadd.f32 %v3985_v33, %v2207_v42 }
 0x747   :  { %v2609_v46 = vpop.f32.mrb[32].mxu1  ;;  %v2690_v47 = vpop.f32.mrb[32].mxu0 }
 0x748   :  { %v4225_v48 = vadd.f32 %v2609_v46, %v2199_v43  ;;  %v2691_v49 = vadd.f32 %v2690_v47, %v2651_v45  ;;  %v2611_v50 = vpop.f32.mrb[33].mxu1  ;;  %v4169_v51 = vpop.f32.mrb[33].mxu0  ;;  %v4563_v43 = vld [vmem:[%s5919_s12 + $0x34] ss:$20 sps:$4 sm:$0xff]   ;;  %v4569_v45 = vld [vmem:[%s5919_s12 + $0x5c] ss:$20 sps:$4 sm:$0xff]  }
 0x749   :  { %v4226_v52 = vadd.f32 %v2611_v50, %v2203_v44  ;;  %v2613_v53 = vpop.f32.mrb[34].mxu1  ;;  %v2693_v54 = vpop.f32.mrb[34].mxu0  ;;  %v4561_v44 = vld [vmem:[%s5919_s12 + $0x30] ss:$20 sps:$4 sm:$0xff]   ;;  %v4567_v46 = vld [vmem:[%s5919_s12 + $0x58] ss:$20 sps:$4 sm:$0xff]  }
 0x74a   :  { %v2696_v55 = vmax.f32 %v4225_v48, 0.0  ;;  %v2698_v56 = vmax.f32 %v2691_v49, 0.0  ;;  %v2614_v57 = vpop.f32.mrb[35].mxu1  ;;  %v4170_v58 = vpop.f32.mrb[35].mxu0  ;;  %v4575_v47 = vld [vmem:[%s5919_s12 + $0x84] ss:$20 sps:$4 sm:$0xff]  }
 0x74b   :  { %v2697_v60 = vmax.f32 %v4226_v52, 0.0  ;;  %v4581_v48 = vld [vmem:[%s5919_s12 + $0xac] ss:$20 sps:$4 sm:$0xff]   ;;  %v4579_v49 = vld [vmem:[%s5919_s12 + $0xa8] ss:$20 sps:$4 sm:$0xff]  }
 0x74c   :  { %v2701_v61 = vpack.c.bf16 %v2698_v56, %v2698_v56  ;;  %v2699_v0 = vpack.c.bf16 %v2696_v55, %v2696_v55  ;;  %v4587_v50 = vld [vmem:[%s5919_s12 + $0xd4] ss:$20 sps:$4 sm:$0xff]   ;;  %v4585_v51 = vld [vmem:[%s5919_s12 + $0xd0] ss:$20 sps:$4 sm:$0xff]   ;;  %v4591_v53 = vld [vmem:[%s5919_s12 + $0xf8] ss:$20 sps:$4 sm:$0xff]  }
 0x74d   :  { %v2700_v62 = vpack.c.bf16 %v2697_v60, %v2697_v60  ;;  %v4593_v52 = vld [vmem:[%s5919_s12 + $0xfc] ss:$20 sps:$4 sm:$0xff]   ;;  %v4594_v55 = vld [vmem:[%s5919_s12 + $0x118] ss:$20 sps:$4 sm:$0xff]   ;;  %v4597_v57 = vld [vmem:[%s5919_s12 + $0x120] ss:$20 sps:$4 sm:$0xff]  }
 0x74e   :  { %4180 = vmatmul.mubr.msk.bf16.vlgmr.msra.gmra.mrb[36].mxu1 %vm1338_vm1, %v2701_v61  ;;  %v4596_v54 = vld [vmem:[%s5919_s12 + $0x11c] ss:$20 sps:$4 sm:$0xff]   ;;  %v4599_v56 = vld [vmem:[%s5919_s12 + $0x124] ss:$20 sps:$4 sm:$0xff]   ;;  %v3778_v58 = vld [vmem:[%s5930_s23] ss:$0 sm:$0xff] }
 0x74f   :  { %2904 = vmatprep.mubr.bf16.mxu0 %v2700_v62  ;;  %3382 = vmatprep.mubr.bf16.mxu1 %v4658_v40 }
 0x750   :  { %2905 = vmatmul.mubr.bf16.vlgmr.msra.gmra.mrb[36].mxu0 %v2699_v0  ;;  %3351 = vmatpush1.bf16.msra.mxu1 %v4552_v8  ;;  %v4605_v8 = vld [vmem:[%s5919_s12 + $0xd8] ss:$20 sps:$4 sm:$0xff]  }
 0x751   :  { %4184 = vmatpush3.bf16.msra.mxu0 %v4544_v63  ;;  %4199 = vmatprep.mubr.msk.bf16.mxu0 %vm4657_vm0, %v4656_v35 }
 0x752   :  { %4185 = vmatprep.subr.bf16.mxu0 %v4656_v35  ;;  %3352 = vmatprep.subr.bf16.mxu1 %v4560_v11 }
 0x754   :  { %3353 = vmatpush1.bf16.msra.mxu1 %v4558_v12 }
 0x755   :  { %4186 = vmatpush3.bf16.msra.mxu0 %v4545_v1  ;;  %3354 = vmatprep.subr.bf16.mxu1 %v4566_v13 }
 0x756   :  { %4187 = vmatprep.subr.bf16.mxu0 %v4656_v35 }
 0x758   :  { %3355 = vmatpush1.bf16.msra.mxu1 %v4564_v14 }
 0x759   :  { %4188 = vmatpush3.bf16.msra.mxu0 %v4546_v2  ;;  %3356 = vmatprep.subr.bf16.mxu1 %v4572_v15  ;;  %v4600_v2 = vld [vmem:[%s5919_s12 + $0x10] ss:$20 sps:$4 sm:$0xff]  }
 0x75a   :  { %4189 = vmatprep.subr.bf16.mxu0 %v4656_v35 }
 0x75c   :  { %3357 = vmatpush1.bf16.msra.mxu1 %v4570_v16 }
 0x75d   :  { %4190 = vmatpush3.bf16.msra.mxu0 %v4547_v3  ;;  %3358 = vmatprep.subr.bf16.mxu1 %v4578_v17 }
 0x75e   :  { %4191 = vmatprep.subr.bf16.mxu0 %v4656_v35 }
 0x760   :  { %3359 = vmatpush1.bf16.msra.mxu1 %v4576_v18 }
 0x761   :  { %4192 = vmatpush3.bf16.msra.mxu0 %v4548_v4  ;;  %3360 = vmatprep.subr.bf16.mxu1 %v4584_v19  ;;  %v4601_v4 = vld [vmem:[%s5919_s12 + $0x38] ss:$20 sps:$4 sm:$0xff]  }
 0x762   :  { %4193 = vmatprep.subr.bf16.mxu0 %v4656_v35 }
 0x764   :  { %3361 = vmatpush1.bf16.msra.mxu1 %v4582_v20 }
 0x765   :  { %4194 = vmatpush3.bf16.msra.mxu0 %v4549_v5  ;;  %3362 = vmatprep.subr.bf16.mxu1 %v4590_v21  ;;  %v4602_v5 = vld [vmem:[%s5919_s12 + $0x60] ss:$20 sps:$4 sm:$0xff]  }
 0x766   :  { %4195 = vmatprep.subr.bf16.mxu0 %v4656_v35 }
 0x768   :  { %3363 = vmatpush1.bf16.msra.mxu1 %v4588_v22 }
 0x769   :  { %4196 = vmatpush3.bf16.msra.mxu0 %v4550_v6  ;;  %3364 = vmatprep.subr.bf16.mxu1 %v4596_v54  ;;  %v4603_v6 = vld [vmem:[%s5919_s12 + $0x88] ss:$20 sps:$4 sm:$0xff]  }
 0x76a   :  { %4197 = vmatprep.subr.bf16.mxu0 %v4656_v35 }
 0x76c   :  { %3365 = vmatpush1.bf16.msra.mxu1 %v4594_v55 }
 0x76d   :  { %4198 = vmatpush3.bf16.msra.mxu0 %v4551_v7  ;;  %4203 = vmatprep.subr.bf16.mxu1 %v4656_v35  ;;  %v4604_v7 = vld [vmem:[%s5919_s12 + $0xb0] ss:$20 sps:$4 sm:$0xff]  }
 0x76e   :  { %3391 = vmatprep.subr.bf16.mxu0 %v4557_v10  ;;  %v4607_v10 = vld [vmem:[%s5919_s12 + $0x128] ss:$20 sps:$4 sm:$0xff]  }
 0x821   :  { %v2946_v23 = vpop.f32.mrb[36].mxu1 }
 0x822   :  { %v4181_v24 = vpop.f32.mrb[37].mxu1 }
 0x823   :  { %v4010_v25 = vpop.f32.mrb[36].mxu0  ;;  %v2949_v26 = vpop.f32.mrb[38].mxu1 }
 0x824   :  { %v4011_v28 = vpop.f32.mrb[37].mxu0  ;;  %v4182_v29 = vpop.f32.mrb[39].mxu1 }
 0x825   :  { %v4012_v30 = vadd.f32 %v4011_v28, %v4010_v25  ;;  %v4013_v31 = vpop.f32.mrb[38].mxu0 }
 0x826   :  { %v4014_v32 = vpop.f32.mrb[39].mxu0 }
 0x827   :  { %v2907_v33 = vadd.f32 %v4012_v30, %v3756_v27 }
 0x829   :  { %v2947_v34 = vadd.f32 %v2946_v23, %v2907_v33 }
 0x82b   :  { %v2952_v38 = vmax.f32 %v2947_v34, 0.0 }
 0x82d   :  { %v2953_v42 = vpack.c.bf16 %v2952_v38, %v2952_v38 }
 0x82f   :  { %4200 = vmatmul.mubr.bf16.vlgmr.msra.gmra.mrb[40].mxu0 %v2953_v42 }
 0x830   :  { %3392 = vmatpush1.bf16.msra.mxu0 %v4555_v41  ;;  %3423 = vmatprep.mubr.bf16.mxu0 %v4658_v40  ;;  %v4573_v40 = vld [vmem:[%s5919_s12 + $0x80] ss:$20 sps:$4 sm:$0xff]  }
 0x831   :  { %3393 = vmatprep.subr.bf16.mxu0 %v4563_v43 }
 0x834   :  { %3394 = vmatpush1.bf16.msra.mxu0 %v4561_v44 }
 0x835   :  { %3395 = vmatprep.subr.bf16.mxu0 %v4569_v45 }
 0x838   :  { %3396 = vmatpush1.bf16.msra.mxu0 %v4567_v46 }
 0x839   :  { %3397 = vmatprep.subr.bf16.mxu0 %v4575_v47 }
 0x83c   :  { %3398 = vmatpush1.bf16.msra.mxu0 %v4573_v40 }
 0x83d   :  { %3399 = vmatprep.subr.bf16.mxu0 %v4581_v48 }
 0x840   :  { %3400 = vmatpush1.bf16.msra.mxu0 %v4579_v49 }
 0x841   :  { %3401 = vmatprep.subr.bf16.mxu0 %v4587_v50 }
 0x844   :  { %3402 = vmatpush1.bf16.msra.mxu0 %v4585_v51 }
 0x845   :  { %3403 = vmatprep.subr.bf16.mxu0 %v4593_v52 }
 0x848   :  { %3404 = vmatpush1.bf16.msra.mxu0 %v4591_v53 }
 0x849   :  { %3405 = vmatprep.subr.bf16.mxu0 %v4599_v56 }
 0x84c   :  { %3406 = vmatpush1.bf16.msra.mxu0 %v4597_v57 }
 0x902   :  { %v3059_v60 = vpop.f32.mrb[40].mxu0 }
 0x903   :  { %v3060_v61 = vadd.f32 %v3778_v58, %v3059_v60  ;;  %v4201_v62 = vpop.f32.mrb[41].mxu0 }
 0x904   :  { %v3062_v63 = vpop.f32.mrb[42].mxu0 }
 0x905   :  { %v3065_v0 = vmax.f32 %v3060_v61, 0.0  ;;  %v4202_v1 = vpop.f32.mrb[43].mxu0 }
 0x907   :  { %v3066_v3 = vpack.c.bf16 %v3065_v0, %v3065_v0 }
 0x909   :  { %3383 = vmatmul.mubr.bf16.vlgmr.msra.gmra.mrb[40].mxu1 %v3066_v3  ;;  %3424 = vmatmul.mubr.bf16.vlgmr.msra.gmra.mrb[44].mxu0 %v3066_v3 }
 0x90a   :  { %4204 = vmatpush3.bf16.msra.mxu1 %v4600_v2  ;;  %4219 = vmatprep.mubr.msk.bf16.mxu1 %vm4657_vm0, %v4656_v35 }
 0x90b   :  { %4205 = vmatprep.subr.bf16.mxu1 %v4656_v35 }
 0x90e   :  { %4206 = vmatpush3.bf16.msra.mxu1 %v4601_v4 }
 0x90f   :  { %4207 = vmatprep.subr.bf16.mxu1 %v4656_v35 }
 0x912   :  { %4208 = vmatpush3.bf16.msra.mxu1 %v4602_v5 }
 0x913   :  { %4209 = vmatprep.subr.bf16.mxu1 %v4656_v35 }
 0x916   :  { %4210 = vmatpush3.bf16.msra.mxu1 %v4603_v6 }
 0x917   :  { %4211 = vmatprep.subr.bf16.mxu1 %v4656_v35 }
 0x91a   :  { %4212 = vmatpush3.bf16.msra.mxu1 %v4604_v7 }
 0x91b   :  { %4213 = vmatprep.subr.bf16.mxu1 %v4656_v35 }
 0x91e   :  { %4214 = vmatpush3.bf16.msra.mxu1 %v4605_v8 }
 0x91f   :  { %4215 = vmatprep.subr.bf16.mxu1 %v4656_v35 }
 0x922   :  { %4216 = vmatpush3.bf16.msra.mxu1 %v4606_v9 }
 0x923   :  { %4217 = vmatprep.subr.bf16.mxu1 %v4656_v35 }
 0x926   :  { %4218 = vmatpush3.bf16.msra.mxu1 %v4607_v10 }
 0x929   :  { %4220 = vmatmul.mubr.bf16.vlgmr.msra.gmra.mrb[44].mxu1 %v3066_v3 }
 0x92a   :  { %4619 = shalt.err (!%p4616_p4)
}
 0x92b   :  { %s4620_s22 = scalar_lea.hbm %s5933_s26, 128 }
 0x92c   :  { %p4621_p5 = scmp.ne.s32.totalorder %s5933_s26, %s4620_s22  ;;  %p4624_p6 = scmp.lt.u32.totalorder %s4620_s22, %s5933_s26 }
 0x92e   :  { %p4626_p7 = pnand %p4624_p6, %p4621_p5 }
 0x930   :  { %4629 = shalt.err (!%p4626_p7)
}
 0x931   :  { %3501 = dma.vmem_to_hbm [thread:$0]  %s3499_s9, 128, %s5933_s26, [#allocation5]   ;;  %v3115_v35 = vld [vmem:[%s5931_s24] sm:$0x1f]  ;;  %v3131_v11 = vsub.s32 3, %v5212_v36 }
 0x932   :  { %v3120_v12 = vrot.slane %v3115_v35, %v5215_v37  ;;  %v3128_v13 = vrot.slane %v3115_v35, %v5232_v59  ;;  %v3124_v14 = vrot.slane %v3115_v35, %v5221_v39  ;;  %v3135_v39 = vsub.s32 4, %v5212_v36  ;;  %s4660_s24 = smov [#allocation2]  }
 0x933   :  { %v3132_v15 = vrot.slane %v3115_v35, %v3131_v11  ;;  %s3488_s26 = sshll.u32 %s4660_s24, 4  ;;  %s3489_s26 = int_to_ptr.vmem [resolvable:$true] %s3488_s26 }
 0x934   :  { %v3136_v59 = vrot.slane %v3115_v35, %v3135_v39  ;;  %s4630_s27 = scalar_lea.vmem %s3489_s26, 640  ;;  %p4635_p9 = scmp.lt.s32.totalorder %s3489_s26, %s3489_s26 }
 0x935   :  { %p4631_p8 = scmp.ne.s32.totalorder %s3489_s26, %s4630_s27  ;;  %p4636_p10 = scmp.lt.s32.totalorder %s4630_s27, %s4630_s27 }
 0x937   :  { %p4637_p11 = por %p4636_p10, %p4635_p9 }
 0x939   :  { %p4638_p12 = pnand %p4637_p11, %p4631_p8 }
 0x9dc   :  { %v3384_v16 = vpop.f32.mrb[40].mxu1  ;;  %v3425_v17 = vpop.f32.mrb[44].mxu0 }
 0x9dd   :  { %v3385_v18 = vadd.f32 %v3384_v16, %v3120_v12  ;;  %v3426_v19 = vadd.f32 %v3425_v17, %v3128_v13  ;;  %v3386_v20 = vpop.f32.mrb[41].mxu1  ;;  %v3427_v21 = vpop.f32.mrb[45].mxu0 }
 0x9de   :  { %v3387_v22 = vadd.f32 %v3386_v20, %v3124_v14  ;;  %v3428_v23 = vadd.f32 %v3427_v21, %v3132_v15  ;;  %v3388_v24 = vpop.f32.mrb[42].mxu1  ;;  %v3429_v25 = vpop.f32.mrb[46].mxu0 }
 0x9df   :  { %v3472_v26 = vmax.f32 %v3385_v18, 0.0  ;;  %v3474_v27 = vmax.f32 %v3426_v19, 0.0  ;;  %v3389_v28 = vpop.f32.mrb[43].mxu1  ;;  %v3430_v29 = vpop.f32.mrb[47].mxu0 }
 0x9e0   :  { %v3473_v37 = vmax.f32 %v3387_v22, 0.0  ;;  %v3475_v30 = vmax.f32 %v3428_v23, 0.0 }
 0x9e1   :  { %3477 = vst [vmem:[#allocation2] sm:$0xff] %v3472_v26  ;;  %3479 = vst [vmem:[#allocation2 + $0x10] sm:$0xff] %v3474_v27 }
 0x9e2   :  { %3478 = vst [vmem:[#allocation2 + $0x8] sm:$0xff] %v3473_v37  ;;  %3480 = vst [vmem:[#allocation2 + $0x18] sm:$0xff] %v3475_v30 }
 0x9fc   :  { %v3466_v31 = vpop.f32.mrb[44].mxu1 }
 0x9fd   :  { %v3467_v32 = vadd.f32 %v3466_v31, %v3136_v59  ;;  %v4221_v33 = vpop.f32.mrb[45].mxu1 }
 0x9fe   :  { %v3469_v34 = vpop.f32.mrb[46].mxu1 }
 0x9ff   :  { %v3476_v38 = vmax.f32 %v3467_v32, 0.0  ;;  %v4222_v41 = vpop.f32.mrb[47].mxu1 }
 0xa01   :  { %3481 = vst [vmem:[#allocation2 + $0x20] sm:$0xff] %v3476_v38 }
 0xa02   :  { %4641 = shalt.err (!%p4638_p12)
}
 0xa03   :  { %s4642_s30 = scalar_lea.hbm %s5932_s25, 640 }
 0xa04   :  { %p4643_p13 = scmp.ne.s32.totalorder %s5932_s25, %s4642_s30  ;;  %p4646_p0 = scmp.lt.u32.totalorder %s4642_s30, %s5932_s25 }
 0xa06   :  { %p4648_p1 = pnand %p4646_p0, %p4643_p13 }
 0xa08   :  { %4651 = shalt.err (!%p4648_p1)
}
 0xa09   :  { %3491 = dma.vmem_to_hbm [thread:$0]  %s3489_s26, 640, %s5932_s25, [#allocation3]  }
 0xa0a   :  { %4652 = dma.done.wait [#allocation3], 640  }
 0xa0b   :  { %4653 = vsyncadd [#allocation3], 4294966656 }
 0xa0c   :  { %4654 = dma.done.wait [#allocation5], 128  }
 0xa0d   :  { %4655 = vsyncadd [#allocation5], 4294967168 }
 0xa0e   :  { %3508 = vsyncpa [#allocation3], 1 }
 0xa0f   :  { %3509 = vsyncpa [#allocation5], 1 }

// kernel: _forward_impl.1
= control target key start
LH: loop header
LB: loop body
LE: loop exit
PB: predicated region body
PF: predicated region fallthrough
CT: control target
= control target key end

     0   :  { %s5907_s0 = inlined_call_operand.vmem [shape: f32[8,640], index: 0, kind: input, shape index: {}]   ;;  %s5908_s1 = inlined_call_operand.vmem [shape: bf16[640,128], index: 1, kind: input, shape index: {}]   ;;  %s5909_s2 = inlined_call_operand.vmem [shape: bf16[128,128], index: 2, kind: input, shape index: {}]   ;;  %s5910_s3 = inlined_call_operand.vmem [shape: bf16[128,320], index: 3, kind: input, shape index: {}]   ;;  %s5911_s4 = inlined_call_operand.vmem [shape: bf16[320,320], index: 4, kind: input, shape index: {}]   ;;  %s5912_s5 = inlined_call_operand.vmem [shape: bf16[320,64], index: 5, kind: input, shape index: {}]   ;;  %s5913_s6 = inlined_call_operand.vmem [shape: bf16[64,32], index: 6, kind: input, shape index: {}]   ;;  %s5914_s7 = inlined_call_operand.vmem [shape: bf16[64,64], index: 7, kind: input, shape index: {}]   ;;  %s5915_s8 = inlined_call_operand.vmem [shape: bf16[64,320], index: 8, kind: input, shape index: {}]   ;;  %s5916_s9 = inlined_call_operand.vmem [shape: bf16[320,320], index: 9, kind: input, shape index: {}]   ;;  %s5917_s10 = inlined_call_operand.vmem [shape: bf16[320,128], index: 10, kind: input, shape index: {}]   ;;  %s5918_s11 = inlined_call_operand.vmem [shape: bf16[128,128], index: 11, kind: input, shape index: {}]   ;;  %s5919_s12 = inlined_call_operand.vmem [shape: bf16[128,640], index: 12, kind: input, shape index: {}]   ;;  %s5920_s13 = inlined_call_operand.vmem [shape: f32[1,128], index: 13, kind: input, shape index: {}]   ;;  %s5921_s14 = inlined_call_operand.vmem [shape: f32[1,128], index: 14, kind: input, shape index: {}]   ;;  %s5922_s15 = inlined_call_operand.vmem [shape: f32[1,320], index: 15, kind: input, shape index: {}]   ;;  %s5923_s16 = inlined_call_operand.vmem [shape: f32[1,320], index: 16, kind: input, shape index: {}]   ;;  %s5924_s17 = inlined_call_operand.vmem [shape: f32[1,64], index: 17, kind: input, shape index: {}]   ;;  %s5925_s18 = inlined_call_operand.vmem [shape: f32[1,32], index: 18, kind: input, shape index: {}]   ;;  %s5926_s19 = inlined_call_operand.vmem [shape: f32[1,64], index: 19, kind: input, shape index: {}]   ;;  %s5927_s20 = inlined_call_operand.vmem [shape: f32[1,320], index: 20, kind: input, shape index: {}]   ;;  %s5928_s21 = inlined_call_operand.vmem [shape: f32[1,320], index: 21, kind: input, shape index: {}]   ;;  %s5929_s22 = inlined_call_operand.vmem [shape: f32[1,128], index: 22, kind: input, shape index: {}]   ;;  %s5930_s23 = inlined_call_operand.vmem [shape: f32[1,128], index: 23, kind: input, shape index: {}]   ;;  %s5931_s24 = inlined_call_operand.vmem [shape: f32[1,640], index: 24, kind: input, shape index: {}]   ;;  %s5932_s25 = inlined_call_operand.hbm [shape: f32[8,640], index: 25, kind: output, shape index: {0}]   ;;  %s5933_s26 = inlined_call_operand.hbm [shape: f32[8,32], index: 26, kind: output, shape index: {1}]  }
   0x1   :  { %5945 = sst [smem:[#allocation8_spill]] %s5907_s0 }
   0x2   :  { %5946 = sst [smem:[#allocation9_spill]] %s5908_s1 }
   0x3   :  { %5947 = sst [smem:[#allocation10_spill]] %s5909_s2 }
   0x4   :  { %5948 = sst [smem:[#allocation11_spill]] %s5910_s3 }
   0x5   :  { %5949 = sst [smem:[#allocation12_spill]] %s5911_s4 }
   0x6   :  { %5950 = sst [smem:[#allocation13_spill]] %s5912_s5 }
   0x7   :  { %5951 = sst [smem:[#allocation14_spill]] %s5913_s6 }
   0x8   :  { %5952 = sst [smem:[#allocation15_spill]] %s5914_s7 }
   0x9   :  { %5953 = sst [smem:[#allocation16_spill]] %s5915_s8 }
   0xa   :  { %5954 = sst [smem:[#allocation17_spill]] %s5916_s9 }
   0xb   :  { %5955 = sst [smem:[#allocation18_spill]] %s5917_s10 }
   0xc   :  { %32 = vsyncpa [#allocation3], 0  ;;  %s5956_s7 = sld [smem:[#allocation9_spill]]  ;;  %s5957_s30 = sld [smem:[#allocation8_spill]]  ;;  %v4656_v35 = vmov 0.0   ;;  %vm4657_vm0 = vmmov 0  }
   0xd   :  { %s5958_s10 = sld [smem:[#allocation10_spill]] }
  0x12   :  { %v4240_v0 = vld [vmem:[%s5956_s7 + $0x40] sm:$0xff]   ;;  %v4244_v4 = vld [vmem:[%s5956_s7 + $0x48] sm:$0xff]   ;;  %v4248_v8 = vld [vmem:[%s5956_s7 + $0x50] sm:$0xff]  }
  0x13   :  { %v4241_v1 = vld [vmem:[%s5956_s7] sm:$0xff]   ;;  %3827 = vmatprep.subr.bf16.mxu0 %v4240_v0  ;;  %v4245_v5 = vld [vmem:[%s5956_s7 + $0x8] sm:$0xff]   ;;  %v4249_v9 = vld [vmem:[%s5956_s7 + $0x10] sm:$0xff]  }
  0x14   :  { %v4242_v2 = vld [vmem:[%s5956_s7 + $0xc0] sm:$0xff]   ;;  %3828 = vmatpush3.bf16.msra.mxu0 %v4241_v1  ;;  %v4246_v6 = vld [vmem:[%s5956_s7 + $0xc8] sm:$0xff]   ;;  %v4250_v10 = vld [vmem:[%s5956_s7 + $0xd0] sm:$0xff]  }
  0x15   :  { %v4243_v3 = vld [vmem:[%s5956_s7 + $0x80] sm:$0xff]   ;;  %3849 = vmatprep.subr.bf16.mxu1 %v4242_v2  ;;  %3829 = vmatprep.subr.bf16.mxu0 %v4244_v4  ;;  %v4247_v7 = vld [vmem:[%s5956_s7 + $0x88] sm:$0xff]   ;;  %v4251_v11 = vld [vmem:[%s5956_s7 + $0x90] sm:$0xff]  }
  0x16   :  { %3850 = vmatpush3.bf16.msra.mxu1 %v4243_v3  ;;  %v4252_v12 = vld [vmem:[%s5956_s7 + $0x58] sm:$0xff]   ;;  %v4256_v16 = vld [vmem:[%s5956_s7 + $0x60] sm:$0xff]   ;;  %v4260_v20 = vld [vmem:[%s5956_s7 + $0x68] sm:$0xff]  }
  0x17   :  { %3851 = vmatprep.subr.bf16.mxu1 %v4246_v6  ;;  %v4253_v13 = vld [vmem:[%s5956_s7 + $0x18] sm:$0xff]   ;;  %v4257_v17 = vld [vmem:[%s5956_s7 + $0x20] sm:$0xff]   ;;  %v4261_v21 = vld [vmem:[%s5956_s7 + $0x28] sm:$0xff]  }
  0x18   :  { %3830 = vmatpush3.bf16.msra.mxu0 %v4245_v5  ;;  %v4254_v14 = vld [vmem:[%s5956_s7 + $0xd8] sm:$0xff]   ;;  %v4258_v18 = vld [vmem:[%s5956_s7 + $0xe0] sm:$0xff]   ;;  %v4262_v22 = vld [vmem:[%s5956_s7 + $0xe8] sm:$0xff]  }
  0x19   :  { %3831 = vmatprep.subr.bf16.mxu0 %v4248_v8  ;;  %v4255_v15 = vld [vmem:[%s5956_s7 + $0x98] sm:$0xff]   ;;  %v4259_v19 = vld [vmem:[%s5956_s7 + $0xa0] sm:$0xff]   ;;  %v4263_v23 = vld [vmem:[%s5956_s7 + $0xa8] sm:$0xff]  }
  0x1a   :  { %3852 = vmatpush3.bf16.msra.mxu1 %v4247_v7  ;;  %v4264_v24 = vld [vmem:[%s5956_s7 + $0x70] sm:$0xff]   ;;  %v4268_v28 = vld [vmem:[%s5956_s7 + $0x78] sm:$0xff]   ;;  %v86_v31 = vld [vmem:[%s5957_s30 + $0x8] sm:$0xff] }
  0x1b   :  { %3853 = vmatprep.subr.bf16.mxu1 %v4250_v10  ;;  %v4265_v25 = vld [vmem:[%s5956_s7 + $0x30] sm:$0xff]   ;;  %v4269_v29 = vld [vmem:[%s5956_s7 + $0x38] sm:$0xff]   ;;  %v91_v32 = vpack.c.bf16 %v86_v31, %v86_v31  ;;  %v85_v34 = vld [vmem:[%s5957_s30] sm:$0xff] }
  0x1c   :  { %3832 = vmatpush3.bf16.msra.mxu0 %v4249_v9  ;;  %v4266_v26 = vld [vmem:[%s5956_s7 + $0xf0] sm:$0xff]   ;;  %v4270_v30 = vld [vmem:[%s5956_s7 + $0xf8] sm:$0xff]   ;;  %v90_v37 = vpack.c.bf16 %v85_v34, %v85_v34  ;;  %v4272_v39 = vld [vmem:[%s5956_s7 + $0x100] sm:$0xff]  }
  0x1d   :  { %3833 = vmatprep.subr.bf16.mxu0 %v4252_v12  ;;  %v4267_v27 = vld [vmem:[%s5956_s7 + $0xb0] sm:$0xff]   ;;  %v4271_v33 = vld [vmem:[%s5956_s7 + $0xb8] sm:$0xff]   ;;  %454 = vmatprep.mubr.bf16.mxu0 %v91_v32  ;;  %v4273_v42 = vld [vmem:[%s5956_s7 + $0x108] sm:$0xff]  }
  0x1e   :  { %3854 = vmatpush3.bf16.msra.mxu1 %v4251_v11  ;;  %v88_v36 = vld [vmem:[%s5957_s30 + $0x18] sm:$0xff]  ;;  %v87_v40 = vld [vmem:[%s5957_s30 + $0x10] sm:$0xff]  ;;  %v4276_v45 = vld [vmem:[%s5956_s7 + $0x120] sm:$0xff]  }
  0x1f   :  { %3855 = vmatprep.subr.bf16.mxu1 %v4254_v14  ;;  %v93_v38 = vpack.c.bf16 %v88_v36, %v88_v36  ;;  %v92_v41 = vpack.c.bf16 %v87_v40, %v87_v40  ;;  %v4274_v43 = vld [vmem:[%s5956_s7 + $0x110] sm:$0xff]   ;;  %v4275_v44 = vld [vmem:[%s5956_s7 + $0x118] sm:$0xff]   ;;  %v4277_v46 = vld [vmem:[%s5956_s7 + $0x128] sm:$0xff]  }
  0x20   :  { %3834 = vmatpush3.bf16.msra.mxu0 %v4253_v13  ;;  %v4278_v47 = vld [vmem:[%s5956_s7 + $0x130] sm:$0xff]   ;;  %v4279_v48 = vld [vmem:[%s5956_s7 + $0x138] sm:$0xff]   ;;  %v89_v49 = vld [vmem:[%s5957_s30 + $0x20] sm:$0xff]  ;;  %s5959_s7 = sld [smem:[#allocation11_spill]] }
  0x21   :  { %3835 = vmatprep.subr.bf16.mxu0 %v4256_v16  ;;  %494 = vmatprep.mubr.bf16.mxu1 %v93_v38  ;;  %v94_v50 = vpack.c.bf16 %v89_v49, %v89_v49  ;;  %v4280_v51 = vld [vmem:[%s5958_s10] sm:$0xff]   ;;  %v4281_v52 = vld [vmem:[%s5958_s10 + $0x8] sm:$0xff]   ;;  %v4282_v53 = vld [vmem:[%s5958_s10 + $0x10] sm:$0xff]  }
  0x22   :  { %3856 = vmatpush3.bf16.msra.mxu1 %v4255_v15  ;;  %v4283_v54 = vld [vmem:[%s5958_s10 + $0x18] sm:$0xff]   ;;  %v4284_v55 = vld [vmem:[%s5958_s10 + $0x20] sm:$0xff]   ;;  %v4285_v56 = vld [vmem:[%s5958_s10 + $0x28] sm:$0xff]  }
  0x23   :  { %3857 = vmatprep.subr.bf16.mxu1 %v4258_v18  ;;  %v4286_v57 = vld [vmem:[%s5958_s10 + $0x30] sm:$0xff]   ;;  %v4287_v58 = vld [vmem:[%s5958_s10 + $0x38] sm:$0xff]  }
  0x24   :  { %3836 = vmatpush3.bf16.msra.mxu0 %v4257_v17 }
  0x25   :  { %3837 = vmatprep.subr.bf16.mxu0 %v4260_v20 }
  0x26   :  { %3858 = vmatpush3.bf16.msra.mxu1 %v4259_v19  ;;  %v4288_v59 = vld [vmem:[%s5959_s7] ss:$12 sps:$4 sm:$0xff]   ;;  %v4290_v60 = vld [vmem:[%s5959_s7 + $0x4] ss:$12 sps:$4 sm:$0xff]   ;;  %v4294_v61 = vld [vmem:[%s5959_s7 + $0x1c] ss:$12 sps:$4 sm:$0xff]  }
  0x27   :  { %3859 = vmatprep.subr.bf16.mxu1 %v4262_v22  ;;  %v4292_v62 = vld [vmem:[%s5959_s7 + $0x18] ss:$12 sps:$4 sm:$0xff]   ;;  %v4298_v63 = vld [vmem:[%s5959_s7 + $0x34] ss:$12 sps:$4 sm:$0xff]   ;;  %v4296_v0 = vld [vmem:[%s5959_s7 + $0x30] ss:$12 sps:$4 sm:$0xff]  }
  0x28   :  { %3838 = vmatpush3.bf16.msra.mxu0 %v4261_v21  ;;  %v4302_v1 = vld [vmem:[%s5959_s7 + $0x4c] ss:$12 sps:$4 sm:$0xff]   ;;  %v4300_v2 = vld [vmem:[%s5959_s7 + $0x48] ss:$12 sps:$4 sm:$0xff]   ;;  %v4306_v3 = vld [vmem:[%s5959_s7 + $0x64] ss:$12 sps:$4 sm:$0xff]  }
  0x29   :  { %3839 = vmatprep.subr.bf16.mxu0 %v4264_v24  ;;  %v4304_v4 = vld [vmem:[%s5959_s7 + $0x60] ss:$12 sps:$4 sm:$0xff]   ;;  %v4310_v5 = vld [vmem:[%s5959_s7 + $0x7c] ss:$12 sps:$4 sm:$0xff]   ;;  %v4308_v6 = vld [vmem:[%s5959_s7 + $0x78] ss:$12 sps:$4 sm:$0xff]  }
  0x2a   :  { %3860 = vmatpush3.bf16.msra.mxu1 %v4263_v23  ;;  %v4314_v7 = vld [vmem:[%s5959_s7 + $0x94] ss:$12 sps:$4 sm:$0xff]  }
  0x2b   :  { %3861 = vmatprep.subr.bf16.mxu1 %v4266_v26 }
  0x2c   :  { %3840 = vmatpush3.bf16.msra.mxu0 %v4265_v25 }
  0x2d   :  { %3841 = vmatprep.subr.bf16.mxu0 %v4268_v28 }
  0x2e   :  { %3862 = vmatpush3.bf16.msra.mxu1 %v4267_v27 }
  0x2f   :  { %3863 = vmatprep.subr.bf16.mxu1 %v4270_v30 }
  0x30   :  { %3842 = vmatpush3.bf16.msra.mxu0 %v4269_v29 }
  0x31   :  { %4039 = vmatprep.subr.bf16.mxu0 %v4656_v35 }
  0x32   :  { %3864 = vmatpush3.bf16.msra.mxu1 %v4271_v33 }
  0x33   :  { %455 = vmatmul.mubr.bf16.vlgmr.msra.gmra.mrb[0].mxu0 %v90_v37  ;;  %4059 = vmatprep.subr.bf16.mxu1 %v4656_v35 }
  0x34   :  { %4040 = vmatpush3.bf16.msra.mxu0 %v4272_v39  ;;  %4055 = vmatprep.mubr.msk.bf16.mxu0 %vm4657_vm0, %v4656_v35 }
  0x35   :  { %495 = vmatmul.mubr.bf16.vlgmr.msra.gmra.mrb[0].mxu1 %v92_v41  ;;  %4041 = vmatprep.subr.bf16.mxu0 %v4656_v35 }
  0x36   :  { %4075 = vmatprep.mubr.msk.bf16.mxu1 %vm4657_vm0, %v4656_v35  ;;  %4060 = vmatpush3.bf16.msra.mxu1 %v4280_v51 }
  0x37   :  { %4061 = vmatprep.subr.bf16.mxu1 %v4656_v35 }
  0x38   :  { %4042 = vmatpush3.bf16.msra.mxu0 %v4273_v42 }
  0x39   :  { %4043 = vmatprep.subr.bf16.mxu0 %v4656_v35 }
  0x3a   :  { %4062 = vmatpush3.bf16.msra.mxu1 %v4281_v52 }
  0x3b   :  { %4063 = vmatprep.subr.bf16.mxu1 %v4656_v35 }
  0x3c   :  { %4044 = vmatpush3.bf16.msra.mxu0 %v4274_v43 }
  0x3d   :  { %4045 = vmatprep.subr.bf16.mxu0 %v4656_v35 }
  0x3e   :  { %4064 = vmatpush3.bf16.msra.mxu1 %v4282_v53 }
  0x3f   :  { %4065 = vmatprep.subr.bf16.mxu1 %v4656_v35 }
  0x40   :  { %4046 = vmatpush3.bf16.msra.mxu0 %v4275_v44 }
  0x41   :  { %4047 = vmatprep.subr.bf16.mxu0 %v4656_v35 }
  0x42   :  { %4066 = vmatpush3.bf16.msra.mxu1 %v4283_v54 }
  0x43   :  { %4067 = vmatprep.subr.bf16.mxu1 %v4656_v35 }
  0x44   :  { %4048 = vmatpush3.bf16.msra.mxu0 %v4276_v45 }
  0x45   :  { %4049 = vmatprep.subr.bf16.mxu0 %v4656_v35 }
  0x46   :  { %4068 = vmatpush3.bf16.msra.mxu1 %v4284_v55 }
  0x47   :  { %4069 = vmatprep.subr.bf16.mxu1 %v4656_v35 }
  0x48   :  { %4050 = vmatpush3.bf16.msra.mxu0 %v4277_v46 }
  0x49   :  { %4051 = vmatprep.subr.bf16.mxu0 %v4656_v35 }
  0x4a   :  { %4070 = vmatpush3.bf16.msra.mxu1 %v4285_v56 }
  0x4b   :  { %4071 = vmatprep.subr.bf16.mxu1 %v4656_v35 }
  0x4c   :  { %4052 = vmatpush3.bf16.msra.mxu0 %v4278_v47 }
  0x4d   :  { %4053 = vmatprep.subr.bf16.mxu0 %v4656_v35 }
  0x4e   :  { %4072 = vmatpush3.bf16.msra.mxu1 %v4286_v57 }
  0x4f   :  { %4073 = vmatprep.subr.bf16.mxu1 %v4656_v35 }
  0x50   :  { %4054 = vmatpush3.bf16.msra.mxu0 %v4279_v48 }
  0x51   :  { %834 = vmatprep.subr.bf16.mxu0 %v4290_v60 }
  0x52   :  { %4074 = vmatpush3.bf16.msra.mxu1 %v4287_v58 }
  0x53   :  { %4056 = vmatmul.mubr.bf16.vlgmr.msra.gmra.mrb[4].mxu0 %v94_v50  ;;  %4079 = vmatprep.subr.bf16.mxu1 %v4656_v35 }
  0x54   :  { %835 = vmatpush1.bf16.msra.mxu0 %v4288_v59 }
  0x55   :  { %836 = vmatprep.subr.bf16.mxu0 %v4294_v61 }
  0x58   :  { %837 = vmatpush1.bf16.msra.mxu0 %v4292_v62 }
  0x59   :  { %838 = vmatprep.subr.bf16.mxu0 %v4298_v63 }
  0x5c   :  { %839 = vmatpush1.bf16.msra.mxu0 %v4296_v0 }
  0x5d   :  { %840 = vmatprep.subr.bf16.mxu0 %v4302_v1 }
  0x60   :  { %841 = vmatpush1.bf16.msra.mxu0 %v4300_v2 }
  0x61   :  { %842 = vmatprep.subr.bf16.mxu0 %v4306_v3 }
  0x64   :  { %843 = vmatpush1.bf16.msra.mxu0 %v4304_v4 }
  0x65   :  { %844 = vmatprep.subr.bf16.mxu0 %v4310_v5 }
  0x66   :  { %33 = vsyncpa [#allocation5], 0  ;;  %v4312_v8 = vld [vmem:[%s5959_s7 + $0x90] ss:$12 sps:$4 sm:$0xff]   ;;  %v3510_v10 = vld [vmem:[%s5920_s13] ss:$0 sm:$0xff] }
  0x67   :  { %v4291_v28 = vld [vmem:[%s5959_s7 + $0x8] ss:$12 sps:$4 sm:$0xff]   ;;  %v4295_v30 = vld [vmem:[%s5959_s7 + $0x20] ss:$12 sps:$4 sm:$0xff]   ;;  %v4299_v31 = vld [vmem:[%s5959_s7 + $0x38] ss:$12 sps:$4 sm:$0xff]  }
  0x68   :  { %845 = vmatpush1.bf16.msra.mxu0 %v4308_v6  ;;  %v4303_v32 = vld [vmem:[%s5959_s7 + $0x50] ss:$12 sps:$4 sm:$0xff]   ;;  %v4307_v33 = vld [vmem:[%s5959_s7 + $0x68] ss:$12 sps:$4 sm:$0xff]   ;;  %v4311_v34 = vld [vmem:[%s5959_s7 + $0x80] ss:$12 sps:$4 sm:$0xff]  }
  0x69   :  { %846 = vmatprep.subr.bf16.mxu0 %v4314_v7  ;;  %v4315_v36 = vld [vmem:[%s5959_s7 + $0x98] ss:$12 sps:$4 sm:$0xff]   ;;  %v4316_v38 = vld [vmem:[%s5959_s7 + $0xa8] ss:$12 sps:$4 sm:$0xff]   ;;  %v4319_v39 = vld [vmem:[%s5959_s7 + $0xb0] ss:$12 sps:$4 sm:$0xff]  }
  0x6a   :  { %v4318_v37 = vld [vmem:[%s5959_s7 + $0xac] ss:$12 sps:$4 sm:$0xff]   ;;  %v4658_v40 = vmov 0   ;;  %s5960_s10 = sld [smem:[#allocation12_spill]]  ;;  %v3551_v43 = vld [vmem:[%s5921_s14] ss:$0 sm:$0xff] }
  0x6b   :  { %866 = vmatprep.mubr.bf16.mxu0 %v4658_v40  ;;  %s5961_s14 = sld [smem:[#allocation13_spill]]  ;;  %vm1338_vm1 = vcmask 523264   ;;  %s5962_s29 = sld [smem:[#allocation15_spill]]  ;;  %vm1844_vm2 = vcmask 261120  }
  0x6c   :  { %847 = vmatpush1.bf16.msra.mxu0 %v4312_v8  ;;  %s5963_s2 = sld [smem:[#allocation14_spill]]  ;;  %s5965_s6 = sld [smem:[#allocation17_spill]] }
  0x6d   :  { %848 = vmatprep.subr.bf16.mxu0 %v4318_v37  ;;  %s4659_s0 = smov [#allocation4]  }
  0x6e   :  { %s3498_s9 = sshll.u32 %s4659_s0, 4  ;;  %s3499_s9 = int_to_ptr.vmem [resolvable:$true] %s3498_s9 }
  0x6f   :  { %p4613_p1 = scmp.lt.s32.totalorder %s3499_s9, %s3499_s9 }
  0x70   :  { %849 = vmatpush1.bf16.msra.mxu0 %v4316_v38  ;;  %v4322_v41 = vld [vmem:[%s5960_s10 + $0x4] ss:$12 sps:$4 sm:$0xff]   ;;  %v4347_v42 = vld [vmem:[%s5960_s10 + $0xc8] ss:$12 sps:$4 sm:$0xff]   ;;  %v4320_v50 = vld [vmem:[%s5960_s10] ss:$12 sps:$4 sm:$0xff]  }
  0x71   :  { %1342 = vmatprep.subr.bf16.mxu0 %v4322_v41  ;;  %v4348_v51 = vld [vmem:[%s5960_s10 + $0x8] ss:$12 sps:$4 sm:$0xff]   ;;  %v4352_v54 = vld [vmem:[%s5960_s10 + $0xe0] ss:$12 sps:$4 sm:$0xff]   ;;  %v4323_v55 = vld [vmem:[%s5960_s10 + $0x18] ss:$12 sps:$4 sm:$0xff]  }
  0x72   :  { %v4325_v53 = vld [vmem:[%s5960_s10 + $0x1c] ss:$12 sps:$4 sm:$0xff]   ;;  %v4353_v56 = vld [vmem:[%s5960_s10 + $0x20] ss:$12 sps:$4 sm:$0xff]   ;;  %v4357_v58 = vld [vmem:[%s5960_s10 + $0xf8] ss:$12 sps:$4 sm:$0xff]  }
  0x73   :  { %v4328_v57 = vld [vmem:[%s5960_s10 + $0x34] ss:$12 sps:$4 sm:$0xff]   ;;  %v4326_v59 = vld [vmem:[%s5960_s10 + $0x30] ss:$12 sps:$4 sm:$0xff]   ;;  %v4358_v60 = vld [vmem:[%s5960_s10 + $0x38] ss:$12 sps:$4 sm:$0xff]  }
  0x74   :  { %v4331_v61 = vld [vmem:[%s5960_s10 + $0x4c] ss:$12 sps:$4 sm:$0xff]   ;;  %v4362_v62 = vld [vmem:[%s5960_s10 + $0x110] ss:$12 sps:$4 sm:$0xff]   ;;  %v4329_v63 = vld [vmem:[%s5960_s10 + $0x48] ss:$12 sps:$4 sm:$0xff]  }
  0x75   :  { %v4363_v0 = vld [vmem:[%s5960_s10 + $0x50] ss:$12 sps:$4 sm:$0xff]   ;;  %v4367_v2 = vld [vmem:[%s5960_s10 + $0x128] ss:$12 sps:$4 sm:$0xff]   ;;  %v4332_v3 = vld [vmem:[%s5960_s10 + $0x60] ss:$12 sps:$4 sm:$0xff]  }
  0x76   :  { %v4334_v1 = vld [vmem:[%s5960_s10 + $0x64] ss:$12 sps:$4 sm:$0xff]   ;;  %v4368_v4 = vld [vmem:[%s5960_s10 + $0x68] ss:$12 sps:$4 sm:$0xff]   ;;  %v4372_v6 = vld [vmem:[%s5960_s10 + $0x140] ss:$12 sps:$4 sm:$0xff]  }
  0x77   :  { %v4337_v5 = vld [vmem:[%s5960_s10 + $0x7c] ss:$12 sps:$4 sm:$0xff]   ;;  %v4335_v7 = vld [vmem:[%s5960_s10 + $0x78] ss:$12 sps:$4 sm:$0xff]   ;;  %v4373_v8 = vld [vmem:[%s5960_s10 + $0x80] ss:$12 sps:$4 sm:$0xff]  }
  0x78   :  { %v689_v38 = vld [vmem:[%s5922_s15] sm:$0x7] }
 0x106   :  { %v3843_v9 = vpop.f32.mrb[0].mxu0 }
 0x107   :  { %v3844_v11 = vpop.f32.mrb[1].mxu0 }
 0x108   :  { %v3845_v12 = vadd.f32 %v3844_v11, %v3843_v9  ;;  %v3846_v13 = vpop.f32.mrb[2].mxu0  ;;  %v3865_v14 = vpop.f32.mrb[0].mxu1  ;;  %v4340_v9 = vld [vmem:[%s5960_s10 + $0x94] ss:$12 sps:$4 sm:$0xff]   ;;  %v4343_v11 = vld [vmem:[%s5960_s10 + $0xac] ss:$12 sps:$4 sm:$0xff]  }
 0x109   :  { %v3847_v15 = vpop.f32.mrb[3].mxu0  ;;  %v3866_v16 = vpop.f32.mrb[1].mxu1  ;;  %v4346_v13 = vld [vmem:[%s5960_s10 + $0xc4] ss:$12 sps:$4 sm:$0xff]  }
 0x10a   :  { %v457_v17 = vadd.f32 %v3845_v12, %v3510_v10  ;;  %v3867_v18 = vadd.f32 %v3866_v16, %v3865_v14  ;;  %v3868_v19 = vpop.f32.mrb[2].mxu1  ;;  %v4338_v10 = vld [vmem:[%s5960_s10 + $0x90] ss:$12 sps:$4 sm:$0xff]   ;;  %v4341_v12 = vld [vmem:[%s5960_s10 + $0xa8] ss:$12 sps:$4 sm:$0xff]  }
 0x10b   :  { %v3869_v20 = vpop.f32.mrb[3].mxu1  ;;  %v4344_v14 = vld [vmem:[%s5960_s10 + $0xc0] ss:$12 sps:$4 sm:$0xff]   ;;  %v4351_v15 = vld [vmem:[%s5960_s10 + $0xdc] ss:$12 sps:$4 sm:$0xff]  }
 0x10c   :  { %v497_v21 = vadd.f32 %v3867_v18, %v457_v17  ;;  %v4349_v16 = vld [vmem:[%s5960_s10 + $0xd8] ss:$12 sps:$4 sm:$0xff]   ;;  %v4356_v17 = vld [vmem:[%s5960_s10 + $0xf4] ss:$12 sps:$4 sm:$0xff]   ;;  %v4354_v18 = vld [vmem:[%s5960_s10 + $0xf0] ss:$12 sps:$4 sm:$0xff]  }
 0x10d   :  { %v4361_v19 = vld [vmem:[%s5960_s10 + $0x10c] ss:$12 sps:$4 sm:$0xff]   ;;  %v4359_v20 = vld [vmem:[%s5960_s10 + $0x108] ss:$12 sps:$4 sm:$0xff]  }
 0x126   :  { %v536_v22 = vpop.f32.mrb[4].mxu0 }
 0x127   :  { %v537_v23 = vadd.f32 %v536_v22, %v497_v21  ;;  %v4057_v24 = vpop.f32.mrb[5].mxu0  ;;  %v4366_v21 = vld [vmem:[%s5960_s10 + $0x124] ss:$12 sps:$4 sm:$0xff]   ;;  %v4364_v22 = vld [vmem:[%s5960_s10 + $0x120] ss:$12 sps:$4 sm:$0xff]  }
 0x128   :  { %v539_v25 = vpop.f32.mrb[6].mxu0  ;;  %v4369_v24 = vld [vmem:[%s5960_s10 + $0x138] ss:$12 sps:$4 sm:$0xff]  }
 0x129   :  { %v542_v26 = vmax.f32 %v537_v23, 0.0  ;;  %v4058_v27 = vpop.f32.mrb[7].mxu0  ;;  %v4371_v23 = vld [vmem:[%s5960_s10 + $0x13c] ss:$12 sps:$4 sm:$0xff]   ;;  %v4376_v25 = vld [vmem:[%s5960_s10 + $0x154] ss:$12 sps:$4 sm:$0xff]  }
 0x12a   :  { %v4374_v27 = vld [vmem:[%s5960_s10 + $0x150] ss:$12 sps:$4 sm:$0xff]  }
 0x12b   :  { %v543_v29 = vpack.c.bf16 %v542_v26, %v542_v26  ;;  %v4377_v26 = vld [vmem:[%s5960_s10 + $0x158] ss:$12 sps:$4 sm:$0xff]  }
 0x12d   :  { %4076 = vmatmul.mubr.bf16.vlgmr.msra.gmra.mrb[4].mxu1 %v543_v29  ;;  %v4381_v29 = vld [vmem:[%s5960_s10 + $0x16c] ss:$12 sps:$4 sm:$0xff]  }
 0x12e   :  { %4080 = vmatpush3.bf16.msra.mxu1 %v4291_v28  ;;  %4095 = vmatprep.mubr.msk.bf16.mxu1 %vm4657_vm0, %v4656_v35  ;;  %v4378_v28 = vld [vmem:[%s5960_s10 + $0x98] ss:$12 sps:$4 sm:$0xff]  }
 0x12f   :  { %4081 = vmatprep.subr.bf16.mxu1 %v4656_v35 }
 0x132   :  { %4082 = vmatpush3.bf16.msra.mxu1 %v4295_v30  ;;  %v4382_v30 = vld [vmem:[%s5960_s10 + $0x170] ss:$12 sps:$4 sm:$0xff]  }
 0x133   :  { %4083 = vmatprep.subr.bf16.mxu1 %v4656_v35 }
 0x136   :  { %4084 = vmatpush3.bf16.msra.mxu1 %v4299_v31  ;;  %v4379_v31 = vld [vmem:[%s5960_s10 + $0x168] ss:$12 sps:$4 sm:$0xff]  }
 0x137   :  { %4085 = vmatprep.subr.bf16.mxu1 %v4656_v35 }
 0x13a   :  { %4086 = vmatpush3.bf16.msra.mxu1 %v4303_v32  ;;  %v4383_v32 = vld [vmem:[%s5960_s10 + $0xb0] ss:$12 sps:$4 sm:$0xff]  }
 0x13b   :  { %4087 = vmatprep.subr.bf16.mxu1 %v4656_v35 }
 0x13e   :  { %4088 = vmatpush3.bf16.msra.mxu1 %v4307_v33  ;;  %v4386_v33 = vld [vmem:[%s5960_s10 + $0x184] ss:$12 sps:$4 sm:$0xff]  }
 0x13f   :  { %4089 = vmatprep.subr.bf16.mxu1 %v4656_v35 }
 0x142   :  { %4090 = vmatpush3.bf16.msra.mxu1 %v4311_v34  ;;  %v691_v34 = vlaneseq }
 0x143   :  { %4091 = vmatprep.subr.bf16.mxu1 %v4656_v35 }
 0x146   :  { %4092 = vmatpush3.bf16.msra.mxu1 %v4315_v36  ;;  %v5212_v36 = vshrl.u32 %v691_v34, 7  ;;  %v1001_v34 = vld [vmem:[%s5923_s16] sm:$0x7] }
 0x147   :  { %4093 = vmatprep.subr.bf16.mxu1 %v4656_v35 }
 0x148   :  { %v5215_v37 = vsub.s32 0, %v5212_v36 }
 0x14a   :  { %4094 = vmatpush3.bf16.msra.mxu1 %v4319_v39  ;;  %v5221_v39 = vsub.s32 1, %v5212_v36  ;;  %v694_v41 = vrot.slane %v689_v38, %v5215_v37 }
 0x14b   :  { %3898 = vmatprep.subr.bf16.mxu1 %v4347_v42 }
 0x14c   :  { %v698_v42 = vrot.slane %v689_v38, %v5221_v39 }
 0x200   :  { %v649_v44 = vpop.f32.mrb[4].mxu1 }
 0x201   :  { %v650_v45 = vadd.f32 %v3551_v43, %v649_v44  ;;  %v4077_v46 = vpop.f32.mrb[5].mxu1 }
 0x202   :  { %v652_v47 = vpop.f32.mrb[6].mxu1 }
 0x203   :  { %v655_v48 = vmax.f32 %v650_v45, 0.0  ;;  %v4078_v49 = vpop.f32.mrb[7].mxu1 }
 0x205   :  { %v656_v52 = vpack.c.bf16 %v655_v48, %v655_v48 }
 0x207   :  { %867 = vmatmul.mubr.bf16.vlgmr.msra.gmra.mrb[8].mxu0 %v656_v52  ;;  %4096 = vmatmul.mubr.bf16.vlgmr.msra.gmra.mrb[8].mxu1 %v656_v52 }
 0x208   :  { %1343 = vmatpush1.bf16.msra.mxu0 %v4320_v50  ;;  %3899 = vmatpush3.bf16.msra.mxu1 %v4348_v51 }
 0x209   :  { %1344 = vmatprep.subr.bf16.mxu0 %v4325_v53  ;;  %3900 = vmatprep.subr.bf16.mxu1 %v4352_v54 }
 0x20c   :  { %1345 = vmatpush1.bf16.msra.mxu0 %v4323_v55  ;;  %3901 = vmatpush3.bf16.msra.mxu1 %v4353_v56  ;;  %v4384_v56 = vld [vmem:[%s5960_s10 + $0x180] ss:$12 sps:$4 sm:$0xff]  }
 0x20d   :  { %1346 = vmatprep.subr.bf16.mxu0 %v4328_v57  ;;  %3902 = vmatprep.subr.bf16.mxu1 %v4357_v58  ;;  %v4387_v57 = vld [vmem:[%s5960_s10 + $0x188] ss:$12 sps:$4 sm:$0xff]  }
 0x210   :  { %1347 = vmatpush1.bf16.msra.mxu0 %v4326_v59  ;;  %3903 = vmatpush3.bf16.msra.mxu1 %v4358_v60  ;;  %v5232_v59 = vsub.s32 2, %v5212_v36  ;;  %v4390_v60 = vld [vmem:[%s5960_s10 + $0x19c] ss:$12 sps:$4 sm:$0xff]  }
 0x211   :  { %1348 = vmatprep.subr.bf16.mxu0 %v4331_v61  ;;  %3904 = vmatprep.subr.bf16.mxu1 %v4362_v62  ;;  %v4388_v61 = vld [vmem:[%s5960_s10 + $0x198] ss:$12 sps:$4 sm:$0xff]   ;;  %v4391_v62 = vld [vmem:[%s5960_s10 + $0x1a0] ss:$12 sps:$4 sm:$0xff]  }
 0x214   :  { %1349 = vmatpush1.bf16.msra.mxu0 %v4329_v63  ;;  %3905 = vmatpush3.bf16.msra.mxu1 %v4363_v0  ;;  %v702_v63 = vrot.slane %v689_v38, %v5232_v59  ;;  %v4394_v0 = vld [vmem:[%s5960_s10 + $0x1b4] ss:$12 sps:$4 sm:$0xff]   ;;  %v1014_v38 = vrot.slane %v1001_v34, %v5232_v59 }
 0x215   :  { %1350 = vmatprep.subr.bf16.mxu0 %v4334_v1  ;;  %3906 = vmatprep.subr.bf16.mxu1 %v4367_v2  ;;  %v4392_v1 = vld [vmem:[%s5960_s10 + $0x1b0] ss:$12 sps:$4 sm:$0xff]   ;;  %v4395_v2 = vld [vmem:[%s5960_s10 + $0x1b8] ss:$12 sps:$4 sm:$0xff]  }
 0x218   :  { %1351 = vmatpush1.bf16.msra.mxu0 %v4332_v3  ;;  %3907 = vmatpush3.bf16.msra.mxu1 %v4368_v4  ;;  %v4398_v4 = vld [vmem:[%s5960_s10 + $0x1cc] ss:$12 sps:$4 sm:$0xff]  }
 0x219   :  { %1352 = vmatprep.subr.bf16.mxu0 %v4337_v5  ;;  %3908 = vmatprep.subr.bf16.mxu1 %v4372_v6  ;;  %v4396_v5 = vld [vmem:[%s5960_s10 + $0x1c8] ss:$12 sps:$4 sm:$0xff]   ;;  %v4399_v6 = vld [vmem:[%s5960_s10 + $0x1d0] ss:$12 sps:$4 sm:$0xff]  }
 0x21c   :  { %1353 = vmatpush1.bf16.msra.mxu0 %v4335_v7  ;;  %3909 = vmatpush3.bf16.msra.mxu1 %v4373_v8  ;;  %v4400_v8 = vld [vmem:[%s5961_s14 + $0x40] sm:$0xff]  }
 0x21d   :  { %1354 = vmatprep.subr.bf16.mxu0 %v4340_v9  ;;  %3910 = vmatprep.subr.bf16.mxu1 %v4377_v26  ;;  %v4401_v9 = vld [vmem:[%s5961_s14] sm:$0xff]   ;;  %v4417_v26 = vld [vmem:[%s5961_s14 + $0x98] sm:$0xff]  }
 0x220   :  { %1355 = vmatpush1.bf16.msra.mxu0 %v4338_v10  ;;  %3911 = vmatpush3.bf16.msra.mxu1 %v4378_v28  ;;  %v4419_v28 = vld [vmem:[%s5961_s14 + $0x38] sm:$0xff]  }
 0x221   :  { %1356 = vmatprep.subr.bf16.mxu0 %v4343_v11  ;;  %3912 = vmatprep.subr.bf16.mxu1 %v4382_v30  ;;  %v4402_v11 = vld [vmem:[%s5961_s14 + $0x48] sm:$0xff]  }
 0x224   :  { %1357 = vmatpush1.bf16.msra.mxu0 %v4341_v12  ;;  %3913 = vmatpush3.bf16.msra.mxu1 %v4383_v32  ;;  %v4403_v12 = vld [vmem:[%s5961_s14 + $0x8] sm:$0xff]  }
 0x225   :  { %1358 = vmatprep.subr.bf16.mxu0 %v4346_v13  ;;  %4099 = vmatprep.subr.bf16.mxu1 %v4656_v35  ;;  %v4404_v13 = vld [vmem:[%s5961_s14 + $0x50] sm:$0xff]  }
 0x228   :  { %1359 = vmatpush1.bf16.msra.mxu0 %v4344_v14  ;;  %v4405_v14 = vld [vmem:[%s5961_s14 + $0x10] sm:$0xff]  }
 0x229   :  { %1360 = vmatprep.subr.bf16.mxu0 %v4351_v15  ;;  %v4406_v15 = vld [vmem:[%s5961_s14 + $0x58] sm:$0xff]  }
 0x22c   :  { %1361 = vmatpush1.bf16.msra.mxu0 %v4349_v16  ;;  %v4407_v16 = vld [vmem:[%s5961_s14 + $0x18] sm:$0xff]  }
 0x22d   :  { %1362 = vmatprep.subr.bf16.mxu0 %v4356_v17  ;;  %v4408_v17 = vld [vmem:[%s5961_s14 + $0x80] sm:$0xff]  }
 0x230   :  { %1363 = vmatpush1.bf16.msra.mxu0 %v4354_v18  ;;  %v4409_v18 = vld [vmem:[%s5961_s14 + $0x60] sm:$0xff]  }
 0x231   :  { %1364 = vmatprep.subr.bf16.mxu0 %v4361_v19  ;;  %v4411_v19 = vld [vmem:[%s5961_s14 + $0x88] sm:$0xff]  }
 0x234   :  { %1365 = vmatpush1.bf16.msra.mxu0 %v4359_v20  ;;  %v4410_v20 = vld [vmem:[%s5961_s14 + $0x20] sm:$0xff]  }
 0x235   :  { %1366 = vmatprep.subr.bf16.mxu0 %v4366_v21  ;;  %v4412_v21 = vld [vmem:[%s5961_s14 + $0x68] sm:$0xff]  }
 0x238   :  { %1367 = vmatpush1.bf16.msra.mxu0 %v4364_v22  ;;  %v4413_v22 = vld [vmem:[%s5961_s14 + $0x28] sm:$0xff]  }
 0x239   :  { %1368 = vmatprep.subr.bf16.mxu0 %v4371_v23  ;;  %v4414_v23 = vld [vmem:[%s5961_s14 + $0x90] sm:$0xff]  }
 0x23c   :  { %1369 = vmatpush1.bf16.msra.mxu0 %v4369_v24  ;;  %v4415_v24 = vld [vmem:[%s5961_s14 + $0x70] sm:$0xff]  }
 0x23d   :  { %1370 = vmatprep.subr.bf16.mxu0 %v4376_v25  ;;  %v4416_v25 = vld [vmem:[%s5961_s14 + $0x30] sm:$0xff]  }
 0x240   :  { %1371 = vmatpush1.bf16.msra.mxu0 %v4374_v27  ;;  %v4418_v27 = vld [vmem:[%s5961_s14 + $0x78] sm:$0xff]   ;;  %s5964_s14 = sld [smem:[#allocation16_spill]] }
 0x241   :  { %1372 = vmatprep.subr.bf16.mxu0 %v4381_v29 }
 0x244   :  { %1373 = vmatpush1.bf16.msra.mxu0 %v4379_v31 }
 0x245   :  { %1383 = vmatprep.subr.bf16.mxu0 %v4386_v33 }
 0x2da   :  { %v868_v43 = vpop.f32.mrb[8].mxu0  ;;  %v909_v44 = vpop.f32.mrb[8].mxu1 }
 0x2db   :  { %v869_v45 = vadd.f32 %v868_v43, %v694_v41  ;;  %v870_v46 = vpop.f32.mrb[9].mxu0  ;;  %v4097_v47 = vpop.f32.mrb[9].mxu1  ;;  %v910_v3 = vadd.f32 %v909_v44, %v702_v63  ;;  %v1006_v41 = vrot.slane %v1001_v34, %v5215_v37 }
 0x2dc   :  { %v871_v48 = vadd.f32 %v870_v46, %v698_v42  ;;  %v872_v49 = vpop.f32.mrb[10].mxu0  ;;  %v912_v50 = vpop.f32.mrb[10].mxu1  ;;  %v1010_v42 = vrot.slane %v1001_v34, %v5221_v39  ;;  %v3668_v34 = vld [vmem:[%s5925_s18] ss:$0 sm:$0xff] }
 0x2dd   :  { %v915_v51 = vmax.f32 %v869_v45, 0.0  ;;  %v873_v52 = vpop.f32.mrb[11].mxu0  ;;  %v4098_v53 = vpop.f32.mrb[11].mxu1  ;;  %v917_v7 = vmax.f32 %v910_v3, 0.0  ;;  %v4425_v3 = vld [vmem:[%s5962_s29 + $0x10] sm:$0xff]  }
 0x2de   :  { %v916_v54 = vmax.f32 %v871_v48, 0.0 }
 0x2df   :  { %v918_v58 = vpack.c.bf16 %v915_v51, %v915_v51  ;;  %v920_v10 = vpack.c.bf16 %v917_v7, %v917_v7 }
 0x2e0   :  { %v919_v55 = vpack.c.bf16 %v916_v54, %v916_v54 }
 0x2e2   :  { %1374 = vmatprep.mubr.bf16.mxu0 %v919_v55  ;;  %1456 = vmatprep.mubr.bf16.mxu1 %v919_v55 }
 0x2e3   :  { %1375 = vmatmul.mubr.bf16.vlgmr.msra.gmra.mrb[12].mxu0 %v918_v58  ;;  %1457 = vmatmul.mubr.bf16.vlgmr.msra.gmra.mrb[12].mxu1 %v918_v58  ;;  %v4421_v58 = vld [vmem:[%s5962_s29] sm:$0xff]  }
 0x2e4   :  { %1384 = vmatpush1.bf16.msra.mxu0 %v4384_v56  ;;  %4100 = vmatpush3.bf16.msra.mxu1 %v4387_v57 }
 0x2e5   :  { %1385 = vmatprep.subr.bf16.mxu0 %v4390_v60  ;;  %4101 = vmatprep.subr.bf16.mxu1 %v4656_v35 }
 0x2e6   :  { %1415 = vmatprep.mubr.bf16.mxu0 %v4658_v40  ;;  %4107 = vmatprep.mubr.msk.bf16.mxu1 %vm4657_vm0, %v4656_v35 }
 0x2e8   :  { %1386 = vmatpush1.bf16.msra.mxu0 %v4388_v61  ;;  %4102 = vmatpush3.bf16.msra.mxu1 %v4391_v62  ;;  %v4420_v62 = vld [vmem:[%s5963_s2] sm:$0xff]  }
 0x2e9   :  { %1387 = vmatprep.subr.bf16.mxu0 %v4394_v0  ;;  %4103 = vmatprep.subr.bf16.mxu1 %v4656_v35  ;;  %v4422_v0 = vld [vmem:[%s5963_s2 + $0x8] sm:$0xff]  }
 0x2ec   :  { %1388 = vmatpush1.bf16.msra.mxu0 %v4392_v1  ;;  %4104 = vmatpush3.bf16.msra.mxu1 %v4395_v2  ;;  %v4423_v1 = vld [vmem:[%s5962_s29 + $0x8] sm:$0xff]   ;;  %v4424_v2 = vld [vmem:[%s5963_s2 + $0x10] sm:$0xff]  }
 0x2ed   :  { %1389 = vmatprep.subr.bf16.mxu0 %v4398_v4  ;;  %4105 = vmatprep.subr.bf16.mxu1 %v4656_v35  ;;  %v4426_v4 = vld [vmem:[%s5963_s2 + $0x18] sm:$0xff]  }
 0x2f0   :  { %1390 = vmatpush1.bf16.msra.mxu0 %v4396_v5  ;;  %4106 = vmatpush3.bf16.msra.mxu1 %v4399_v6  ;;  %v4427_v5 = vld [vmem:[%s5962_s29 + $0x18] sm:$0xff]   ;;  %v4430_v6 = vld [vmem:[%s5964_s14 + $0x4] ss:$12 sps:$4 sm:$0xff]  }
 0x2f1   :  { %3925 = vmatprep.subr.bf16.mxu1 %v4400_v8  ;;  %4111 = vmatprep.subr.bf16.mxu0 %v4656_v35 }
 0x2f3   :  { %3644 = vmatmul.mubr.msk.bf16.vlgmr.msra.gmra.mrb[12].mxu0 %vm1338_vm1, %v920_v10  ;;  %4108 = vmatmul.mubr.msk.bf16.vlgmr.msra.gmra.mrb[16].mxu1 %vm1338_vm1, %v920_v10 }
 0x2f4   :  { %3926 = vmatpush3.bf16.msra.mxu1 %v4401_v9  ;;  %4119 = vmatprep.mubr.msk.bf16.mxu0 %vm4657_vm0, %v4656_v35 }
 0x2f5   :  { %3927 = vmatprep.subr.bf16.mxu1 %v4402_v11  ;;  %4112 = vmatpush3.bf16.msra.mxu0 %v4408_v17  ;;  %v3646_v11 = vld [vmem:[%s5924_s17] ss:$0 sm:$0xff] }
 0x2f6   :  { %4113 = vmatprep.subr.bf16.mxu0 %v4656_v35 }
 0x2f8   :  { %3928 = vmatpush3.bf16.msra.mxu1 %v4403_v12 }
 0x2f9   :  { %3929 = vmatprep.subr.bf16.mxu1 %v4404_v13  ;;  %4114 = vmatpush3.bf16.msra.mxu0 %v4411_v19 }
 0x2fa   :  { %4115 = vmatprep.subr.bf16.mxu0 %v4656_v35 }
 0x2fc   :  { %3930 = vmatpush3.bf16.msra.mxu1 %v4405_v14 }
 0x2fd   :  { %3931 = vmatprep.subr.bf16.mxu1 %v4406_v15  ;;  %4116 = vmatpush3.bf16.msra.mxu0 %v4414_v23  ;;  %v4434_v23 = vld [vmem:[%s5964_s14 + $0x1c] ss:$12 sps:$4 sm:$0xff]  }
 0x2fe   :  { %4117 = vmatprep.subr.bf16.mxu0 %v4656_v35 }
 0x300   :  { %3932 = vmatpush3.bf16.msra.mxu1 %v4407_v16 }
 0x301   :  { %3933 = vmatprep.subr.bf16.mxu1 %v4409_v18  ;;  %4118 = vmatpush3.bf16.msra.mxu0 %v4417_v26  ;;  %v4438_v26 = vld [vmem:[%s5964_s14 + $0x34] ss:$12 sps:$4 sm:$0xff]  }
 0x302   :  { %4135 = vmatprep.subr.bf16.mxu0 %v4656_v35 }
 0x304   :  { %3934 = vmatpush3.bf16.msra.mxu1 %v4410_v20  ;;  %v4428_v20 = vld [vmem:[%s5964_s14] ss:$12 sps:$4 sm:$0xff]  }
 0x305   :  { %3935 = vmatprep.subr.bf16.mxu1 %v4412_v21  ;;  %v4431_v21 = vld [vmem:[%s5964_s14 + $0x8] ss:$12 sps:$4 sm:$0xff]  }
 0x308   :  { %3936 = vmatpush3.bf16.msra.mxu1 %v4413_v22 }
 0x309   :  { %3937 = vmatprep.subr.bf16.mxu1 %v4415_v24  ;;  %v4432_v24 = vld [vmem:[%s5964_s14 + $0x18] ss:$12 sps:$4 sm:$0xff]  }
 0x30c   :  { %3938 = vmatpush3.bf16.msra.mxu1 %v4416_v25  ;;  %v4435_v25 = vld [vmem:[%s5964_s14 + $0x20] ss:$12 sps:$4 sm:$0xff]  }
 0x30d   :  { %3939 = vmatprep.subr.bf16.mxu1 %v4418_v27  ;;  %v4436_v27 = vld [vmem:[%s5964_s14 + $0x30] ss:$12 sps:$4 sm:$0xff]  }
 0x310   :  { %3940 = vmatpush3.bf16.msra.mxu1 %v4419_v28  ;;  %v4439_v28 = vld [vmem:[%s5964_s14 + $0x38] ss:$12 sps:$4 sm:$0xff]  }
 0x311   :  { %4123 = vmatprep.subr.bf16.mxu1 %v4656_v35 }
 0x3b6   :  { %v3914_v29 = vpop.f32.mrb[12].mxu1 }
 0x3b7   :  { %v3915_v30 = vpop.f32.mrb[13].mxu1 }
 0x3b8   :  { %v3916_v31 = vadd.f32 %v3915_v30, %v3914_v29  ;;  %v3917_v32 = vpop.f32.mrb[14].mxu1  ;;  %v4442_v29 = vld [vmem:[%s5964_s14 + $0x4c] ss:$12 sps:$4 sm:$0xff]   ;;  %v4440_v30 = vld [vmem:[%s5964_s14 + $0x48] ss:$12 sps:$4 sm:$0xff]  }
 0x3b9   :  { %v3918_v33 = vpop.f32.mrb[15].mxu1  ;;  %v4446_v32 = vld [vmem:[%s5965_s6 + $0x4] ss:$12 sps:$4 sm:$0xff]  }
 0x3ba   :  { %v1459_v43 = vadd.f32 %v3916_v31, %v1014_v38  ;;  %v4443_v31 = vld [vmem:[%s5964_s14 + $0x50] ss:$12 sps:$4 sm:$0xff]   ;;  %v4471_v33 = vld [vmem:[%s5965_s6 + $0xc8] ss:$12 sps:$4 sm:$0xff]   ;;  %v3674_v38 = vld [vmem:[%s5926_s19] ss:$0 sm:$0xff] }
 0x3c6   :  { %v1417_v44 = vpop.f32.mrb[12].mxu0  ;;  %v1498_v45 = vpop.f32.mrb[16].mxu1 }
 0x3c7   :  { %v4223_v46 = vadd.f32 %v1417_v44, %v1006_v41  ;;  %v1499_v47 = vadd.f32 %v1498_v45, %v1459_v43  ;;  %v1419_v48 = vpop.f32.mrb[13].mxu0  ;;  %v4109_v49 = vpop.f32.mrb[17].mxu1 }
 0x3c8   :  { %v4224_v50 = vadd.f32 %v1419_v48, %v1010_v42  ;;  %v1421_v51 = vpop.f32.mrb[14].mxu0  ;;  %v1501_v52 = vpop.f32.mrb[18].mxu1 }
 0x3c9   :  { %v1504_v53 = vmax.f32 %v4223_v46, 0.0  ;;  %v1506_v54 = vmax.f32 %v1499_v47, 0.0  ;;  %v1422_v55 = vpop.f32.mrb[15].mxu0  ;;  %v4110_v56 = vpop.f32.mrb[19].mxu1  ;;  %v4444_v52 = vld [vmem:[%s5965_s6] ss:$12 sps:$4 sm:$0xff]  }
 0x3ca   :  { %v1505_v57 = vmax.f32 %v4224_v50, 0.0  ;;  %v4449_v55 = vld [vmem:[%s5965_s6 + $0x1c] ss:$12 sps:$4 sm:$0xff]   ;;  %v4476_v56 = vld [vmem:[%s5965_s6 + $0xe0] ss:$12 sps:$4 sm:$0xff]  }
 0x3cb   :  { %v1509_v60 = vpack.c.bf16 %v1506_v54, %v1506_v54  ;;  %v1507_v63 = vpack.c.bf16 %v1504_v53, %v1504_v53  ;;  %v4472_v53 = vld [vmem:[%s5965_s6 + $0x8] ss:$12 sps:$4 sm:$0xff]  }
 0x3cc   :  { %v1508_v61 = vpack.c.bf16 %v1505_v57, %v1505_v57  ;;  %v4447_v57 = vld [vmem:[%s5965_s6 + $0x18] ss:$12 sps:$4 sm:$0xff]  }
 0x3cd   :  { %4120 = vmatmul.mubr.msk.bf16.vlgmr.msra.gmra.mrb[16].mxu0 %vm1338_vm1, %v1509_v60  ;;  %v4452_v60 = vld [vmem:[%s5965_s6 + $0x34] ss:$12 sps:$4 sm:$0xff]  }
 0x3ce   :  { %1712 = vmatprep.mubr.bf16.mxu1 %v1508_v61  ;;  %4136 = vmatpush3.bf16.msra.mxu0 %v4421_v58  ;;  %v4477_v58 = vld [vmem:[%s5965_s6 + $0x20] ss:$12 sps:$4 sm:$0xff]   ;;  %v4481_v61 = vld [vmem:[%s5965_s6 + $0xf8] ss:$12 sps:$4 sm:$0xff]  }
 0x3cf   :  { %1713 = vmatmul.mubr.bf16.vlgmr.msra.gmra.mrb[20].mxu1 %v1507_v63  ;;  %4137 = vmatprep.subr.bf16.mxu0 %v4656_v35  ;;  %v4482_v63 = vld [vmem:[%s5965_s6 + $0x38] ss:$12 sps:$4 sm:$0xff]  }
 0x3d0   :  { %4124 = vmatpush3.bf16.msra.mxu1 %v4420_v62  ;;  %4131 = vmatprep.mubr.msk.bf16.mxu1 %vm4657_vm0, %v4656_v35  ;;  %v4450_v62 = vld [vmem:[%s5965_s6 + $0x30] ss:$12 sps:$4 sm:$0xff]  }
 0x3d1   :  { %4125 = vmatprep.subr.bf16.mxu1 %v4656_v35  ;;  %4143 = vmatprep.mubr.msk.bf16.mxu0 %vm4657_vm0, %v4656_v35 }
 0x3d2   :  { %4138 = vmatpush3.bf16.msra.mxu0 %v4423_v1  ;;  %v4486_v1 = vld [vmem:[%s5965_s6 + $0x110] ss:$12 sps:$4 sm:$0xff]  }
 0x3d3   :  { %4139 = vmatprep.subr.bf16.mxu0 %v4656_v35 }
 0x3d4   :  { %4126 = vmatpush3.bf16.msra.mxu1 %v4422_v0  ;;  %v4455_v0 = vld [vmem:[%s5965_s6 + $0x4c] ss:$12 sps:$4 sm:$0xff]  }
 0x3d5   :  { %4127 = vmatprep.subr.bf16.mxu1 %v4656_v35 }
 0x3d6   :  { %4140 = vmatpush3.bf16.msra.mxu0 %v4425_v3  ;;  %v4487_v3 = vld [vmem:[%s5965_s6 + $0x50] ss:$12 sps:$4 sm:$0xff]  }
 0x3d7   :  { %4141 = vmatprep.subr.bf16.mxu0 %v4656_v35 }
 0x3d8   :  { %4128 = vmatpush3.bf16.msra.mxu1 %v4424_v2  ;;  %v4453_v2 = vld [vmem:[%s5965_s6 + $0x48] ss:$12 sps:$4 sm:$0xff]  }
 0x3d9   :  { %4129 = vmatprep.subr.bf16.mxu1 %v4656_v35 }
 0x3da   :  { %4142 = vmatpush3.bf16.msra.mxu0 %v4427_v5  ;;  %v4491_v5 = vld [vmem:[%s5965_s6 + $0x128] ss:$12 sps:$4 sm:$0xff]  }
 0x3db   :  { %4147 = vmatprep.subr.bf16.mxu0 %v4656_v35 }
 0x3dc   :  { %4130 = vmatpush3.bf16.msra.mxu1 %v4426_v4  ;;  %v4458_v4 = vld [vmem:[%s5965_s6 + $0x64] ss:$12 sps:$4 sm:$0xff]  }
 0x3dd   :  { %2027 = vmatprep.subr.bf16.mxu1 %v4430_v6  ;;  %v4456_v6 = vld [vmem:[%s5965_s6 + $0x60] ss:$12 sps:$4 sm:$0xff]  }
 0x4a0   :  { %v1754_v7 = vpop.f32.mrb[16].mxu0 }
 0x4a1   :  { %v4121_v8 = vpop.f32.mrb[17].mxu0 }
 0x4a2   :  { %v3941_v9 = vpop.f32.mrb[20].mxu1  ;;  %v1757_v10 = vpop.f32.mrb[18].mxu0  ;;  %v4461_v8 = vld [vmem:[%s5965_s6 + $0x7c] ss:$12 sps:$4 sm:$0xff]  }
 0x4a3   :  { %v3942_v12 = vpop.f32.mrb[21].mxu1  ;;  %v4122_v13 = vpop.f32.mrb[19].mxu0  ;;  %v4459_v10 = vld [vmem:[%s5965_s6 + $0x78] ss:$12 sps:$4 sm:$0xff]  }
 0x4a4   :  { %v3943_v14 = vadd.f32 %v3942_v12, %v3941_v9  ;;  %v3944_v15 = vpop.f32.mrb[22].mxu1  ;;  %v4496_v9 = vld [vmem:[%s5965_s6 + $0x140] ss:$12 sps:$4 sm:$0xff]   ;;  %v4462_v13 = vld [vmem:[%s5965_s6 + $0x90] ss:$12 sps:$4 sm:$0xff]  }
 0x4a5   :  { %v3945_v16 = vpop.f32.mrb[23].mxu1  ;;  %v4464_v12 = vld [vmem:[%s5965_s6 + $0x94] ss:$12 sps:$4 sm:$0xff]  }
 0x4a6   :  { %v1715_v17 = vadd.f32 %v3943_v14, %v3646_v11  ;;  %v4497_v11 = vld [vmem:[%s5965_s6 + $0x80] ss:$12 sps:$4 sm:$0xff]   ;;  %v4465_v15 = vld [vmem:[%s5965_s6 + $0xa8] ss:$12 sps:$4 sm:$0xff]   ;;  %v4470_v16 = vld [vmem:[%s5965_s6 + $0xc4] ss:$12 sps:$4 sm:$0xff]  }
 0x4a7   :  { %v4467_v14 = vld [vmem:[%s5965_s6 + $0xac] ss:$12 sps:$4 sm:$0xff]  }
 0x4a8   :  { %v1755_v18 = vadd.f32 %v1754_v7, %v1715_v17  ;;  %v4492_v7 = vld [vmem:[%s5965_s6 + $0x68] ss:$12 sps:$4 sm:$0xff]   ;;  %v4468_v17 = vld [vmem:[%s5965_s6 + $0xc0] ss:$12 sps:$4 sm:$0xff]  }
 0x4aa   :  { %v1760_v19 = vmax.f32 %v1755_v18, 0.0  ;;  %v4475_v18 = vld [vmem:[%s5965_s6 + $0xdc] ss:$12 sps:$4 sm:$0xff]  }
 0x4ac   :  { %v1761_v22 = vpack.c.bf16 %v1760_v19, %v1760_v19  ;;  %v4473_v19 = vld [vmem:[%s5965_s6 + $0xd8] ss:$12 sps:$4 sm:$0xff]  }
 0x4ae   :  { %4132 = vmatmul.mubr.msk.bf16.vlgmr.msra.gmra.mrb[24].mxu1 %vm1338_vm1, %v1761_v22  ;;  %4144 = vmatmul.mubr.msk.bf16.vlgmr.msra.gmra.mrb[20].mxu0 %vm1338_vm1, %v1761_v22  ;;  %v4485_v22 = vld [vmem:[%s5965_s6 + $0x10c] ss:$12 sps:$4 sm:$0xff]  }
 0x4af   :  { %2028 = vmatpush1.bf16.msra.mxu1 %v4428_v20  ;;  %4148 = vmatpush3.bf16.msra.mxu0 %v4431_v21  ;;  %v4480_v20 = vld [vmem:[%s5965_s6 + $0xf4] ss:$12 sps:$4 sm:$0xff]   ;;  %v4478_v21 = vld [vmem:[%s5965_s6 + $0xf0] ss:$12 sps:$4 sm:$0xff]  }
 0x4b0   :  { %2029 = vmatprep.subr.bf16.mxu1 %v4434_v23  ;;  %4149 = vmatprep.subr.bf16.mxu0 %v4656_v35  ;;  %v4483_v23 = vld [vmem:[%s5965_s6 + $0x108] ss:$12 sps:$4 sm:$0xff]  }
 0x4b1   :  { %2059 = vmatprep.mubr.bf16.mxu1 %v4658_v40  ;;  %4155 = vmatprep.mubr.msk.bf16.mxu0 %vm4657_vm0, %v4656_v35 }
 0x4b3   :  { %2030 = vmatpush1.bf16.msra.mxu1 %v4432_v24  ;;  %4150 = vmatpush3.bf16.msra.mxu0 %v4435_v25  ;;  %v4490_v24 = vld [vmem:[%s5965_s6 + $0x124] ss:$12 sps:$4 sm:$0xff]   ;;  %v4488_v25 = vld [vmem:[%s5965_s6 + $0x120] ss:$12 sps:$4 sm:$0xff]  }
 0x4b4   :  { %2031 = vmatprep.subr.bf16.mxu1 %v4438_v26  ;;  %4151 = vmatprep.subr.bf16.mxu0 %v4656_v35  ;;  %v4495_v26 = vld [vmem:[%s5965_s6 + $0x13c] ss:$12 sps:$4 sm:$0xff]  }
 0x4b7   :  { %2032 = vmatpush1.bf16.msra.mxu1 %v4436_v27  ;;  %4152 = vmatpush3.bf16.msra.mxu0 %v4439_v28  ;;  %v4493_v27 = vld [vmem:[%s5965_s6 + $0x138] ss:$12 sps:$4 sm:$0xff]   ;;  %v4500_v28 = vld [vmem:[%s5965_s6 + $0x154] ss:$12 sps:$4 sm:$0xff]  }
 0x4b8   :  { %4153 = vmatprep.subr.bf16.mxu0 %v4656_v35  ;;  %2033 = vmatprep.subr.bf16.mxu1 %v4442_v29  ;;  %v4501_v29 = vld [vmem:[%s5965_s6 + $0x158] ss:$12 sps:$4 sm:$0xff]  }
 0x4bb   :  { %2034 = vmatpush1.bf16.msra.mxu1 %v4440_v30  ;;  %4154 = vmatpush3.bf16.msra.mxu0 %v4443_v31  ;;  %v4498_v30 = vld [vmem:[%s5965_s6 + $0x150] ss:$12 sps:$4 sm:$0xff]   ;;  %v4502_v31 = vld [vmem:[%s5965_s6 + $0x98] ss:$12 sps:$4 sm:$0xff]  }
 0x4bc   :  { %2534 = vmatprep.subr.bf16.mxu1 %v4446_v32  ;;  %3967 = vmatprep.subr.bf16.mxu0 %v4471_v33  ;;  %v4505_v32 = vld [vmem:[%s5965_s6 + $0x16c] ss:$12 sps:$4 sm:$0xff]   ;;  %v4506_v33 = vld [vmem:[%s5965_s6 + $0x170] ss:$12 sps:$4 sm:$0xff]  }
 0x581   :  { %v1838_v41 = vpop.f32.mrb[24].mxu1  ;;  %v1919_v42 = vpop.f32.mrb[20].mxu0 }
 0x582   :  { %v1839_v43 = vadd.f32 %v3668_v34, %v1838_v41  ;;  %v1920_v44 = vadd.f32 %v3674_v38, %v1919_v42  ;;  %v4133_v45 = vpop.f32.mrb[25].mxu1  ;;  %v4145_v46 = vpop.f32.mrb[21].mxu0  ;;  %v4503_v34 = vld [vmem:[%s5965_s6 + $0x168] ss:$12 sps:$4 sm:$0xff]   ;;  %v4507_v38 = vld [vmem:[%s5965_s6 + $0xb0] ss:$12 sps:$4 sm:$0xff]  }
 0x583   :  { %v1841_v47 = vpop.f32.mrb[26].mxu1  ;;  %v1922_v48 = vpop.f32.mrb[22].mxu0  ;;  %v4510_v41 = vld [vmem:[%s5965_s6 + $0x184] ss:$12 sps:$4 sm:$0xff]   ;;  %v1943_v42 = vld [vmem:[%s5927_s20] sm:$0x7] }
 0x584   :  { %v1925_v49 = vmax.f32 %v1920_v44, 0.0  ;;  %v4134_v50 = vpop.f32.mrb[27].mxu1  ;;  %v4146_v51 = vpop.f32.mrb[23].mxu0  ;;  %1845 = vst.msk [vmem:[#allocation4] sm:$0xff] %vm1844_vm2, %v1839_v43  ;;  %v1948_v43 = vrot.slane %v1943_v42, %v5215_v37  ;;  %v1952_v44 = vrot.slane %v1943_v42, %v5221_v39  ;;  %s5966_s20 = sld [smem:[#allocation18_spill]] }
 0x586   :  { %v1926_v54 = vpack.c.bf16 %v1925_v49, %v1925_v49 }
 0x588   :  { %3692 = vmatmul.mubr.msk.bf16.vlgmr.msra.gmra.mrb[28].mxu1 %vm1338_vm1, %v1926_v54  ;;  %4156 = vmatmul.mubr.msk.bf16.vlgmr.msra.gmra.mrb[24].mxu0 %vm1338_vm1, %v1926_v54 }
 0x589   :  { %2535 = vmatpush1.bf16.msra.mxu1 %v4444_v52  ;;  %3968 = vmatpush3.bf16.msra.mxu0 %v4472_v53 }
 0x58a   :  { %2536 = vmatprep.subr.bf16.mxu1 %v4449_v55  ;;  %3969 = vmatprep.subr.bf16.mxu0 %v4476_v56 }
 0x58d   :  { %2537 = vmatpush1.bf16.msra.mxu1 %v4447_v57  ;;  %3970 = vmatpush3.bf16.msra.mxu0 %v4477_v58  ;;  %v4508_v58 = vld [vmem:[%s5965_s6 + $0x180] ss:$12 sps:$4 sm:$0xff]  }
 0x58e   :  { %2538 = vmatprep.subr.bf16.mxu1 %v4452_v60  ;;  %3971 = vmatprep.subr.bf16.mxu0 %v4481_v61  ;;  %v4511_v60 = vld [vmem:[%s5965_s6 + $0x188] ss:$12 sps:$4 sm:$0xff]  }
 0x591   :  { %2539 = vmatpush1.bf16.msra.mxu1 %v4450_v62  ;;  %3972 = vmatpush3.bf16.msra.mxu0 %v4482_v63  ;;  %v4514_v62 = vld [vmem:[%s5965_s6 + $0x19c] ss:$12 sps:$4 sm:$0xff]   ;;  %v4512_v63 = vld [vmem:[%s5965_s6 + $0x198] ss:$12 sps:$4 sm:$0xff]  }
 0x592   :  { %2540 = vmatprep.subr.bf16.mxu1 %v4455_v0  ;;  %3973 = vmatprep.subr.bf16.mxu0 %v4486_v1  ;;  %v4515_v0 = vld [vmem:[%s5965_s6 + $0x1a0] ss:$12 sps:$4 sm:$0xff]   ;;  %v1956_v1 = vrot.slane %v1943_v42, %v5232_v59 }
 0x595   :  { %2541 = vmatpush1.bf16.msra.mxu1 %v4453_v2  ;;  %3974 = vmatpush3.bf16.msra.mxu0 %v4487_v3  ;;  %v4518_v2 = vld [vmem:[%s5965_s6 + $0x1b4] ss:$12 sps:$4 sm:$0xff]   ;;  %v4516_v3 = vld [vmem:[%s5965_s6 + $0x1b0] ss:$12 sps:$4 sm:$0xff]  }
 0x596   :  { %2542 = vmatprep.subr.bf16.mxu1 %v4458_v4  ;;  %3975 = vmatprep.subr.bf16.mxu0 %v4491_v5  ;;  %v4519_v4 = vld [vmem:[%s5965_s6 + $0x1b8] ss:$12 sps:$4 sm:$0xff]  }
 0x599   :  { %2543 = vmatpush1.bf16.msra.mxu1 %v4456_v6  ;;  %3976 = vmatpush3.bf16.msra.mxu0 %v4492_v7  ;;  %v4522_v6 = vld [vmem:[%s5965_s6 + $0x1cc] ss:$12 sps:$4 sm:$0xff]   ;;  %v4520_v7 = vld [vmem:[%s5965_s6 + $0x1c8] ss:$12 sps:$4 sm:$0xff]  }
 0x59a   :  { %2544 = vmatprep.subr.bf16.mxu1 %v4461_v8  ;;  %3977 = vmatprep.subr.bf16.mxu0 %v4496_v9  ;;  %v4523_v8 = vld [vmem:[%s5965_s6 + $0x1d0] ss:$12 sps:$4 sm:$0xff]  }
 0x59d   :  { %2545 = vmatpush1.bf16.msra.mxu1 %v4459_v10  ;;  %3978 = vmatpush3.bf16.msra.mxu0 %v4497_v11  ;;  %v4524_v10 = vld [vmem:[%s5966_s20 + $0x40] sm:$0xff]  }
 0x59e   :  { %2546 = vmatprep.subr.bf16.mxu1 %v4464_v12  ;;  %3979 = vmatprep.subr.bf16.mxu0 %v4501_v29  ;;  %v4525_v11 = vld [vmem:[%s5966_s20] sm:$0xff]   ;;  %v4542_v29 = vld [vmem:[%s5966_s20 + $0x78] sm:$0xff]  }
 0x5a1   :  { %2547 = vmatpush1.bf16.msra.mxu1 %v4462_v13  ;;  %3980 = vmatpush3.bf16.msra.mxu0 %v4502_v31  ;;  %v4526_v13 = vld [vmem:[%s5966_s20 + $0x48] sm:$0xff]  }
 0x5a2   :  { %2548 = vmatprep.subr.bf16.mxu1 %v4467_v14  ;;  %3981 = vmatprep.subr.bf16.mxu0 %v4506_v33  ;;  %v4527_v14 = vld [vmem:[%s5966_s20 + $0x8] sm:$0xff]  }
 0x5a5   :  { %2549 = vmatpush1.bf16.msra.mxu1 %v4465_v15  ;;  %3982 = vmatpush3.bf16.msra.mxu0 %v4507_v38  ;;  %v4528_v15 = vld [vmem:[%s5966_s20 + $0x50] sm:$0xff]  }
 0x5a6   :  { %2550 = vmatprep.subr.bf16.mxu1 %v4470_v16  ;;  %4159 = vmatprep.subr.bf16.mxu0 %v4656_v35  ;;  %v4529_v16 = vld [vmem:[%s5966_s20 + $0x10] sm:$0xff]  }
 0x5a9   :  { %2551 = vmatpush1.bf16.msra.mxu1 %v4468_v17  ;;  %v4530_v17 = vld [vmem:[%s5966_s20 + $0x58] sm:$0xff]  }
 0x5aa   :  { %2552 = vmatprep.subr.bf16.mxu1 %v4475_v18  ;;  %v4531_v18 = vld [vmem:[%s5966_s20 + $0x18] sm:$0xff]  }
 0x5ad   :  { %2553 = vmatpush1.bf16.msra.mxu1 %v4473_v19  ;;  %v4532_v19 = vld [vmem:[%s5966_s20 + $0x80] sm:$0xff]  }
 0x5ae   :  { %2554 = vmatprep.subr.bf16.mxu1 %v4480_v20  ;;  %v4533_v20 = vld [vmem:[%s5966_s20 + $0x60] sm:$0xff]  }
 0x5b1   :  { %2555 = vmatpush1.bf16.msra.mxu1 %v4478_v21  ;;  %v4535_v21 = vld [vmem:[%s5966_s20 + $0x88] sm:$0xff]  }
 0x5b2   :  { %2556 = vmatprep.subr.bf16.mxu1 %v4485_v22  ;;  %v4534_v22 = vld [vmem:[%s5966_s20 + $0x20] sm:$0xff]  }
 0x5b5   :  { %2557 = vmatpush1.bf16.msra.mxu1 %v4483_v23  ;;  %v4536_v23 = vld [vmem:[%s5966_s20 + $0x68] sm:$0xff]  }
 0x5b6   :  { %2558 = vmatprep.subr.bf16.mxu1 %v4490_v24  ;;  %v4537_v24 = vld [vmem:[%s5966_s20 + $0x28] sm:$0xff]  }
 0x5b9   :  { %2559 = vmatpush1.bf16.msra.mxu1 %v4488_v25  ;;  %v4538_v25 = vld [vmem:[%s5966_s20 + $0x90] sm:$0xff]  }
 0x5ba   :  { %2560 = vmatprep.subr.bf16.mxu1 %v4495_v26  ;;  %v4539_v26 = vld [vmem:[%s5966_s20 + $0x70] sm:$0xff]  }
 0x5bd   :  { %2561 = vmatpush1.bf16.msra.mxu1 %v4493_v27  ;;  %v4540_v27 = vld [vmem:[%s5966_s20 + $0x30] sm:$0xff]  }
 0x5be   :  { %2562 = vmatprep.subr.bf16.mxu1 %v4500_v28  ;;  %v4541_v28 = vld [vmem:[%s5966_s20 + $0x98] sm:$0xff]  }
 0x5c1   :  { %2563 = vmatpush1.bf16.msra.mxu1 %v4498_v30  ;;  %v4543_v30 = vld [vmem:[%s5966_s20 + $0x38] sm:$0xff]  }
 0x5c2   :  { %2564 = vmatprep.subr.bf16.mxu1 %v4505_v32 }
 0x5c5   :  { %2565 = vmatpush1.bf16.msra.mxu1 %v4503_v34 }
 0x5c6   :  { %2575 = vmatprep.subr.bf16.mxu1 %v4510_v41  ;;  %v2194_v41 = vld [vmem:[%s5928_s21] sm:$0x7] }
 0x5c7   :  { %v2207_v42 = vrot.slane %v2194_v41, %v5232_v59 }
 0x65b   :  { %v2061_v45 = vpop.f32.mrb[28].mxu1  ;;  %v2102_v46 = vpop.f32.mrb[24].mxu0 }
 0x65c   :  { %v2062_v47 = vadd.f32 %v2061_v45, %v1948_v43  ;;  %v2063_v48 = vpop.f32.mrb[29].mxu1  ;;  %v4157_v49 = vpop.f32.mrb[25].mxu0  ;;  %v2103_v5 = vadd.f32 %v2102_v46, %v1956_v1  ;;  %v2199_v43 = vrot.slane %v2194_v41, %v5215_v37  ;;  %v4545_v1 = vld [vmem:[%s5918_s11 + $0x8] sm:$0xff]  }
 0x65d   :  { %v2064_v50 = vadd.f32 %v2063_v48, %v1952_v44  ;;  %v2065_v51 = vpop.f32.mrb[30].mxu1  ;;  %v2105_v52 = vpop.f32.mrb[26].mxu0  ;;  %v2203_v44 = vrot.slane %v2194_v41, %v5221_v39  ;;  %v4555_v41 = vld [vmem:[%s5919_s12 + $0x8] ss:$20 sps:$4 sm:$0xff]  }
 0x65e   :  { %v2108_v53 = vmax.f32 %v2062_v47, 0.0  ;;  %v2066_v54 = vpop.f32.mrb[31].mxu1  ;;  %v4158_v55 = vpop.f32.mrb[27].mxu0  ;;  %v2110_v9 = vmax.f32 %v2103_v5, 0.0  ;;  %v4549_v5 = vld [vmem:[%s5918_s11 + $0x28] sm:$0xff]  }
 0x65f   :  { %v2109_v56 = vmax.f32 %v2064_v50, 0.0 }
 0x660   :  { %v2111_v61 = vpack.c.bf16 %v2108_v53, %v2108_v53  ;;  %v2113_v12 = vpack.c.bf16 %v2110_v9, %v2110_v9  ;;  %v4554_v9 = vld [vmem:[%s5919_s12 + $0x4] ss:$20 sps:$4 sm:$0xff]  }
 0x661   :  { %v2112_v57 = vpack.c.bf16 %v2109_v56, %v2109_v56 }
 0x663   :  { %2566 = vmatprep.mubr.bf16.mxu1 %v2112_v57  ;;  %2648 = vmatprep.mubr.bf16.mxu0 %v2112_v57 }
 0x664   :  { %2567 = vmatmul.mubr.bf16.vlgmr.msra.gmra.mrb[32].mxu1 %v2111_v61  ;;  %2649 = vmatmul.mubr.bf16.vlgmr.msra.gmra.mrb[28].mxu0 %v2111_v61 }
 0x665   :  { %2576 = vmatpush1.bf16.msra.mxu1 %v4508_v58  ;;  %4160 = vmatpush3.bf16.msra.mxu0 %v4511_v60 }
 0x666   :  { %2577 = vmatprep.subr.bf16.mxu1 %v4514_v62  ;;  %4161 = vmatprep.subr.bf16.mxu0 %v4656_v35 }
 0x667   :  { %2607 = vmatprep.mubr.bf16.mxu1 %v4658_v40  ;;  %4167 = vmatprep.mubr.msk.bf16.mxu0 %vm4657_vm0, %v4656_v35 }
 0x669   :  { %2578 = vmatpush1.bf16.msra.mxu1 %v4512_v63  ;;  %4162 = vmatpush3.bf16.msra.mxu0 %v4515_v0  ;;  %v4544_v63 = vld [vmem:[%s5918_s11] sm:$0xff]  }
 0x66a   :  { %2579 = vmatprep.subr.bf16.mxu1 %v4518_v2  ;;  %4163 = vmatprep.subr.bf16.mxu0 %v4656_v35  ;;  %v4546_v2 = vld [vmem:[%s5918_s11 + $0x10] sm:$0xff]  }
 0x66d   :  { %2580 = vmatpush1.bf16.msra.mxu1 %v4516_v3  ;;  %4164 = vmatpush3.bf16.msra.mxu0 %v4519_v4  ;;  %v4547_v3 = vld [vmem:[%s5918_s11 + $0x18] sm:$0xff]   ;;  %v4548_v4 = vld [vmem:[%s5918_s11 + $0x20] sm:$0xff]  }
 0x66e   :  { %2581 = vmatprep.subr.bf16.mxu1 %v4522_v6  ;;  %4165 = vmatprep.subr.bf16.mxu0 %v4656_v35  ;;  %v4550_v6 = vld [vmem:[%s5918_s11 + $0x30] sm:$0xff]  }
 0x671   :  { %2582 = vmatpush1.bf16.msra.mxu1 %v4520_v7  ;;  %4166 = vmatpush3.bf16.msra.mxu0 %v4523_v8  ;;  %v4551_v7 = vld [vmem:[%s5918_s11 + $0x38] sm:$0xff]   ;;  %v4552_v8 = vld [vmem:[%s5919_s12] ss:$20 sps:$4 sm:$0xff]   ;;  %s4608_s11 = scalar_lea.vmem %s3499_s9, 128 }
 0x672   :  { %3994 = vmatprep.subr.bf16.mxu0 %v4524_v10  ;;  %4171 = vmatprep.subr.bf16.mxu1 %v4656_v35  ;;  %v4557_v10 = vld [vmem:[%s5919_s12 + $0xc] ss:$20 sps:$4 sm:$0xff]   ;;  %p4609_p0 = scmp.ne.s32.totalorder %s3499_s9, %s4608_s11  ;;  %p4614_p2 = scmp.lt.s32.totalorder %s4608_s11, %s4608_s11 }
 0x674   :  { %3754 = vmatmul.mubr.msk.bf16.vlgmr.msra.gmra.mrb[32].mxu1 %vm1338_vm1, %v2113_v12  ;;  %4168 = vmatmul.mubr.msk.bf16.vlgmr.msra.gmra.mrb[32].mxu0 %vm1338_vm1, %v2113_v12  ;;  %v4558_v12 = vld [vmem:[%s5919_s12 + $0x28] ss:$20 sps:$4 sm:$0xff]   ;;  %p4615_p3 = por %p4614_p2, %p4613_p1 }
 0x675   :  { %3995 = vmatpush3.bf16.msra.mxu0 %v4525_v11  ;;  %4179 = vmatprep.mubr.msk.bf16.mxu1 %vm4657_vm0, %v4656_v35  ;;  %v4560_v11 = vld [vmem:[%s5919_s12 + $0x2c] ss:$20 sps:$4 sm:$0xff]  }
 0x676   :  { %3996 = vmatprep.subr.bf16.mxu0 %v4526_v13  ;;  %4172 = vmatpush3.bf16.msra.mxu1 %v4532_v19  ;;  %v4566_v13 = vld [vmem:[%s5919_s12 + $0x54] ss:$20 sps:$4 sm:$0xff]   ;;  %v4584_v19 = vld [vmem:[%s5919_s12 + $0xcc] ss:$20 sps:$4 sm:$0xff]   ;;  %p4616_p4 = pnand %p4615_p3, %p4609_p0 }
 0x677   :  { %4173 = vmatprep.subr.bf16.mxu1 %v4656_v35 }
 0x679   :  { %3997 = vmatpush3.bf16.msra.mxu0 %v4527_v14  ;;  %v4564_v14 = vld [vmem:[%s5919_s12 + $0x50] ss:$20 sps:$4 sm:$0xff]  }
 0x67a   :  { %3998 = vmatprep.subr.bf16.mxu0 %v4528_v15  ;;  %4174 = vmatpush3.bf16.msra.mxu1 %v4535_v21  ;;  %v4572_v15 = vld [vmem:[%s5919_s12 + $0x7c] ss:$20 sps:$4 sm:$0xff]   ;;  %v4590_v21 = vld [vmem:[%s5919_s12 + $0xf4] ss:$20 sps:$4 sm:$0xff]  }
 0x67b   :  { %4175 = vmatprep.subr.bf16.mxu1 %v4656_v35 }
 0x67d   :  { %3999 = vmatpush3.bf16.msra.mxu0 %v4529_v16  ;;  %v4570_v16 = vld [vmem:[%s5919_s12 + $0x78] ss:$20 sps:$4 sm:$0xff]  }
 0x67e   :  { %4000 = vmatprep.subr.bf16.mxu0 %v4530_v17  ;;  %4176 = vmatpush3.bf16.msra.mxu1 %v4538_v25  ;;  %v4578_v17 = vld [vmem:[%s5919_s12 + $0xa4] ss:$20 sps:$4 sm:$0xff]  }
 0x67f   :  { %4177 = vmatprep.subr.bf16.mxu1 %v4656_v35 }
 0x681   :  { %4001 = vmatpush3.bf16.msra.mxu0 %v4531_v18  ;;  %v4576_v18 = vld [vmem:[%s5919_s12 + $0xa0] ss:$20 sps:$4 sm:$0xff]  }
 0x682   :  { %4002 = vmatprep.subr.bf16.mxu0 %v4533_v20  ;;  %4178 = vmatpush3.bf16.msra.mxu1 %v4541_v28  ;;  %v4582_v20 = vld [vmem:[%s5919_s12 + $0xc8] ss:$20 sps:$4 sm:$0xff]  }
 0x683   :  { %3350 = vmatprep.subr.bf16.mxu1 %v4554_v9  ;;  %v4606_v9 = vld [vmem:[%s5919_s12 + $0x100] ss:$20 sps:$4 sm:$0xff]  }
 0x685   :  { %4003 = vmatpush3.bf16.msra.mxu0 %v4534_v22  ;;  %v4588_v22 = vld [vmem:[%s5919_s12 + $0xf0] ss:$20 sps:$4 sm:$0xff]  }
 0x686   :  { %4004 = vmatprep.subr.bf16.mxu0 %v4536_v23 }
 0x689   :  { %4005 = vmatpush3.bf16.msra.mxu0 %v4537_v24 }
 0x68a   :  { %4006 = vmatprep.subr.bf16.mxu0 %v4539_v26 }
 0x68d   :  { %4007 = vmatpush3.bf16.msra.mxu0 %v4540_v27  ;;  %v3756_v27 = vld [vmem:[%s5929_s22] ss:$0 sm:$0xff] }
 0x68e   :  { %4008 = vmatprep.subr.bf16.mxu0 %v4542_v29 }
 0x691   :  { %4009 = vmatpush3.bf16.msra.mxu0 %v4543_v30 }
 0x692   :  { %4183 = vmatprep.subr.bf16.mxu0 %v4656_v35 }
 0x737   :  { %v3983_v31 = vpop.f32.mrb[28].mxu0 }
 0x738   :  { %v3984_v32 = vpop.f32.mrb[29].mxu0 }
 0x739   :  { %v3985_v33 = vadd.f32 %v3984_v32, %v3983_v31  ;;  %v3986_v34 = vpop.f32.mrb[30].mxu0 }
 0x73a   :  { %v3987_v38 = vpop.f32.mrb[31].mxu0 }
 0x73b   :  { %v2651_v45 = vadd.f32 %v3985_v33, %v2207_v42 }
 0x747   :  { %v2609_v46 = vpop.f32.mrb[32].mxu1  ;;  %v2690_v47 = vpop.f32.mrb[32].mxu0 }
 0x748   :  { %v4225_v48 = vadd.f32 %v2609_v46, %v2199_v43  ;;  %v2691_v49 = vadd.f32 %v2690_v47, %v2651_v45  ;;  %v2611_v50 = vpop.f32.mrb[33].mxu1  ;;  %v4169_v51 = vpop.f32.mrb[33].mxu0  ;;  %v4563_v43 = vld [vmem:[%s5919_s12 + $0x34] ss:$20 sps:$4 sm:$0xff]   ;;  %v4569_v45 = vld [vmem:[%s5919_s12 + $0x5c] ss:$20 sps:$4 sm:$0xff]  }
 0x749   :  { %v4226_v52 = vadd.f32 %v2611_v50, %v2203_v44  ;;  %v2613_v53 = vpop.f32.mrb[34].mxu1  ;;  %v2693_v54 = vpop.f32.mrb[34].mxu0  ;;  %v4561_v44 = vld [vmem:[%s5919_s12 + $0x30] ss:$20 sps:$4 sm:$0xff]   ;;  %v4567_v46 = vld [vmem:[%s5919_s12 + $0x58] ss:$20 sps:$4 sm:$0xff]  }
 0x74a   :  { %v2696_v55 = vmax.f32 %v4225_v48, 0.0  ;;  %v2698_v56 = vmax.f32 %v2691_v49, 0.0  ;;  %v2614_v57 = vpop.f32.mrb[35].mxu1  ;;  %v4170_v58 = vpop.f32.mrb[35].mxu0  ;;  %v4575_v47 = vld [vmem:[%s5919_s12 + $0x84] ss:$20 sps:$4 sm:$0xff]  }
 0x74b   :  { %v2697_v60 = vmax.f32 %v4226_v52, 0.0  ;;  %v4581_v48 = vld [vmem:[%s5919_s12 + $0xac] ss:$20 sps:$4 sm:$0xff]   ;;  %v4579_v49 = vld [vmem:[%s5919_s12 + $0xa8] ss:$20 sps:$4 sm:$0xff]  }
 0x74c   :  { %v2701_v61 = vpack.c.bf16 %v2698_v56, %v2698_v56  ;;  %v2699_v0 = vpack.c.bf16 %v2696_v55, %v2696_v55  ;;  %v4587_v50 = vld [vmem:[%s5919_s12 + $0xd4] ss:$20 sps:$4 sm:$0xff]   ;;  %v4585_v51 = vld [vmem:[%s5919_s12 + $0xd0] ss:$20 sps:$4 sm:$0xff]   ;;  %v4591_v53 = vld [vmem:[%s5919_s12 + $0xf8] ss:$20 sps:$4 sm:$0xff]  }
 0x74d   :  { %v2700_v62 = vpack.c.bf16 %v2697_v60, %v2697_v60  ;;  %v4593_v52 = vld [vmem:[%s5919_s12 + $0xfc] ss:$20 sps:$4 sm:$0xff]   ;;  %v4594_v55 = vld [vmem:[%s5919_s12 + $0x118] ss:$20 sps:$4 sm:$0xff]   ;;  %v4597_v57 = vld [vmem:[%s5919_s12 + $0x120] ss:$20 sps:$4 sm:$0xff]  }
 0x74e   :  { %4180 = vmatmul.mubr.msk.bf16.vlgmr.msra.gmra.mrb[36].mxu1 %vm1338_vm1, %v2701_v61  ;;  %v4596_v54 = vld [vmem:[%s5919_s12 + $0x11c] ss:$20 sps:$4 sm:$0xff]   ;;  %v4599_v56 = vld [vmem:[%s5919_s12 + $0x124] ss:$20 sps:$4 sm:$0xff]   ;;  %v3778_v58 = vld [vmem:[%s5930_s23] ss:$0 sm:$0xff] }
 0x74f   :  { %2904 = vmatprep.mubr.bf16.mxu0 %v2700_v62  ;;  %3382 = vmatprep.mubr.bf16.mxu1 %v4658_v40 }
 0x750   :  { %2905 = vmatmul.mubr.bf16.vlgmr.msra.gmra.mrb[36].mxu0 %v2699_v0  ;;  %3351 = vmatpush1.bf16.msra.mxu1 %v4552_v8  ;;  %v4605_v8 = vld [vmem:[%s5919_s12 + $0xd8] ss:$20 sps:$4 sm:$0xff]  }
 0x751   :  { %4184 = vmatpush3.bf16.msra.mxu0 %v4544_v63  ;;  %4199 = vmatprep.mubr.msk.bf16.mxu0 %vm4657_vm0, %v4656_v35 }
 0x752   :  { %4185 = vmatprep.subr.bf16.mxu0 %v4656_v35  ;;  %3352 = vmatprep.subr.bf16.mxu1 %v4560_v11 }
 0x754   :  { %3353 = vmatpush1.bf16.msra.mxu1 %v4558_v12 }
 0x755   :  { %4186 = vmatpush3.bf16.msra.mxu0 %v4545_v1  ;;  %3354 = vmatprep.subr.bf16.mxu1 %v4566_v13 }
 0x756   :  { %4187 = vmatprep.subr.bf16.mxu0 %v4656_v35 }
 0x758   :  { %3355 = vmatpush1.bf16.msra.mxu1 %v4564_v14 }
 0x759   :  { %4188 = vmatpush3.bf16.msra.mxu0 %v4546_v2  ;;  %3356 = vmatprep.subr.bf16.mxu1 %v4572_v15  ;;  %v4600_v2 = vld [vmem:[%s5919_s12 + $0x10] ss:$20 sps:$4 sm:$0xff]  }
 0x75a   :  { %4189 = vmatprep.subr.bf16.mxu0 %v4656_v35 }
 0x75c   :  { %3357 = vmatpush1.bf16.msra.mxu1 %v4570_v16 }
 0x75d   :  { %4190 = vmatpush3.bf16.msra.mxu0 %v4547_v3  ;;  %3358 = vmatprep.subr.bf16.mxu1 %v4578_v17 }
 0x75e   :  { %4191 = vmatprep.subr.bf16.mxu0 %v4656_v35 }
 0x760   :  { %3359 = vmatpush1.bf16.msra.mxu1 %v4576_v18 }
 0x761   :  { %4192 = vmatpush3.bf16.msra.mxu0 %v4548_v4  ;;  %3360 = vmatprep.subr.bf16.mxu1 %v4584_v19  ;;  %v4601_v4 = vld [vmem:[%s5919_s12 + $0x38] ss:$20 sps:$4 sm:$0xff]  }
 0x762   :  { %4193 = vmatprep.subr.bf16.mxu0 %v4656_v35 }
 0x764   :  { %3361 = vmatpush1.bf16.msra.mxu1 %v4582_v20 }
 0x765   :  { %4194 = vmatpush3.bf16.msra.mxu0 %v4549_v5  ;;  %3362 = vmatprep.subr.bf16.mxu1 %v4590_v21  ;;  %v4602_v5 = vld [vmem:[%s5919_s12 + $0x60] ss:$20 sps:$4 sm:$0xff]  }
 0x766   :  { %4195 = vmatprep.subr.bf16.mxu0 %v4656_v35 }
 0x768   :  { %3363 = vmatpush1.bf16.msra.mxu1 %v4588_v22 }
 0x769   :  { %4196 = vmatpush3.bf16.msra.mxu0 %v4550_v6  ;;  %3364 = vmatprep.subr.bf16.mxu1 %v4596_v54  ;;  %v4603_v6 = vld [vmem:[%s5919_s12 + $0x88] ss:$20 sps:$4 sm:$0xff]  }
 0x76a   :  { %4197 = vmatprep.subr.bf16.mxu0 %v4656_v35 }
 0x76c   :  { %3365 = vmatpush1.bf16.msra.mxu1 %v4594_v55 }
 0x76d   :  { %4198 = vmatpush3.bf16.msra.mxu0 %v4551_v7  ;;  %4203 = vmatprep.subr.bf16.mxu1 %v4656_v35  ;;  %v4604_v7 = vld [vmem:[%s5919_s12 + $0xb0] ss:$20 sps:$4 sm:$0xff]  }
 0x76e   :  { %3391 = vmatprep.subr.bf16.mxu0 %v4557_v10  ;;  %v4607_v10 = vld [vmem:[%s5919_s12 + $0x128] ss:$20 sps:$4 sm:$0xff]  }
 0x821   :  { %v2946_v23 = vpop.f32.mrb[36].mxu1 }
 0x822   :  { %v4181_v24 = vpop.f32.mrb[37].mxu1 }
 0x823   :  { %v4010_v25 = vpop.f32.mrb[36].mxu0  ;;  %v2949_v26 = vpop.f32.mrb[38].mxu1 }
 0x824   :  { %v4011_v28 = vpop.f32.mrb[37].mxu0  ;;  %v4182_v29 = vpop.f32.mrb[39].mxu1 }
 0x825   :  { %v4012_v30 = vadd.f32 %v4011_v28, %v4010_v25  ;;  %v4013_v31 = vpop.f32.mrb[38].mxu0 }
 0x826   :  { %v4014_v32 = vpop.f32.mrb[39].mxu0 }
 0x827   :  { %v2907_v33 = vadd.f32 %v4012_v30, %v3756_v27 }
 0x829   :  { %v2947_v34 = vadd.f32 %v2946_v23, %v2907_v33 }
 0x82b   :  { %v2952_v38 = vmax.f32 %v2947_v34, 0.0 }
 0x82d   :  { %v2953_v42 = vpack.c.bf16 %v2952_v38, %v2952_v38 }
 0x82f   :  { %4200 = vmatmul.mubr.bf16.vlgmr.msra.gmra.mrb[40].mxu0 %v2953_v42 }
 0x830   :  { %3392 = vmatpush1.bf16.msra.mxu0 %v4555_v41  ;;  %3423 = vmatprep.mubr.bf16.mxu0 %v4658_v40  ;;  %v4573_v40 = vld [vmem:[%s5919_s12 + $0x80] ss:$20 sps:$4 sm:$0xff]  }
 0x831   :  { %3393 = vmatprep.subr.bf16.mxu0 %v4563_v43 }
 0x834   :  { %3394 = vmatpush1.bf16.msra.mxu0 %v4561_v44 }
 0x835   :  { %3395 = vmatprep.subr.bf16.mxu0 %v4569_v45 }
 0x838   :  { %3396 = vmatpush1.bf16.msra.mxu0 %v4567_v46 }
 0x839   :  { %3397 = vmatprep.subr.bf16.mxu0 %v4575_v47 }
 0x83c   :  { %3398 = vmatpush1.bf16.msra.mxu0 %v4573_v40 }
 0x83d   :  { %3399 = vmatprep.subr.bf16.mxu0 %v4581_v48 }
 0x840   :  { %3400 = vmatpush1.bf16.msra.mxu0 %v4579_v49 }
 0x841   :  { %3401 = vmatprep.subr.bf16.mxu0 %v4587_v50 }
 0x844   :  { %3402 = vmatpush1.bf16.msra.mxu0 %v4585_v51 }
 0x845   :  { %3403 = vmatprep.subr.bf16.mxu0 %v4593_v52 }
 0x848   :  { %3404 = vmatpush1.bf16.msra.mxu0 %v4591_v53 }
 0x849   :  { %3405 = vmatprep.subr.bf16.mxu0 %v4599_v56 }
 0x84c   :  { %3406 = vmatpush1.bf16.msra.mxu0 %v4597_v57 }
 0x902   :  { %v3059_v60 = vpop.f32.mrb[40].mxu0 }
 0x903   :  { %v3060_v61 = vadd.f32 %v3778_v58, %v3059_v60  ;;  %v4201_v62 = vpop.f32.mrb[41].mxu0 }
 0x904   :  { %v3062_v63 = vpop.f32.mrb[42].mxu0 }
 0x905   :  { %v3065_v0 = vmax.f32 %v3060_v61, 0.0  ;;  %v4202_v1 = vpop.f32.mrb[43].mxu0 }
 0x907   :  { %v3066_v3 = vpack.c.bf16 %v3065_v0, %v3065_v0 }
 0x909   :  { %3383 = vmatmul.mubr.bf16.vlgmr.msra.gmra.mrb[40].mxu1 %v3066_v3  ;;  %3424 = vmatmul.mubr.bf16.vlgmr.msra.gmra.mrb[44].mxu0 %v3066_v3 }
 0x90a   :  { %4204 = vmatpush3.bf16.msra.mxu1 %v4600_v2  ;;  %4219 = vmatprep.mubr.msk.bf16.mxu1 %vm4657_vm0, %v4656_v35 }
 0x90b   :  { %4205 = vmatprep.subr.bf16.mxu1 %v4656_v35 }
 0x90e   :  { %4206 = vmatpush3.bf16.msra.mxu1 %v4601_v4 }
 0x90f   :  { %4207 = vmatprep.subr.bf16.mxu1 %v4656_v35 }
 0x912   :  { %4208 = vmatpush3.bf16.msra.mxu1 %v4602_v5 }
 0x913   :  { %4209 = vmatprep.subr.bf16.mxu1 %v4656_v35 }
 0x916   :  { %4210 = vmatpush3.bf16.msra.mxu1 %v4603_v6 }
 0x917   :  { %4211 = vmatprep.subr.bf16.mxu1 %v4656_v35 }
 0x91a   :  { %4212 = vmatpush3.bf16.msra.mxu1 %v4604_v7 }
 0x91b   :  { %4213 = vmatprep.subr.bf16.mxu1 %v4656_v35 }
 0x91e   :  { %4214 = vmatpush3.bf16.msra.mxu1 %v4605_v8 }
 0x91f   :  { %4215 = vmatprep.subr.bf16.mxu1 %v4656_v35 }
 0x922   :  { %4216 = vmatpush3.bf16.msra.mxu1 %v4606_v9 }
 0x923   :  { %4217 = vmatprep.subr.bf16.mxu1 %v4656_v35 }
 0x926   :  { %4218 = vmatpush3.bf16.msra.mxu1 %v4607_v10 }
 0x929   :  { %4220 = vmatmul.mubr.bf16.vlgmr.msra.gmra.mrb[44].mxu1 %v3066_v3 }
 0x92a   :  { %4619 = shalt.err (!%p4616_p4)
}
 0x92b   :  { %s4620_s22 = scalar_lea.hbm %s5933_s26, 128 }
 0x92c   :  { %p4621_p5 = scmp.ne.s32.totalorder %s5933_s26, %s4620_s22  ;;  %p4624_p6 = scmp.lt.u32.totalorder %s4620_s22, %s5933_s26 }
 0x92e   :  { %p4626_p7 = pnand %p4624_p6, %p4621_p5 }
 0x930   :  { %4629 = shalt.err (!%p4626_p7)
}
 0x931   :  { %3501 = dma.vmem_to_hbm [thread:$0]  %s3499_s9, 128, %s5933_s26, [#allocation5]   ;;  %v3115_v35 = vld [vmem:[%s5931_s24] sm:$0x1f]  ;;  %v3131_v11 = vsub.s32 3, %v5212_v36 }
 0x932   :  { %v3120_v12 = vrot.slane %v3115_v35, %v5215_v37  ;;  %v3128_v13 = vrot.slane %v3115_v35, %v5232_v59  ;;  %v3124_v14 = vrot.slane %v3115_v35, %v5221_v39  ;;  %v3135_v39 = vsub.s32 4, %v5212_v36  ;;  %s4660_s24 = smov [#allocation2]  }
 0x933   :  { %v3132_v15 = vrot.slane %v3115_v35, %v3131_v11  ;;  %s3488_s26 = sshll.u32 %s4660_s24, 4  ;;  %s3489_s26 = int_to_ptr.vmem [resolvable:$true] %s3488_s26 }
 0x934   :  { %v3136_v59 = vrot.slane %v3115_v35, %v3135_v39  ;;  %s4630_s27 = scalar_lea.vmem %s3489_s26, 640  ;;  %p4635_p9 = scmp.lt.s32.totalorder %s3489_s26, %s3489_s26 }
 0x935   :  { %p4631_p8 = scmp.ne.s32.totalorder %s3489_s26, %s4630_s27  ;;  %p4636_p10 = scmp.lt.s32.totalorder %s4630_s27, %s4630_s27 }
 0x937   :  { %p4637_p11 = por %p4636_p10, %p4635_p9 }
 0x939   :  { %p4638_p12 = pnand %p4637_p11, %p4631_p8 }
 0x9dc   :  { %v3384_v16 = vpop.f32.mrb[40].mxu1  ;;  %v3425_v17 = vpop.f32.mrb[44].mxu0 }
 0x9dd   :  { %v3385_v18 = vadd.f32 %v3384_v16, %v3120_v12  ;;  %v3426_v19 = vadd.f32 %v3425_v17, %v3128_v13  ;;  %v3386_v20 = vpop.f32.mrb[41].mxu1  ;;  %v3427_v21 = vpop.f32.mrb[45].mxu0 }
 0x9de   :  { %v3387_v22 = vadd.f32 %v3386_v20, %v3124_v14  ;;  %v3428_v23 = vadd.f32 %v3427_v21, %v3132_v15  ;;  %v3388_v24 = vpop.f32.mrb[42].mxu1  ;;  %v3429_v25 = vpop.f32.mrb[46].mxu0 }
 0x9df   :  { %v3472_v26 = vmax.f32 %v3385_v18, 0.0  ;;  %v3474_v27 = vmax.f32 %v3426_v19, 0.0  ;;  %v3389_v28 = vpop.f32.mrb[43].mxu1  ;;  %v3430_v29 = vpop.f32.mrb[47].mxu0 }
 0x9e0   :  { %v3473_v37 = vmax.f32 %v3387_v22, 0.0  ;;  %v3475_v30 = vmax.f32 %v3428_v23, 0.0 }
 0x9e1   :  { %3477 = vst [vmem:[#allocation2] sm:$0xff] %v3472_v26  ;;  %3479 = vst [vmem:[#allocation2 + $0x10] sm:$0xff] %v3474_v27 }
 0x9e2   :  { %3478 = vst [vmem:[#allocation2 + $0x8] sm:$0xff] %v3473_v37  ;;  %3480 = vst [vmem:[#allocation2 + $0x18] sm:$0xff] %v3475_v30 }
 0x9fc   :  { %v3466_v31 = vpop.f32.mrb[44].mxu1 }
 0x9fd   :  { %v3467_v32 = vadd.f32 %v3466_v31, %v3136_v59  ;;  %v4221_v33 = vpop.f32.mrb[45].mxu1 }
 0x9fe   :  { %v3469_v34 = vpop.f32.mrb[46].mxu1 }
 0x9ff   :  { %v3476_v38 = vmax.f32 %v3467_v32, 0.0  ;;  %v4222_v41 = vpop.f32.mrb[47].mxu1 }
 0xa01   :  { %3481 = vst [vmem:[#allocation2 + $0x20] sm:$0xff] %v3476_v38 }
 0xa02   :  { %4641 = shalt.err (!%p4638_p12)
}
 0xa03   :  { %s4642_s30 = scalar_lea.hbm %s5932_s25, 640 }
 0xa04   :  { %p4643_p13 = scmp.ne.s32.totalorder %s5932_s25, %s4642_s30  ;;  %p4646_p0 = scmp.lt.u32.totalorder %s4642_s30, %s5932_s25 }
 0xa06   :  { %p4648_p1 = pnand %p4646_p0, %p4643_p13 }
 0xa08   :  { %4651 = shalt.err (!%p4648_p1)
}
 0xa09   :  { %3491 = dma.vmem_to_hbm [thread:$0]  %s3489_s26, 640, %s5932_s25, [#allocation3]  }
 0xa0a   :  { %4652 = dma.done.wait [#allocation3], 640  }
 0xa0b   :  { %4653 = vsyncadd [#allocation3], 4294966656 }
 0xa0c   :  { %4654 = dma.done.wait [#allocation5], 128  }
 0xa0d   :  { %4655 = vsyncadd [#allocation5], 4294967168 }
 0xa0e   :  { %3508 = vsyncpa [#allocation3], 1 }
 0xa0f   :  { %3509 = vsyncpa [#allocation5], 1 }

</bundles_post_ra>
